<compile_context>
chip_gen: v7x
topology: tpu7x:2x2x1
jax: 0.10.0
libtpu: 0.0.40
codegen_flags: <defaults>
</compile_context>

<pallas_src>
import math
import jax
import jax.numpy as jnp
from jax.experimental import pallas as pl
from jax.experimental.pallas import tpu as pltpu


def _round_up(a: int, b: int) -> int:
    return ((a + b - 1) // b) * b


def _mlp_kernel(x_ref, w1_ref, b1_ref, w2_ref, b2_ref, o_ref):
    # Cast activations to bf16 in-kernel (VPU) — the wrapper never makes an
    # astype/pad copy of x in HBM.
    x = x_ref[...].astype(w1_ref.dtype)
    # fc1: (tm, E) @ (E, H) on the MXU with f32 accumulation.
    h = jnp.dot(x, w1_ref[...], preferred_element_type=jnp.float32)
    h = h + b1_ref[...]                                   # bias in f32 (VPU)
    # SiLU = h * sigmoid(h); approx reciprocal keeps the divide on the EUP slot.
    h = h * pl.reciprocal(1.0 + jnp.exp(-h), approx=True)
    # fc2: (tm, H) @ (H, E) on the MXU, then bias + cast to output dtype.
    out = jnp.dot(h.astype(w2_ref.dtype), w2_ref[...],
                  preferred_element_type=jnp.float32)
    o_ref[...] = (out + b2_ref[...]).astype(o_ref.dtype)


def _choose_row_tile(M: int, tm_default: int) -> int:
    """Big enough to amortize per-grid-step overhead, but >= 2 tiles whenever
    possible so both v7x TensorCores get work on the parallel axis."""
    if M >= 2 * tm_default:
        return tm_default
    tm = _round_up(max(-(-M // 2), 8), 8)   # ~half of M, rows multiple of 8
    return min(tm, _round_up(M, 8))


def mlp_pallas(x, w1, b1, w2, b2, *, tm=512, compute_dtype=jnp.bfloat16,
               out_dtype=None):
    """x: (B, S, E); w1: (E, H); b1: (H,); w2: (H, E); b2: (E,)."""
    B, S, E = x.shape
    H = w1.shape[1]
    M = B * S
    out_dtype = x.dtype if out_dtype is None else out_dtype

    # TODO(synk): for very large H the fully-resident weights + f32 (tm, H)
    # intermediate could exceed v7x's 64 MiB VMEM; re-introduce H streaming
    # (masked ragged chunks) in that regime.

    tm = _choose_row_tile(M, tm)
    n_m = pl.cdiv(M, tm)          # ragged last tile handled by OOB masking

    x2d = x.reshape(M, E)                                   # free reshape, no cast
    w1c = w1 if w1.dtype == compute_dtype else w1.astype(compute_dtype)
    w2c = w2 if w2.dtype == compute_dtype else w2.astype(compute_dtype)
    b1_2d = b1.reshape(1, H).astype(jnp.float32)
    b2_2d = b2.reshape(1, E).astype(jnp.float32)

    cb = jnp.dtype(compute_dtype).itemsize
    xb = jnp.dtype(x.dtype).itemsize
    ob = jnp.dtype(out_dtype).itemsize

    footprint = (2 * 2 * E * H * cb         # resident weights (2-buffer worst case)
                 + 2 * tm * E * xb          # x row tile, double-buffered
                 + 2 * tm * E * ob          # output tile, double-buffered
                 + tm * H * 4               # f32 fc1 intermediate
                 + 2 * (H + E) * 4)         # biases
    vmem_limit = max(16 << 20, min(int(1.25 * footprint) + (4 << 20), 48 << 20))

    cost = pl.CostEstimate(
        flops=4 * M * E * H,                               # fc1 + fc2
        transcendentals=M * H,                             # exp in SiLU
        bytes_accessed=(M * E * (xb + ob)                  # x in, out
                        + 2 * E * H * cb                   # weights (once)
                        + (H + E) * 4),                    # biases
    )

    out = pl.pallas_call(
        _mlp_kernel,
        out_shape=jax.ShapeDtypeStruct((M, E), out_dtype),
        grid_spec=pltpu.PrefetchScalarGridSpec(
            num_scalar_prefetch=0,
            grid=(n_m,),
            in_specs=[
                pl.BlockSpec((tm, E), lambda i: (i, 0)),   # x row tile
                pl.BlockSpec((E, H), lambda i: (0, 0)),    # W1, fully resident
                pl.BlockSpec((1, H), lambda i: (0, 0)),    # b1, resident
                pl.BlockSpec((H, E), lambda i: (0, 0)),    # W2, fully resident
                pl.BlockSpec((1, E), lambda i: (0, 0)),    # b2, resident
            ],
            out_specs=pl.BlockSpec((tm, E), lambda i: (i, 0)),
        ),
        compiler_params=pltpu.CompilerParams(
            dimension_semantics=("parallel",),
            vmem_limit_bytes=vmem_limit,
        ),
        cost_estimate=cost,
    )(x2d, w1c, b1_2d, w2c, b2_2d)

    return out.reshape(B, S, E)


def init_params(key, embed_dim, mlp_dim, dtype=jnp.float32):
    """Deterministic init mimicking nn.Linear defaults (U(-1/sqrt(fan_in), ...))."""
    k1, k2, k3, k4 = jax.random.split(key, 4)
    bound1 = 1.0 / math.sqrt(embed_dim)
    bound2 = 1.0 / math.sqrt(mlp_dim)
    # Stored as (in_features, out_features): equivalent to PyTorch weight.T
    w1 = jax.random.uniform(k1, (embed_dim, mlp_dim), dtype, -bound1, bound1)
    b1 = jax.random.uniform(k2, (mlp_dim,), dtype, -bound1, bound1)
    w2 = jax.random.uniform(k3, (mlp_dim, embed_dim), dtype, -bound2, bound2)
    b2 = jax.random.uniform(k4, (embed_dim,), dtype, -bound2, bound2)
    return w1, b1, w2, b2


def mlp_reference(x, w1, b1, w2, b2, compute_dtype=jnp.bfloat16):
    """Same numerics as the kernel: bf16 matmul inputs, f32 accumulation."""
    h = jnp.dot(x.astype(compute_dtype), w1.astype(compute_dtype),
                preferred_element_type=jnp.float32) + b1.astype(jnp.float32)
    h = h * jax.nn.sigmoid(h)
    out = jnp.dot(h.astype(compute_dtype), w2.astype(compute_dtype),
                  preferred_element_type=jnp.float32) + b2.astype(jnp.float32)
    return out.astype(x.dtype)


if __name__ == "__main__":
    # Shapes consistent with the module's Config (embed_dim=512, mlp_dim=4*512).
    batch, seq, embed_dim, mlp_dim = 2, 8, 512, 2048

    key = jax.random.PRNGKey(0)
    kx, kp = jax.random.split(key)
    x = jax.random.normal(kx, (batch, seq, embed_dim), jnp.float32)
    w1, b1, w2, b2 = init_params(kp, embed_dim, mlp_dim)

    # Convert weights to the MXU compute dtype once at init time, not per call.
    w1_bf = w1.astype(jnp.bfloat16)
    w2_bf = w2.astype(jnp.bfloat16)

    out = mlp_pallas(x, w1_bf, b1, w2_bf, b2)
    out = jax.block_until_ready(out)

    ref = mlp_reference(x, w1, b1, w2, b2)
    assert out.shape == (batch, seq, embed_dim)
    max_err = float(jnp.max(jnp.abs(out - ref)))
    assert jnp.allclose(out, ref, atol=2e-2, rtol=2e-2), max_err

    print("KERNEL_OK")
</pallas_src>

<mosaic_0001>
module attributes {stable_mosaic.version = 11 : i64} {
  func.func @_mlp_kernel(%arg0: i32, %arg1: memref<8x512xf32, #tpu.memory_space<vmem>>, %arg2: memref<512x2048xbf16, #tpu.memory_space<vmem>>, %arg3: memref<1x2048xf32, #tpu.memory_space<vmem>>, %arg4: memref<2048x512xbf16, #tpu.memory_space<vmem>>, %arg5: memref<1x512xf32, #tpu.memory_space<vmem>>, %arg6: memref<8x512xf32, #tpu.memory_space<vmem>>) attributes {dimension_semantics = [#tpu.dimension_semantics<parallel>], iteration_bounds = array<i64: 2>, scalar_prefetch = 0 : i64, scratch_operands = 0 : i64, tpu.core_type = #tpu.core_type<tc>, window_params = [{transform_indices = @transform_0, window_bounds = array<i64: 8, 512>}, {pipeline_mode = #tpu.pipeline_mode<synchronous>, transform_indices = @transform_1, window_bounds = array<i64: 512, 2048>}, {pipeline_mode = #tpu.pipeline_mode<synchronous>, transform_indices = @transform_2, window_bounds = array<i64: 1, 2048>}, {pipeline_mode = #tpu.pipeline_mode<synchronous>, transform_indices = @transform_3, window_bounds = array<i64: 2048, 512>}, {pipeline_mode = #tpu.pipeline_mode<synchronous>, transform_indices = @transform_4, window_bounds = array<i64: 1, 512>}, {transform_indices = @transform_5, window_bounds = array<i64: 8, 512>}]} {
    %c0 = arith.constant 0 : index
    %c0_0 = arith.constant 0 : index
    %0 = vector.load %arg1[%c0, %c0_0] : memref<8x512xf32, #tpu.memory_space<vmem>>, vector<8x512xf32>
    %1 = arith.truncf %0 : vector<8x512xf32> to vector<8x512xbf16>
    %c0_1 = arith.constant 0 : index
    %c0_2 = arith.constant 0 : index
    %2 = vector.load %arg2[%c0_1, %c0_2] : memref<512x2048xbf16, #tpu.memory_space<vmem>>, vector<512x2048xbf16>
    %cst = arith.constant dense<0.000000e+00> : vector<8x2048xf32>
    %3 = tpu.matmul %1, %2, %cst {dimension_numbers = #tpu.dot_dimension_numbers<[1], [0], [0], [1], [0, 0, 1, 1], [], []>} : vector<8x512xbf16>, vector<512x2048xbf16>, vector<8x2048xf32> -> vector<8x2048xf32>
    %c0_3 = arith.constant 0 : index
    %c0_4 = arith.constant 0 : index
    %4 = vector.load %arg3[%c0_3, %c0_4] : memref<1x2048xf32, #tpu.memory_space<vmem>>, vector<1x2048xf32>
    %5 = vector.broadcast %4 : vector<1x2048xf32> to vector<8x2048xf32>
    %6 = arith.addf %3, %5 : vector<8x2048xf32>
    %cst_5 = arith.constant 0.000000e+00 : f32
    %7 = vector.broadcast %cst_5 : f32 to vector<8x2048xf32>
    %8 = arith.subf %7, %6 : vector<8x2048xf32>
    %9 = math.exp %8 : vector<8x2048xf32>
    %cst_6 = arith.constant 1.000000e+00 : f32
    %10 = vector.broadcast %cst_6 : f32 to vector<8x2048xf32>
    %11 = arith.addf %10, %9 : vector<8x2048xf32>
    %12 = tpu.reciprocal %11 {approx = true} : vector<8x2048xf32> -> vector<8x2048xf32>
    %13 = arith.mulf %6, %12 : vector<8x2048xf32>
    %14 = arith.truncf %13 : vector<8x2048xf32> to vector<8x2048xbf16>
    %c0_7 = arith.constant 0 : index
    %c0_8 = arith.constant 0 : index
    %15 = vector.load %arg4[%c0_7, %c0_8] : memref<2048x512xbf16, #tpu.memory_space<vmem>>, vector<2048x512xbf16>
    %cst_9 = arith.constant dense<0.000000e+00> : vector<8x512xf32>
    %16 = tpu.matmul %14, %15, %cst_9 {dimension_numbers = #tpu.dot_dimension_numbers<[1], [0], [0], [1], [0, 0, 1, 1], [], []>} : vector<8x2048xbf16>, vector<2048x512xbf16>, vector<8x512xf32> -> vector<8x512xf32>
    %c0_10 = arith.constant 0 : index
    %c0_11 = arith.constant 0 : index
    %17 = vector.load %arg5[%c0_10, %c0_11] : memref<1x512xf32, #tpu.memory_space<vmem>>, vector<1x512xf32>
    %18 = vector.broadcast %17 : vector<1x512xf32> to vector<8x512xf32>
    %19 = arith.addf %16, %18 : vector<8x512xf32>
    %c0_12 = arith.constant 0 : index
    %c0_13 = arith.constant 0 : index
    %20 = vector.load %arg6[%c0_12, %c0_13] : memref<8x512xf32, #tpu.memory_space<vmem>>, vector<8x512xf32>
    tpu.vector_store %arg6[%c0_12, %c0_13], %19 {strides = array<i32>} : memref<8x512xf32, #tpu.memory_space<vmem>>, vector<8x512xf32>,
    return
  }
  func.func @transform_0(%arg0: i32) -> (i32, i32) {
    %c0_i32 = arith.constant 0 : i32
    %c0_i32_0 = arith.constant 0 : i32
    return %arg0, %c0_i32 : i32, i32
  }
  func.func @transform_1(%arg0: i32) -> (i32, i32) {
    %c0_i32 = arith.constant 0 : i32
    %c0_i32_0 = arith.constant 0 : i32
    %c0_i32_1 = arith.constant 0 : i32
    return %c0_i32, %c0_i32_0 : i32, i32
  }
  func.func @transform_2(%arg0: i32) -> (i32, i32) {
    %c0_i32 = arith.constant 0 : i32
    %c0_i32_0 = arith.constant 0 : i32
    %c0_i32_1 = arith.constant 0 : i32
    return %c0_i32, %c0_i32_0 : i32, i32
  }
  func.func @transform_3(%arg0: i32) -> (i32, i32) {
    %c0_i32 = arith.constant 0 : i32
    %c0_i32_0 = arith.constant 0 : i32
    %c0_i32_1 = arith.constant 0 : i32
    return %c0_i32, %c0_i32_0 : i32, i32
  }
  func.func @transform_4(%arg0: i32) -> (i32, i32) {
    %c0_i32 = arith.constant 0 : i32
    %c0_i32_0 = arith.constant 0 : i32
    %c0_i32_1 = arith.constant 0 : i32
    return %c0_i32, %c0_i32_0 : i32, i32
  }
  func.func @transform_5(%arg0: i32) -> (i32, i32) {
    %c0_i32 = arith.constant 0 : i32
    %c0_i32_0 = arith.constant 0 : i32
    return %arg0, %c0_i32 : i32, i32
  }
}

</mosaic_0001>

<bundles_post_ra>
// kernel: tpu_custom_call.1
= control target key start
LH: loop header
LB: loop body
LE: loop exit
PB: predicated region body
PF: predicated region fallthrough
CT: control target
= control target key end

     0   :  { %10 = vsyncpa [#allocation3], 0  ;;  %s10948_s0 = inlined_call_operand.hbm [shape: f32[16,512], index: 0, kind: input, shape index: {}]   ;;  %s10949_s1 = inlined_call_operand.hbm [shape: bf16[512,2048], index: 1, kind: input, shape index: {}]   ;;  %s10950_s2 = inlined_call_operand.hbm [shape: f32[1,2048], index: 2, kind: input, shape index: {}]   ;;  %s10951_s3 = inlined_call_operand.hbm [shape: bf16[2048,512], index: 3, kind: input, shape index: {}]   ;;  %s10952_s4 = inlined_call_operand.hbm [shape: f32[1,512], index: 4, kind: input, shape index: {}]   ;;  %s10953_s5 = inlined_call_operand.hbm [shape: f32[16,512], index: 5, kind: output, shape index: {}]  }
   0x1   :  { %12 = vsyncpa [#allocation3 + $0x1], 0 }
   0x2   :  { %13 = vsyncpa [#allocation6], 0 }
   0x3   :  { %14 = vsyncpa [#allocation9], 0 }
   0x4   :  { %15 = vsyncpa [#allocation4], 0 }
   0x5   :  { %17 = vsyncpa [#allocation4 + $0x1], 0  ;;  %s10443_s18 = smov 0   ;;  %s10445_s19 = smov 0  }
   0x6   :  { %s10447_s20 = smov 0   ;;  %s10449_s21 = smov 0  }
   0x7 LB: > { %s10403_s22 = smov [#allocation5]   ;;  %s10464_s24 = sadd.s32 4294967295, %s10401_s21   ;;  %s10401_s21 = sphi %s10449_s21, %s10977_s21   ;;  %s10397_s20 = sphi %s10447_s20, %s10976_s20   ;;  %s10393_s19 = sphi %s10445_s19, %s10975_s19   ;;  %s10389_s18 = sphi %s10443_s18, %s10974_s18  }
   0x8   : > { %s176_s23 = sshll.u32 %s10403_s22, 4  ;;  %p8105_p0 = scmp.ge.s32.totalorder %s10401_s21, 1  ;;  %s10469_s23 = int_to_ptr.vmem [resolvable:$true] %s176_s23 }
   0x9   : > { %p10954_p1 = scmp.eq.s32.totalorder %s10464_s24, 0  ;;  %p164_p2 = scmp.lt.s32.totalorder %s10401_s21, 3 }
   0xa   : > { %s10404_s26 = smov [#allocation8]   ;;  %s10405_s29 = smov [#allocation7]  }
   0xb   : > { %p10471_p3 = pnand %p8105_p0, %p164_p2  ;;  %s200_s27 = sshll.u32 %s10404_s26, 4  ;;  %s10484_s27 = int_to_ptr.vmem [resolvable:$true] %s200_s27 }
   0xc   : > { %s10486_s30 = sshll.u32 %s10405_s29, 4  ;;  %s10185_s8 = scalar_lea.hbm %s10949_s1, 65536  ;;  %s191_s30 = int_to_ptr.vmem [resolvable:$true] %s10486_s30 }
   0xd   : > { %s10957_s25 = scalar_select %p10471_p3, 1, 0 }
   0xe   : > { %p9280_p5 = pneg %p10471_p3  ;;  %p10186_p7 = scmp.ne.s32.totalorder %s10949_s1, %s10185_s8 }
   0xf   : > { %p10192_p11 = scmp.lt.u32.totalorder %s10185_s8, %s10949_s1 }
  0x10   : > { %p10480_p6 = pnand %p9280_p5, %p10954_p1 }
  0x12   : > { %p10496_p8 = pneg %p10480_p6 }
  0x14   : > { %p10188_p9 = pnand %p10496_p8, %p10186_p7 }
  0x16   : > { %p10189_p10 = pneg %p10188_p9 }
  0x18   : > { %p10194_p12 = pnand %p10192_p11, %p10189_p10 }
  0x1a   : > { %10197 = shalt.err (!%p10194_p12)
}
  0x1b   : > { %s10198_s14 = scalar_lea.vmem %s10469_s23, 65536  ;;  %p10206_p5 = scmp.lt.s32.totalorder %s10469_s23, %s10469_s23 }
  0x1c   : > { %p10199_p13 = scmp.ne.s32.totalorder %s10469_s23, %s10198_s14  ;;  %p10207_p4 = scmp.lt.s32.totalorder %s10198_s14, %s10198_s14 }
  0x1e   : > { %p10201_p0 = pnand %p10199_p13, %p10496_p8  ;;  %p10208_p7 = por %p10207_p4, %p10206_p5 }
  0x20   : > { %p10202_p2 = pneg %p10201_p0 }
  0x22   : > { %p10209_p9 = pnand %p10208_p7, %p10202_p2 }
  0x24   : > { %10212 = shalt.err (!%p10209_p9)
}
  0x25   : > { %s10406_s15 = smov 1024   ;;  %s10407_s16 = smov 64  }
  0x26   : > { %9283 = dma.hbm_to_vmem [thread:$0]  (!%p10480_p6), %s10949_s1, 65536, %s10469_s23, [#allocation6], %s10406_s15, %s10406_s15, %s10407_s16  }
  0x27   : > { %s10213_s6 = scalar_lea.hbm %s10951_s3, 65536 }
  0x28   : > { %p10214_p4 = scmp.ne.s32.totalorder %s10951_s3, %s10213_s6  ;;  %p10220_p12 = scmp.lt.u32.totalorder %s10213_s6, %s10951_s3 }
  0x2a   : > { %p10216_p10 = pnand %p10214_p4, %p10496_p8 }
  0x2c   : > { %p10217_p11 = pneg %p10216_p10 }
  0x2e   : > { %p10222_p13 = pnand %p10220_p12, %p10217_p11 }
  0x30   : > { %10225 = shalt.err (!%p10222_p13)
}
  0x31   : > { %s10226_s23 = scalar_lea.vmem %s10484_s27, 65536  ;;  %p10234_p7 = scmp.lt.s32.totalorder %s10484_s27, %s10484_s27 }
  0x32   : > { %p10227_p0 = scmp.ne.s32.totalorder %s10484_s27, %s10226_s23  ;;  %p10235_p9 = scmp.lt.s32.totalorder %s10226_s23, %s10226_s23 }
  0x34   : > { %p10229_p2 = pnand %p10227_p0, %p10496_p8  ;;  %p10236_p4 = por %p10235_p9, %p10234_p7 }
  0x36   : > { %p10230_p5 = pneg %p10229_p2 }
  0x38   : > { %p10237_p10 = pnand %p10236_p4, %p10230_p5 }
  0x3a   : > { %10240 = shalt.err (!%p10237_p10)
}
  0x3b   : > { %s10408_s12 = smov 256   ;;  %s10409_s13 = smov 16  }
  0x3c   : > { %9289 = dma.hbm_to_vmem [thread:$0]  (!%p10480_p6), %s10951_s3, 65536, %s10484_s27, [#allocation9], %s10408_s12, %s10408_s12, %s10409_s13  }
  0x3d   : > { %s10241_s22 = scalar_lea.hbm %s10950_s2, 256 }
  0x3e   : > { %p10242_p11 = scmp.ne.s32.totalorder %s10950_s2, %s10241_s22  ;;  %p10248_p0 = scmp.lt.u32.totalorder %s10241_s22, %s10950_s2 }
  0x40   : > { %p10244_p12 = pnand %p10242_p11, %p10496_p8 }
  0x42   : > { %p10245_p13 = pneg %p10244_p12 }
  0x44   : > { %p10250_p2 = pnand %p10248_p0, %p10245_p13 }
  0x46   : > { %10253 = shalt.err (!%p10250_p2)
}
  0x47   : > { %s10254_s8 = scalar_lea.vmem %s191_s30, 256  ;;  %p10262_p4 = scmp.lt.s32.totalorder %s191_s30, %s191_s30 }
  0x48   : > { %p10255_p5 = scmp.ne.s32.totalorder %s191_s30, %s10254_s8  ;;  %p10263_p10 = scmp.lt.s32.totalorder %s10254_s8, %s10254_s8 }
  0x4a   : > { %p10257_p7 = pnand %p10255_p5, %p10496_p8  ;;  %p10264_p1 = por %p10263_p10, %p10262_p4 }
  0x4c   : > { %p10258_p9 = pneg %p10257_p7 }
  0x4e   : > { %p10265_p3 = pnand %p10264_p1, %p10258_p9 }
  0x50   : > { %10268 = shalt.err (!%p10265_p3)
}
  0x51   : > { %9286 = dma.hbm_to_vmem [thread:$0]  (!%p10480_p6), %s10950_s2, 256, %s191_s30, [#allocation6]  }
  0x52   : > { %s10410_s10 = smov [#allocation10]   ;;  %s10269_s14 = scalar_lea.hbm %s10952_s4, 64 }
  0x53   : > { %s214_s23 = sshll.u32 %s10410_s10, 4  ;;  %p10270_p11 = scmp.ne.s32.totalorder %s10952_s4, %s10269_s14  ;;  %s215_s23 = int_to_ptr.vmem [resolvable:$true] %s214_s23 }
  0x54   : > { %p10276_p12 = scmp.lt.u32.totalorder %s10269_s14, %s10952_s4 }
  0x55   : > { %p10272_p1 = pnand %p10270_p11, %p10496_p8 }
  0x57   : > { %p10273_p3 = pneg %p10272_p1 }
  0x59   : > { %p10278_p13 = pnand %p10276_p12, %p10273_p3 }
  0x5b   : > { %10281 = shalt.err (!%p10278_p13)
}
  0x5c   : > { %s10282_s30 = scalar_lea.vmem %s215_s23, 64  ;;  %p10290_p7 = scmp.lt.s32.totalorder %s215_s23, %s215_s23 }
  0x5d   : > { %p10283_p0 = scmp.ne.s32.totalorder %s215_s23, %s10282_s30  ;;  %p10291_p9 = scmp.lt.s32.totalorder %s10282_s30, %s10282_s30 }
  0x5f   : > { %p10285_p2 = pnand %p10283_p0, %p10496_p8  ;;  %p10292_p4 = por %p10291_p9, %p10290_p7 }
  0x61   : > { %p10286_p5 = pneg %p10285_p2 }
  0x63   : > { %p10293_p10 = pnand %p10292_p4, %p10286_p5 }
  0x65   : > { %10296 = shalt.err (!%p10293_p10)
}
  0x66   : > { %9292 = dma.hbm_to_vmem [thread:$0]  (!%p10480_p6), %s10952_s4, 64, %s215_s23, [#allocation9]  }
  0x67   : > { %s8104_s11 = sadd.s32 4294967294, %s10401_s21   ;;  %s10579_s28 = sadd.s32 1, %s10401_s21  }
  0x68   : > { %s27_s6 = ssub.s32 %s10401_s21, %s10579_s28  ;;  %s30_s7 = sadd.s32 1, %s10397_s20 }
  0x69   : > { %p28_p8 = scmp.eq.s32.totalorder %s27_s6, 0  ;;  %p37_p11 = scmp.ne.s32.totalorder %s10397_s20, %s10393_s19 }
  0x6a   : > { %p38_p1 = scmp.eq.s32.totalorder %s10401_s21, 0  ;;  %p43_p3 = scmp.ne.s32.totalorder %s10393_s19, %s10389_s18 }
  0x6b   : > { %s10590_s8 = scalar_select %p28_p8, %s10397_s20, %s30_s7  }
  0x6c   : > { %p10592_p12 = por %p38_p1, %p37_p11  ;;  %p10961_p13 = scmp.eq.s32.totalorder %s10464_s24, 0 }
  0x6d   : > { %p151_p0 = scmp.eq.s32.totalorder %s10464_s24, 1  ;;  %p157_p2 = scmp.eq.s32.totalorder %s8104_s11, 1 }
  0x6e   : > { %p10598_p6 = por %p10961_p13, %p43_p3  ;;  %p9305_p5 = scmp.lt.s32.totalorder %s10401_s21, 2 }
  0x6f   : > { %s225_s10 = sand.u32 1, %s10397_s20   ;;  %p10605_p7 = por %p151_p0, %p37_p11 }
  0x70   : > { %p10609_p9 = por %p157_p2, %p43_p3  ;;  %s8111_s13 = sshll.u32 %s225_s10, 5 }
  0x71   : > { %s10963_s23 = scalar_select %p10605_p7, 1, 0 }
  0x72   : > { %s10964_s12 = scalar_select %p10609_p9, 1, 0 }
  0x73   : > { %s9150_s14 = sshll.u32 %s10401_s21, 9  ;;  %s229_s22 = scalar_lea.vmem [#allocation2], %s8111_s13 }
  0x74   : > { %s10617_s17 = scalar_lea.hbm %s10948_s0, %s9150_s14  ;;  %s237_s30 = sshll.u32 %s229_s22, 4  ;;  %s10619_s30 = int_to_ptr.vmem [resolvable:$true] %s237_s30 }
  0x75   : > { %p10623_p4 = pnand %p9305_p5, %p10592_p12  ;;  %s226_s29 = scalar_lea.sflag [#allocation3], %s225_s10 }
  0x76   : > { %s10297_s11 = scalar_lea.hbm %s10617_s17, 512  ;;  %s10302_s13 = scalar_lea.hbm %s10948_s0, 1024 }
  0x77   : > { %p10298_p10 = scmp.ne.s32.totalorder %s10617_s17, %s10297_s11  ;;  %p10299_p8 = pneg %p10623_p4 }
  0x78   : > { %p10303_p3 = scmp.lt.u32.totalorder %s10617_s17, %s10948_s0  ;;  %p10304_p12 = scmp.lt.u32.totalorder %s10302_s13, %s10297_s11 }
  0x79   : > { %p10300_p11 = pnand %p10299_p8, %p10298_p10  ;;  %p10306_p0 = scmp.lt.u32.totalorder %s10297_s11, %s10617_s17 }
  0x7a   : > { %p10305_p13 = por %p10304_p12, %p10303_p3 }
  0x7b   : > { %p10301_p1 = pneg %p10300_p11 }
  0x7c   : > { %p10307_p2 = por %p10306_p0, %p10305_p13 }
  0x7e   : > { %p10308_p5 = pnand %p10307_p2, %p10301_p1 }
  0x80   : > { %10311 = shalt.err (!%p10308_p5)
}
  0x81   : > { %s10312_s10 = scalar_lea.vmem %s10619_s30, 512  ;;  %s10411_s15 = smov [#allocation2]  }
  0x82   : > { %p10313_p10 = scmp.ne.s32.totalorder %s10619_s30, %s10312_s10  ;;  %s10317_s16 = sshll.u32 %s10411_s15, 4  ;;  %s10318_s16 = int_to_ptr.vmem [resolvable:$false] %s10317_s16 }
  0x83   : > { %s10319_s22 = scalar_lea.vmem %s10318_s16, 1024  ;;  %p10320_p7 = scmp.lt.s32.totalorder %s10619_s30, %s10318_s16 }
  0x84   : > { %p10315_p11 = pnand %p10313_p10, %p10299_p8  ;;  %p10321_p3 = scmp.lt.s32.totalorder %s10319_s22, %s10312_s10 }
  0x86   : > { %p10316_p9 = pneg %p10315_p11  ;;  %p10322_p12 = por %p10321_p3, %p10320_p7 }
  0x88   : > { %p10323_p13 = pnand %p10322_p12, %p10316_p9 }
  0x8a   : > { %10326 = shalt.err (!%p10323_p13)
}
  0x8b   : > { %9296 = dma.hbm_to_vmem [thread:$0]  (!%p10623_p4), %s10617_s17, 512, %s10619_s30, %s226_s29  }
  0x8c   : > { %p10966_p1 = scmp.ne.s32.totalorder %s10957_s25, 0 }
  0x8d   : > { %s10655_s11 = sand.u32 (!%p10966_p1), 1, %s10393_s19  }
  0x8e   : > { %246 = sbr.rel (%p10966_p1) target bundleno = 1414 (0x586), region = 40  ;;  %s8115_s6 = sshll.u32 (!%p10966_p1), %s10655_s11, 5 }
  0x8f   : > { %s249_s7 = scalar_lea.sflag (!%p10966_p1), [#allocation3], %s10655_s11  ;;  %s10661_s13 = scalar_lea.vmem (!%p10966_p1), [#allocation2], %s8115_s6 }
  0x95   : > { %10372 = dma.done.wait (%p10598_p6), %s249_s7, 512  }
  0x96   : > { %10374 = vsyncadd (%p10598_p6), %s249_s7, 4294966784  ;;  %p10967_p7 = scmp.eq.s32.totalorder %s10464_s24, 0 }
  0x98   : > { %10376 = dma.done.wait (%p10967_p7), [#allocation6], 65792   ;;  %p10968_p9 = pmov %p10967_p7 }
  0x99   : > { %p10969_p4 = pmov %p10967_p7 }
  0x9a   : > { %10378 = vsyncadd (%p10968_p9), [#allocation6], 4294901504 }
  0x9b   : > { %10380 = dma.done.wait (%p10969_p4), [#allocation9], 65600   ;;  %p10970_p8 = pmov %p10969_p4 }
  0x9c   : > { %v303_v0 = vld [vmem:[#allocation5] sm:$0xff]  ;;  %v304_v2 = vld [vmem:[#allocation5 + $0x8] sm:$0xff]  ;;  %s9151_s25 = sshll.u32 %s10464_s24, 9  ;;  %s294_s9 = scalar_lea.vmem [#allocation11], %s8115_s6 }
  0x9d   : > { %10382 = vsyncadd (%p10970_p8), [#allocation9], 4294901696  ;;  %v311_v1 = vld [vmem:[#allocation5 + $0x40] sm:$0xff]  ;;  %v312_v4 = vld [vmem:[#allocation5 + $0x48] sm:$0xff]  ;;  %s7996_s17 = sshll.u32 %s294_s9, 4  ;;  %s10904_s24 = scalar_lea.hbm %s10953_s5, %s9151_s25  ;;  %s10906_s17 = int_to_ptr.vmem [resolvable:$true] %s7996_s17 }
  0x9e   : > { %v8122_v3 = vcombine.high %v303_v0, %v311_v1  ;;  %v8121_v5 = vcombine.low %v303_v0, %v311_v1  ;;  %v319_v6 = vld [vmem:[#allocation5 + $0x80] sm:$0xff]  ;;  %v8124_v8 = vcombine.high %v304_v2, %v312_v4  ;;  %v8123_v9 = vcombine.low %v304_v2, %v312_v4  ;;  %v320_v11 = vld [vmem:[#allocation5 + $0x88] sm:$0xff]  ;;  %s7982_s29 = scalar_lea.sflag [#allocation4], %s10655_s11  ;;  %s10327_s27 = scalar_lea.vmem %s10906_s17, 512 }
  0x9f   : > { %v327_v7 = vld [vmem:[#allocation5 + $0xc0] sm:$0xff]  ;;  %v328_v12 = vld [vmem:[#allocation5 + $0xc8] sm:$0xff]  ;;  %p10328_p6 = scmp.ne.s32.totalorder %s10906_s17, %s10327_s27  ;;  %p10971_p0 = scmp.ne.s32.totalorder %s10963_s23, 0 }
  0xa0   : > { %v8138_v10 = vcombine.high %v319_v6, %v327_v7  ;;  %v335_v13 = vld [vmem:[#allocation5 + $0x100] sm:$0xff]  ;;  %3459 = vmatprep.subr.bf16.mxu0 %v8122_v3  ;;  %v8140_v14 = vcombine.high %v320_v11, %v328_v12  ;;  %v336_v16 = vld [vmem:[#allocation5 + $0x108] sm:$0xff]  ;;  %3541 = vmatprep.subr.bf16.mxu1 %v8124_v8  ;;  %v8137_v18 = vcombine.low %v319_v6, %v327_v7  ;;  %s10412_s14 = smov [#allocation11]  }
  0xa1   : > { %v343_v15 = vld [vmem:[#allocation5 + $0x140] sm:$0xff]  ;;  %v344_v17 = vld [vmem:[#allocation5 + $0x148] sm:$0xff]  ;;  %3460 = vmatpush1.bf16.msra.mxu0 %v8121_v5  ;;  %3542 = vmatpush1.bf16.msra.mxu1 %v8123_v9  ;;  %v8139_v19 = vcombine.low %v320_v11, %v328_v12  ;;  %p10329_p2 = pnand %p10328_p6, %p10971_p0  ;;  %s10331_s10 = sshll.u32 %s10412_s14, 4  ;;  %s10332_s10 = int_to_ptr.vmem [resolvable:$false] %s10331_s10 }
  0xa2   : > { %3461 = vmatprep.subr.bf16.mxu0 %v8138_v10  ;;  %v8154_v20 = vcombine.high %v335_v13, %v343_v15  ;;  %3543 = vmatprep.subr.bf16.mxu1 %v8140_v14  ;;  %v8156_v21 = vcombine.high %v336_v16, %v344_v17  ;;  %v351_v22 = vld [vmem:[#allocation5 + $0x180] sm:$0xff]  ;;  %v352_v24 = vld [vmem:[#allocation5 + $0x188] sm:$0xff]  ;;  %v8153_v26 = vcombine.low %v335_v13, %v343_v15  ;;  %s10333_s15 = scalar_lea.vmem %s10332_s10, 1024  ;;  %p10334_p10 = scmp.lt.s32.totalorder %s10906_s17, %s10332_s10 }
  0xa3   : > { %v359_v23 = vld [vmem:[#allocation5 + $0x1c0] sm:$0xff]  ;;  %v360_v25 = vld [vmem:[#allocation5 + $0x1c8] sm:$0xff]  ;;  %v8155_v27 = vcombine.low %v336_v16, %v344_v17  ;;  %p10330_p5 = pneg %p10329_p2  ;;  %p10335_p11 = scmp.lt.s32.totalorder %s10333_s15, %s10327_s27 }
  0xa4   : > { %v8170_v28 = vcombine.high %v351_v22, %v359_v23  ;;  %v8172_v29 = vcombine.high %v352_v24, %v360_v25  ;;  %v367_v30 = vld [vmem:[#allocation5 + $0x200] sm:$0xff]  ;;  %v368_v32 = vld [vmem:[#allocation5 + $0x208] sm:$0xff]  ;;  %v8169_v34 = vcombine.low %v351_v22, %v359_v23  ;;  %v8171_v35 = vcombine.low %v352_v24, %v360_v25 }
  0xa5   : > { %3462 = vmatpush1.bf16.msra.mxu0 %v8137_v18  ;;  %3544 = vmatpush1.bf16.msra.mxu1 %v8139_v19  ;;  %v375_v31 = vld [vmem:[#allocation5 + $0x240] sm:$0xff]  ;;  %v376_v33 = vld [vmem:[#allocation5 + $0x248] sm:$0xff]  ;;  %p10336_p3 = por %p10335_p11, %p10334_p10 }
  0xa6   : > { %3463 = vmatprep.subr.bf16.mxu0 %v8154_v20  ;;  %3545 = vmatprep.subr.bf16.mxu1 %v8156_v21  ;;  %v8186_v36 = vcombine.high %v367_v30, %v375_v31  ;;  %v8188_v37 = vcombine.high %v368_v32, %v376_v33  ;;  %v383_v38 = vld [vmem:[#allocation5 + $0x280] sm:$0xff]  ;;  %v384_v40 = vld [vmem:[#allocation5 + $0x288] sm:$0xff]  ;;  %v8185_v42 = vcombine.low %v367_v30, %v375_v31 }
  0xa7   : > { %v391_v39 = vld [vmem:[#allocation5 + $0x2c0] sm:$0xff]  ;;  %v392_v41 = vld [vmem:[#allocation5 + $0x2c8] sm:$0xff]  ;;  %v8187_v43 = vcombine.low %v368_v32, %v376_v33  ;;  %p10337_p12 = pnand %p10336_p3, %p10330_p5 }
  0xa8   : > { %v8202_v44 = vcombine.high %v383_v38, %v391_v39  ;;  %v8204_v45 = vcombine.high %v384_v40, %v392_v41  ;;  %v399_v46 = vld [vmem:[#allocation5 + $0x300] sm:$0xff]  ;;  %v400_v48 = vld [vmem:[#allocation5 + $0x308] sm:$0xff]  ;;  %v8201_v50 = vcombine.low %v383_v38, %v391_v39  ;;  %v8203_v51 = vcombine.low %v384_v40, %v392_v41 }
  0xa9   : > { %3464 = vmatpush1.bf16.msra.mxu0 %v8153_v26  ;;  %3546 = vmatpush1.bf16.msra.mxu1 %v8155_v27  ;;  %v407_v47 = vld [vmem:[#allocation5 + $0x340] sm:$0xff]  ;;  %v408_v49 = vld [vmem:[#allocation5 + $0x348] sm:$0xff] }
  0xaa   : > { %3465 = vmatprep.subr.bf16.mxu0 %v8170_v28  ;;  %3547 = vmatprep.subr.bf16.mxu1 %v8172_v29  ;;  %v8218_v52 = vcombine.high %v399_v46, %v407_v47  ;;  %v296_v53 = vld [vmem:[%s10661_s13 + $0x8] sm:$0xff]  ;;  %v8220_v54 = vcombine.high %v400_v48, %v408_v49  ;;  %v415_v55 = vld [vmem:[#allocation5 + $0x380] sm:$0xff]  ;;  %v8217_v60 = vcombine.low %v399_v46, %v407_v47 }
  0xab   : > { %v423_v56 = vld [vmem:[#allocation5 + $0x3c0] sm:$0xff]  ;;  %v10676_v57 = vpack.c.bf16 %v296_v53, %v296_v53  ;;  %v416_v58 = vld [vmem:[#allocation5 + $0x388] sm:$0xff]  ;;  %v8219_v61 = vcombine.low %v400_v48, %v408_v49 }
  0xac   : > { %v424_v59 = vld [vmem:[#allocation5 + $0x3c8] sm:$0xff]  ;;  %v8234_v62 = vcombine.high %v415_v55, %v423_v56  ;;  %v431_v0 = vld [vmem:[#allocation5 + $0x400] sm:$0xff]  ;;  %v8233_v4 = vcombine.low %v415_v55, %v423_v56 }
  0xad   : > { %3466 = vmatpush1.bf16.msra.mxu0 %v8169_v34  ;;  %3548 = vmatpush1.bf16.msra.mxu1 %v8171_v35  ;;  %v8236_v63 = vcombine.high %v416_v58, %v424_v59  ;;  %v439_v1 = vld [vmem:[#allocation5 + $0x440] sm:$0xff]  ;;  %v432_v2 = vld [vmem:[#allocation5 + $0x408] sm:$0xff]  ;;  %v8235_v5 = vcombine.low %v416_v58, %v424_v59 }
  0xae   : > { %3467 = vmatprep.subr.bf16.mxu0 %v8186_v36  ;;  %3549 = vmatprep.subr.bf16.mxu1 %v8188_v37  ;;  %v440_v3 = vld [vmem:[#allocation5 + $0x448] sm:$0xff]  ;;  %v8250_v6 = vcombine.high %v431_v0, %v439_v1  ;;  %v447_v8 = vld [vmem:[#allocation5 + $0x480] sm:$0xff]  ;;  %v8249_v12 = vcombine.low %v431_v0, %v439_v1 }
  0xaf   : > { %3491 = vmatprep.mubr.bf16.mxu0 %v10676_v57  ;;  %3573 = vmatprep.mubr.bf16.mxu1 %v10676_v57  ;;  %v8252_v7 = vcombine.high %v432_v2, %v440_v3  ;;  %v455_v9 = vld [vmem:[#allocation5 + $0x4c0] sm:$0xff]  ;;  %v448_v10 = vld [vmem:[#allocation5 + $0x488] sm:$0xff]  ;;  %v8251_v13 = vcombine.low %v432_v2, %v440_v3 }
  0xb0   : > { %v456_v11 = vld [vmem:[#allocation5 + $0x4c8] sm:$0xff]  ;;  %v8266_v14 = vcombine.high %v447_v8, %v455_v9  ;;  %v463_v16 = vld [vmem:[#allocation5 + $0x500] sm:$0xff]  ;;  %v8265_v20 = vcombine.low %v447_v8, %v455_v9 }
  0xb1   : > { %3468 = vmatpush1.bf16.msra.mxu0 %v8185_v42  ;;  %3550 = vmatpush1.bf16.msra.mxu1 %v8187_v43  ;;  %v8268_v15 = vcombine.high %v448_v10, %v456_v11  ;;  %v471_v17 = vld [vmem:[#allocation5 + $0x540] sm:$0xff]  ;;  %v464_v18 = vld [vmem:[#allocation5 + $0x508] sm:$0xff]  ;;  %v8267_v21 = vcombine.low %v448_v10, %v456_v11 }
  0xb2   : > { %3469 = vmatprep.subr.bf16.mxu0 %v8202_v44  ;;  %3551 = vmatprep.subr.bf16.mxu1 %v8204_v45  ;;  %v472_v19 = vld [vmem:[#allocation5 + $0x548] sm:$0xff]  ;;  %v8282_v22 = vcombine.high %v463_v16, %v471_v17  ;;  %v479_v24 = vld [vmem:[#allocation5 + $0x580] sm:$0xff]  ;;  %v8281_v28 = vcombine.low %v463_v16, %v471_v17 }
  0xb3   : > { %v8284_v23 = vcombine.high %v464_v18, %v472_v19  ;;  %v487_v25 = vld [vmem:[#allocation5 + $0x5c0] sm:$0xff]  ;;  %v480_v26 = vld [vmem:[#allocation5 + $0x588] sm:$0xff]  ;;  %v8283_v29 = vcombine.low %v464_v18, %v472_v19 }
  0xb4   : > { %v488_v27 = vld [vmem:[#allocation5 + $0x5c8] sm:$0xff]  ;;  %v8298_v30 = vcombine.high %v479_v24, %v487_v25  ;;  %v495_v32 = vld [vmem:[#allocation5 + $0x600] sm:$0xff]  ;;  %v8297_v36 = vcombine.low %v479_v24, %v487_v25 }
  0xb5   : > { %3470 = vmatpush1.bf16.msra.mxu0 %v8201_v50  ;;  %3552 = vmatpush1.bf16.msra.mxu1 %v8203_v51  ;;  %v8300_v31 = vcombine.high %v480_v26, %v488_v27  ;;  %v503_v33 = vld [vmem:[#allocation5 + $0x640] sm:$0xff]  ;;  %v496_v34 = vld [vmem:[#allocation5 + $0x608] sm:$0xff]  ;;  %v8299_v37 = vcombine.low %v480_v26, %v488_v27 }
  0xb6   : > { %3471 = vmatprep.subr.bf16.mxu0 %v8218_v52  ;;  %3553 = vmatprep.subr.bf16.mxu1 %v8220_v54  ;;  %v504_v35 = vld [vmem:[#allocation5 + $0x648] sm:$0xff]  ;;  %v8314_v38 = vcombine.high %v495_v32, %v503_v33  ;;  %v511_v40 = vld [vmem:[#allocation5 + $0x680] sm:$0xff]  ;;  %v8313_v44 = vcombine.low %v495_v32, %v503_v33 }
  0xb7   : > { %v8316_v39 = vcombine.high %v496_v34, %v504_v35  ;;  %v519_v41 = vld [vmem:[#allocation5 + $0x6c0] sm:$0xff]  ;;  %v512_v42 = vld [vmem:[#allocation5 + $0x688] sm:$0xff]  ;;  %v8315_v45 = vcombine.low %v496_v34, %v504_v35 }
  0xb8   : > { %v520_v43 = vld [vmem:[#allocation5 + $0x6c8] sm:$0xff]  ;;  %v8330_v46 = vcombine.high %v511_v40, %v519_v41  ;;  %v527_v48 = vld [vmem:[#allocation5 + $0x700] sm:$0xff]  ;;  %v8329_v52 = vcombine.low %v511_v40, %v519_v41 }
  0xb9   : > { %3472 = vmatpush1.bf16.msra.mxu0 %v8217_v60  ;;  %3554 = vmatpush1.bf16.msra.mxu1 %v8219_v61  ;;  %v8332_v47 = vcombine.high %v512_v42, %v520_v43  ;;  %v535_v49 = vld [vmem:[#allocation5 + $0x740] sm:$0xff]  ;;  %v528_v50 = vld [vmem:[#allocation5 + $0x708] sm:$0xff]  ;;  %v8331_v53 = vcombine.low %v512_v42, %v520_v43 }
  0xba   : > { %3473 = vmatprep.subr.bf16.mxu0 %v8234_v62  ;;  %3555 = vmatprep.subr.bf16.mxu1 %v8236_v63  ;;  %v536_v51 = vld [vmem:[#allocation5 + $0x748] sm:$0xff]  ;;  %v8346_v54 = vcombine.high %v527_v48, %v535_v49  ;;  %v543_v56 = vld [vmem:[#allocation5 + $0x780] sm:$0xff]  ;;  %v8345_v61 = vcombine.low %v527_v48, %v535_v49 }
  0xbb   : > { %v8348_v55 = vcombine.high %v528_v50, %v536_v51  ;;  %v551_v58 = vld [vmem:[#allocation5 + $0x7c0] sm:$0xff]  ;;  %v544_v59 = vld [vmem:[#allocation5 + $0x788] sm:$0xff]  ;;  %v8347_v62 = vcombine.low %v528_v50, %v536_v51 }
  0xbc   : > { %v552_v60 = vld [vmem:[#allocation5 + $0x7c8] sm:$0xff]  ;;  %v8362_v63 = vcombine.high %v543_v56, %v551_v58  ;;  %v559_v1 = vld [vmem:[#allocation5 + $0x800] sm:$0xff] }
  0xbd   : > { %3474 = vmatpush1.bf16.msra.mxu0 %v8233_v4  ;;  %3556 = vmatpush1.bf16.msra.mxu1 %v8235_v5  ;;  %v8364_v0 = vcombine.high %v544_v59, %v552_v60  ;;  %v567_v2 = vld [vmem:[#allocation5 + $0x840] sm:$0xff]  ;;  %v560_v3 = vld [vmem:[#allocation5 + $0x808] sm:$0xff]  ;;  %v8361_v5 = vcombine.low %v543_v56, %v551_v58 }
  0xbe   : > { %3475 = vmatprep.subr.bf16.mxu0 %v8250_v6  ;;  %3557 = vmatprep.subr.bf16.mxu1 %v8252_v7  ;;  %v568_v4 = vld [vmem:[#allocation5 + $0x848] sm:$0xff]  ;;  %v295_v6 = vld [vmem:[%s10661_s13] sm:$0xff]  ;;  %v8363_v7 = vcombine.low %v544_v59, %v552_v60  ;;  %v8378_v8 = vcombine.high %v559_v1, %v567_v2  ;;  %v8377_v16 = vcombine.low %v559_v1, %v567_v2 }
  0xbf   : > { %v8380_v9 = vcombine.high %v560_v3, %v568_v4  ;;  %v575_v10 = vld [vmem:[#allocation5 + $0x880] sm:$0xff]  ;;  %v8379_v17 = vcombine.low %v560_v3, %v568_v4  ;;  %v616_v32 = vld [vmem:[#allocation5 + $0x9c8] sm:$0xff] }
  0xc0   : > { %v583_v11 = vld [vmem:[#allocation5 + $0x8c0] sm:$0xff]  ;;  %v632_v40 = vld [vmem:[#allocation5 + $0xa48] sm:$0xff] }
  0xc1   : > { %3476 = vmatpush1.bf16.msra.mxu0 %v8249_v12  ;;  %3558 = vmatpush1.bf16.msra.mxu1 %v8251_v13  ;;  %v10681_v12 = vpack.c.bf16 %v295_v6, %v295_v6  ;;  %v576_v13 = vld [vmem:[#allocation5 + $0x888] sm:$0xff]  ;;  %v8394_v18 = vcombine.high %v575_v10, %v583_v11  ;;  %v591_v19 = vld [vmem:[#allocation5 + $0x900] sm:$0xff]  ;;  %v8393_v25 = vcombine.low %v575_v10, %v583_v11 }
  0xc2   : > { %3477 = vmatprep.subr.bf16.mxu0 %v8266_v14  ;;  %3559 = vmatprep.subr.bf16.mxu1 %v8268_v15  ;;  %v584_v14 = vld [vmem:[#allocation5 + $0x8c8] sm:$0xff]  ;;  %v298_v15 = vld [vmem:[%s10661_s13 + $0x18] sm:$0xff]  ;;  %v695_v6 = vld [vmem:[#allocation5 + $0xc40] sm:$0xff] }
  0xc3   : > { %v10684_v24 = vpack.c.bf16 %v298_v15, %v298_v15  ;;  %v8395_v26 = vcombine.low %v576_v13, %v584_v14  ;;  %v648_v48 = vld [vmem:[#allocation5 + $0xac8] sm:$0xff]  ;;  %v711_v15 = vld [vmem:[#allocation5 + $0xcc0] sm:$0xff] }
  0xc4   : > { %v664_v56 = vld [vmem:[#allocation5 + $0xb48] sm:$0xff] }
  0xc5   : > { %3478 = vmatpush1.bf16.msra.mxu0 %v8265_v20  ;;  %3560 = vmatpush1.bf16.msra.mxu1 %v8267_v21  ;;  %v599_v20 = vld [vmem:[#allocation5 + $0x940] sm:$0xff]  ;;  %v8396_v21 = vcombine.high %v576_v13, %v584_v14  ;;  %v680_v1 = vld [vmem:[#allocation5 + $0xbc8] sm:$0xff] }
  0xc6   : > { %3479 = vmatprep.subr.bf16.mxu0 %v8282_v22  ;;  %3561 = vmatprep.subr.bf16.mxu1 %v8284_v23  ;;  %v592_v22 = vld [vmem:[#allocation5 + $0x908] sm:$0xff]  ;;  %v8410_v27 = vcombine.high %v591_v19, %v599_v20  ;;  %v8409_v33 = vcombine.low %v591_v19, %v599_v20  ;;  %v703_v14 = vld [vmem:[#allocation5 + $0xc80] sm:$0xff] }
  0xc7   : > { %v600_v23 = vld [vmem:[#allocation5 + $0x948] sm:$0xff] }
  0xc8   : > { %v8411_v34 = vcombine.low %v592_v22, %v600_v23 }
  0xc9   : > { %3480 = vmatpush1.bf16.msra.mxu0 %v8281_v28  ;;  %3562 = vmatpush1.bf16.msra.mxu1 %v8283_v29  ;;  %v607_v28 = vld [vmem:[#allocation5 + $0x980] sm:$0xff] }
  0xca   : > { %3481 = vmatprep.subr.bf16.mxu0 %v8298_v30  ;;  %3563 = vmatprep.subr.bf16.mxu1 %v8300_v31  ;;  %v615_v29 = vld [vmem:[#allocation5 + $0x9c0] sm:$0xff]  ;;  %v608_v30 = vld [vmem:[#allocation5 + $0x988] sm:$0xff]  ;;  %v8412_v31 = vcombine.high %v592_v22, %v600_v23 }
  0xcb   : > { %v8426_v35 = vcombine.high %v607_v28, %v615_v29  ;;  %v8425_v41 = vcombine.low %v607_v28, %v615_v29  ;;  %v8427_v42 = vcombine.low %v608_v30, %v616_v32  ;;  %v719_v22 = vld [vmem:[#allocation5 + $0xd00] sm:$0xff]  ;;  %v8521_v28 = vcombine.low %v703_v14, %v711_v15 }
  0xcc   : > { %v727_v23 = vld [vmem:[#allocation5 + $0xd40] sm:$0xff] }
  0xcd   : > { %3482 = vmatpush1.bf16.msra.mxu0 %v8297_v36  ;;  %3564 = vmatpush1.bf16.msra.mxu1 %v8299_v37  ;;  %v623_v36 = vld [vmem:[#allocation5 + $0xa00] sm:$0xff] }
  0xce   : > { %3483 = vmatprep.subr.bf16.mxu0 %v8314_v38  ;;  %3565 = vmatprep.subr.bf16.mxu1 %v8316_v39  ;;  %v631_v37 = vld [vmem:[#allocation5 + $0xa40] sm:$0xff]  ;;  %v624_v38 = vld [vmem:[#allocation5 + $0xa08] sm:$0xff]  ;;  %v8428_v39 = vcombine.high %v608_v30, %v616_v32  ;;  %v8538_v30 = vcombine.high %v719_v22, %v727_v23 }
  0xcf   : > { %v8442_v43 = vcombine.high %v623_v36, %v631_v37  ;;  %v8441_v49 = vcombine.low %v623_v36, %v631_v37  ;;  %v8443_v50 = vcombine.low %v624_v38, %v632_v40  ;;  %v743_v32 = vld [vmem:[#allocation5 + $0xdc0] sm:$0xff]  ;;  %v8537_v36 = vcombine.low %v719_v22, %v727_v23  ;;  %v330_v22 = vld [vmem:[#allocation5 + $0xd8] sm:$0xff] }
  0xd1   : > { %3484 = vmatpush1.bf16.msra.mxu0 %v8313_v44  ;;  %3566 = vmatpush1.bf16.msra.mxu1 %v8315_v45  ;;  %v639_v44 = vld [vmem:[#allocation5 + $0xa80] sm:$0xff] }
  0xd2   : > { %3485 = vmatprep.subr.bf16.mxu0 %v8330_v46  ;;  %3567 = vmatprep.subr.bf16.mxu1 %v8332_v47  ;;  %v647_v45 = vld [vmem:[#allocation5 + $0xac0] sm:$0xff]  ;;  %v640_v46 = vld [vmem:[#allocation5 + $0xa88] sm:$0xff]  ;;  %v8444_v47 = vcombine.high %v624_v38, %v632_v40 }
  0xd3   : > { %v8458_v51 = vcombine.high %v639_v44, %v647_v45  ;;  %v8457_v58 = vcombine.low %v639_v44, %v647_v45  ;;  %v8459_v59 = vcombine.low %v640_v46, %v648_v48  ;;  %v759_v40 = vld [vmem:[#allocation5 + $0xe40] sm:$0xff] }
  0xd5   : > { %3486 = vmatpush1.bf16.msra.mxu0 %v8329_v52  ;;  %3568 = vmatpush1.bf16.msra.mxu1 %v8331_v53  ;;  %v655_v52 = vld [vmem:[#allocation5 + $0xb00] sm:$0xff] }
  0xd6   : > { %3487 = vmatprep.subr.bf16.mxu0 %v8346_v54  ;;  %3569 = vmatprep.subr.bf16.mxu1 %v8348_v55  ;;  %v663_v53 = vld [vmem:[#allocation5 + $0xb40] sm:$0xff]  ;;  %v656_v54 = vld [vmem:[#allocation5 + $0xb08] sm:$0xff]  ;;  %v8460_v55 = vcombine.high %v640_v46, %v648_v48 }
  0xd7   : > { %v8474_v60 = vcombine.high %v655_v52, %v663_v53  ;;  %v8473_v2 = vcombine.low %v655_v52, %v663_v53  ;;  %v8475_v3 = vcombine.low %v656_v54, %v664_v56  ;;  %v775_v48 = vld [vmem:[#allocation5 + $0xec0] sm:$0xff] }
  0xd9   : > { %3488 = vmatpush1.bf16.msra.mxu0 %v8345_v61  ;;  %3570 = vmatpush1.bf16.msra.mxu1 %v8347_v62  ;;  %v671_v61 = vld [vmem:[#allocation5 + $0xb80] sm:$0xff] }
  0xda   : > { %3489 = vmatprep.subr.bf16.mxu0 %v8362_v63  ;;  %3571 = vmatprep.subr.bf16.mxu1 %v8364_v0  ;;  %v679_v62 = vld [vmem:[#allocation5 + $0xbc0] sm:$0xff]  ;;  %v672_v63 = vld [vmem:[#allocation5 + $0xb88] sm:$0xff]  ;;  %v8476_v0 = vcombine.high %v656_v54, %v664_v56 }
  0xdb   : > { %v8490_v4 = vcombine.high %v671_v61, %v679_v62  ;;  %v8489_v10 = vcombine.low %v671_v61, %v679_v62  ;;  %v8491_v11 = vcombine.low %v672_v63, %v680_v1  ;;  %v791_v56 = vld [vmem:[#allocation5 + $0xf40] sm:$0xff] }
  0xdd   : > { %3490 = vmatpush1.bf16.msra.mxu0 %v8361_v5  ;;  %3572 = vmatpush1.bf16.msra.mxu1 %v8363_v7  ;;  %v687_v5 = vld [vmem:[#allocation5 + $0xc00] sm:$0xff]  ;;  %v688_v7 = vld [vmem:[#allocation5 + $0xc08] sm:$0xff] }
  0xde   : > { %3500 = vmatprep.subr.bf16.mxu0 %v8378_v8  ;;  %3582 = vmatprep.subr.bf16.mxu1 %v8380_v9  ;;  %v8492_v8 = vcombine.high %v672_v63, %v680_v1  ;;  %v696_v9 = vld [vmem:[#allocation5 + $0xc48] sm:$0xff]  ;;  %v8506_v13 = vcombine.high %v687_v5, %v695_v6  ;;  %v8505_v19 = vcombine.low %v687_v5, %v695_v6  ;;  %v807_v1 = vld [vmem:[#allocation5 + $0xfc0] sm:$0xff] }
  0xdf   : > { %v8507_v20 = vcombine.low %v688_v7, %v696_v9 }
  0xe0   : > { %3492 = vmatmul.mubr.bf16.vlgmr.msra.gmra.mrb[0].mxu0 %v10681_v12  ;;  %3574 = vmatmul.mubr.bf16.vlgmr.msra.gmra.mrb[0].mxu1 %v10681_v12 }
  0xe1   : > { %3501 = vmatpush1.bf16.msra.mxu0 %v8377_v16  ;;  %3583 = vmatpush1.bf16.msra.mxu1 %v8379_v17  ;;  %v704_v16 = vld [vmem:[#allocation5 + $0xc88] sm:$0xff]  ;;  %v8508_v17 = vcombine.high %v688_v7, %v696_v9  ;;  %v313_v9 = vld [vmem:[#allocation5 + $0x50] sm:$0xff] }
  0xe2   : > { %3502 = vmatprep.subr.bf16.mxu0 %v8394_v18  ;;  %3584 = vmatprep.subr.bf16.mxu1 %v8396_v21  ;;  %v712_v18 = vld [vmem:[#allocation5 + $0xcc8] sm:$0xff]  ;;  %v8522_v21 = vcombine.high %v703_v14, %v711_v15  ;;  %v314_v14 = vld [vmem:[#allocation5 + $0x58] sm:$0xff] }
  0xe3   : > { %3532 = vmatprep.mubr.bf16.mxu0 %v10684_v24  ;;  %3614 = vmatprep.mubr.bf16.mxu1 %v10684_v24  ;;  %v8523_v29 = vcombine.low %v704_v16, %v712_v18 }
  0xe5   : > { %3503 = vmatpush1.bf16.msra.mxu0 %v8393_v25  ;;  %3585 = vmatpush1.bf16.msra.mxu1 %v8395_v26  ;;  %v720_v25 = vld [vmem:[#allocation5 + $0xd08] sm:$0xff]  ;;  %v8524_v26 = vcombine.high %v704_v16, %v712_v18  ;;  %v321_v18 = vld [vmem:[#allocation5 + $0x90] sm:$0xff] }
  0xe6   : > { %3504 = vmatprep.subr.bf16.mxu0 %v8410_v27  ;;  %3586 = vmatprep.subr.bf16.mxu1 %v8412_v31  ;;  %v728_v27 = vld [vmem:[#allocation5 + $0xd48] sm:$0xff]  ;;  %v735_v31 = vld [vmem:[#allocation5 + $0xd80] sm:$0xff] }
  0xe7   : > { %v8539_v37 = vcombine.low %v720_v25, %v728_v27  ;;  %v8554_v38 = vcombine.high %v735_v31, %v743_v32  ;;  %v8553_v44 = vcombine.low %v735_v31, %v743_v32  ;;  %v346_v32 = vld [vmem:[#allocation5 + $0x158] sm:$0xff] }
  0xe9   : > { %3505 = vmatpush1.bf16.msra.mxu0 %v8409_v33  ;;  %3587 = vmatpush1.bf16.msra.mxu1 %v8411_v34  ;;  %v736_v33 = vld [vmem:[#allocation5 + $0xd88] sm:$0xff]  ;;  %v8540_v34 = vcombine.high %v720_v25, %v728_v27 }
  0xea   : > { %3506 = vmatprep.subr.bf16.mxu0 %v8426_v35  ;;  %3588 = vmatprep.subr.bf16.mxu1 %v8428_v39  ;;  %v744_v35 = vld [vmem:[#allocation5 + $0xdc8] sm:$0xff]  ;;  %v751_v39 = vld [vmem:[#allocation5 + $0xe00] sm:$0xff] }
  0xeb   : > { %v8555_v45 = vcombine.low %v736_v33, %v744_v35  ;;  %v8570_v46 = vcombine.high %v751_v39, %v759_v40  ;;  %v8569_v52 = vcombine.low %v751_v39, %v759_v40  ;;  %v362_v40 = vld [vmem:[#allocation5 + $0x1d8] sm:$0xff] }
  0xed   : > { %3507 = vmatpush1.bf16.msra.mxu0 %v8425_v41  ;;  %3589 = vmatpush1.bf16.msra.mxu1 %v8427_v42  ;;  %v752_v41 = vld [vmem:[#allocation5 + $0xe08] sm:$0xff]  ;;  %v8556_v42 = vcombine.high %v736_v33, %v744_v35 }
  0xee   : > { %3508 = vmatprep.subr.bf16.mxu0 %v8442_v43  ;;  %3590 = vmatprep.subr.bf16.mxu1 %v8444_v47  ;;  %v760_v43 = vld [vmem:[#allocation5 + $0xe48] sm:$0xff]  ;;  %v767_v47 = vld [vmem:[#allocation5 + $0xe80] sm:$0xff] }
  0xef   : > { %v8571_v53 = vcombine.low %v752_v41, %v760_v43  ;;  %v8586_v54 = vcombine.high %v767_v47, %v775_v48  ;;  %v8585_v61 = vcombine.low %v767_v47, %v775_v48  ;;  %v378_v48 = vld [vmem:[#allocation5 + $0x258] sm:$0xff] }
  0xf1   : > { %3509 = vmatpush1.bf16.msra.mxu0 %v8441_v49  ;;  %3591 = vmatpush1.bf16.msra.mxu1 %v8443_v50  ;;  %v768_v49 = vld [vmem:[#allocation5 + $0xe88] sm:$0xff]  ;;  %v8572_v50 = vcombine.high %v752_v41, %v760_v43 }
  0xf2   : > { %3510 = vmatprep.subr.bf16.mxu0 %v8458_v51  ;;  %3592 = vmatprep.subr.bf16.mxu1 %v8460_v55  ;;  %v776_v51 = vld [vmem:[#allocation5 + $0xec8] sm:$0xff]  ;;  %v783_v55 = vld [vmem:[#allocation5 + $0xf00] sm:$0xff] }
  0xf3   : > { %v8587_v62 = vcombine.low %v768_v49, %v776_v51  ;;  %v8602_v63 = vcombine.high %v783_v55, %v791_v56  ;;  %v8601_v5 = vcombine.low %v783_v55, %v791_v56  ;;  %v394_v56 = vld [vmem:[#allocation5 + $0x2d8] sm:$0xff] }
  0xf5   : > { %3511 = vmatpush1.bf16.msra.mxu0 %v8457_v58  ;;  %3593 = vmatpush1.bf16.msra.mxu1 %v8459_v59  ;;  %v784_v58 = vld [vmem:[#allocation5 + $0xf08] sm:$0xff]  ;;  %v8588_v59 = vcombine.high %v768_v49, %v776_v51 }
  0xf6   : > { %3512 = vmatprep.subr.bf16.mxu0 %v8474_v60  ;;  %3594 = vmatprep.subr.bf16.mxu1 %v8476_v0  ;;  %v792_v60 = vld [vmem:[#allocation5 + $0xf48] sm:$0xff]  ;;  %v799_v0 = vld [vmem:[#allocation5 + $0xf80] sm:$0xff] }
  0xf7   : > { %v8603_v6 = vcombine.low %v784_v58, %v792_v60  ;;  %v8618_v7 = vcombine.high %v799_v0, %v807_v1  ;;  %v8617_v15 = vcombine.low %v799_v0, %v807_v1  ;;  %v410_v1 = vld [vmem:[#allocation5 + $0x358] sm:$0xff] }
  0xf9   : > { %3513 = vmatpush1.bf16.msra.mxu0 %v8473_v2  ;;  %3595 = vmatpush1.bf16.msra.mxu1 %v8475_v3  ;;  %v800_v2 = vld [vmem:[#allocation5 + $0xf88] sm:$0xff]  ;;  %v8604_v3 = vcombine.high %v784_v58, %v792_v60 }
  0xfa   : > { %3514 = vmatprep.subr.bf16.mxu0 %v8490_v4  ;;  %3596 = vmatprep.subr.bf16.mxu1 %v8492_v8  ;;  %v808_v4 = vld [vmem:[#allocation5 + $0xfc8] sm:$0xff]  ;;  %v305_v8 = vld [vmem:[#allocation5 + $0x10] sm:$0xff] }
  0xfb   : > { %v8619_v16 = vcombine.low %v800_v2, %v808_v4  ;;  %v8125_v25 = vcombine.low %v305_v8, %v313_v9 }
  0xfd   : > { %3515 = vmatpush1.bf16.msra.mxu0 %v8489_v10  ;;  %3597 = vmatpush1.bf16.msra.mxu1 %v8491_v11  ;;  %v306_v10 = vld [vmem:[#allocation5 + $0x18] sm:$0xff]  ;;  %v8620_v11 = vcombine.high %v800_v2, %v808_v4 }
  0xfe   : > { %3516 = vmatprep.subr.bf16.mxu0 %v8506_v13  ;;  %3598 = vmatprep.subr.bf16.mxu1 %v8508_v17  ;;  %v297_v13 = vld [vmem:[%s10661_s13 + $0x10] sm:$0xff]  ;;  %v8126_v17 = vcombine.high %v305_v8, %v313_v9  ;;  %v426_v9 = vld [vmem:[#allocation5 + $0x3d8] sm:$0xff] }
  0xff   : > { %v10691_v23 = vpack.c.bf16 %v297_v13, %v297_v13 }
 0x101   : > { %3517 = vmatpush1.bf16.msra.mxu0 %v8505_v19  ;;  %3599 = vmatpush1.bf16.msra.mxu1 %v8507_v20  ;;  %v329_v19 = vld [vmem:[#allocation5 + $0xd0] sm:$0xff]  ;;  %v322_v20 = vld [vmem:[#allocation5 + $0x98] sm:$0xff] }
 0x102   : > { %3518 = vmatprep.subr.bf16.mxu0 %v8522_v21  ;;  %3600 = vmatprep.subr.bf16.mxu1 %v8524_v26  ;;  %v8128_v21 = vcombine.high %v306_v10, %v314_v14  ;;  %v8127_v26 = vcombine.low %v306_v10, %v314_v14  ;;  %v8142_v27 = vcombine.high %v321_v18, %v329_v19  ;;  %v433_v14 = vld [vmem:[#allocation5 + $0x410] sm:$0xff] }
 0x103   : > { %v8144_v31 = vcombine.high %v322_v20, %v330_v22  ;;  %v8141_v33 = vcombine.low %v321_v18, %v329_v19  ;;  %v442_v18 = vld [vmem:[#allocation5 + $0x458] sm:$0xff] }
 0x105   : > { %3519 = vmatpush1.bf16.msra.mxu0 %v8521_v28  ;;  %3601 = vmatpush1.bf16.msra.mxu1 %v8523_v29  ;;  %v337_v28 = vld [vmem:[#allocation5 + $0x110] sm:$0xff] }
 0x106   : > { %3520 = vmatprep.subr.bf16.mxu0 %v8538_v30  ;;  %3602 = vmatprep.subr.bf16.mxu1 %v8540_v34  ;;  %v345_v29 = vld [vmem:[#allocation5 + $0x150] sm:$0xff]  ;;  %v338_v30 = vld [vmem:[#allocation5 + $0x118] sm:$0xff]  ;;  %v8143_v34 = vcombine.low %v322_v20, %v330_v22 }
 0x107   : > { %v8158_v35 = vcombine.high %v337_v28, %v345_v29  ;;  %v8160_v39 = vcombine.high %v338_v30, %v346_v32  ;;  %v8157_v41 = vcombine.low %v337_v28, %v345_v29  ;;  %v449_v22 = vld [vmem:[#allocation5 + $0x490] sm:$0xff]  ;;  %v458_v28 = vld [vmem:[#allocation5 + $0x4d8] sm:$0xff] }
 0x109   : > { %3521 = vmatpush1.bf16.msra.mxu0 %v8537_v36  ;;  %3603 = vmatpush1.bf16.msra.mxu1 %v8539_v37  ;;  %v353_v36 = vld [vmem:[#allocation5 + $0x190] sm:$0xff] }
 0x10a   : > { %3522 = vmatprep.subr.bf16.mxu0 %v8554_v38  ;;  %3604 = vmatprep.subr.bf16.mxu1 %v8556_v42  ;;  %v361_v37 = vld [vmem:[#allocation5 + $0x1d0] sm:$0xff]  ;;  %v354_v38 = vld [vmem:[#allocation5 + $0x198] sm:$0xff]  ;;  %v8159_v42 = vcombine.low %v338_v30, %v346_v32 }
 0x10b   : > { %v8174_v43 = vcombine.high %v353_v36, %v361_v37  ;;  %v8176_v47 = vcombine.high %v354_v38, %v362_v40  ;;  %v8173_v49 = vcombine.low %v353_v36, %v361_v37  ;;  %v465_v32 = vld [vmem:[#allocation5 + $0x510] sm:$0xff]  ;;  %v474_v36 = vld [vmem:[#allocation5 + $0x558] sm:$0xff] }
 0x10d   : > { %3523 = vmatpush1.bf16.msra.mxu0 %v8553_v44  ;;  %3605 = vmatpush1.bf16.msra.mxu1 %v8555_v45  ;;  %v369_v44 = vld [vmem:[#allocation5 + $0x210] sm:$0xff] }
 0x10e   : > { %3524 = vmatprep.subr.bf16.mxu0 %v8570_v46  ;;  %3606 = vmatprep.subr.bf16.mxu1 %v8572_v50  ;;  %v377_v45 = vld [vmem:[#allocation5 + $0x250] sm:$0xff]  ;;  %v370_v46 = vld [vmem:[#allocation5 + $0x218] sm:$0xff]  ;;  %v8175_v50 = vcombine.low %v354_v38, %v362_v40 }
 0x10f   : > { %v8190_v51 = vcombine.high %v369_v44, %v377_v45  ;;  %v8192_v55 = vcombine.high %v370_v46, %v378_v48  ;;  %v8189_v58 = vcombine.low %v369_v44, %v377_v45  ;;  %v481_v40 = vld [vmem:[#allocation5 + $0x590] sm:$0xff]  ;;  %v490_v44 = vld [vmem:[#allocation5 + $0x5d8] sm:$0xff] }
 0x111   : > { %3525 = vmatpush1.bf16.msra.mxu0 %v8569_v52  ;;  %3607 = vmatpush1.bf16.msra.mxu1 %v8571_v53  ;;  %v385_v52 = vld [vmem:[#allocation5 + $0x290] sm:$0xff] }
 0x112   : > { %3526 = vmatprep.subr.bf16.mxu0 %v8586_v54  ;;  %3608 = vmatprep.subr.bf16.mxu1 %v8588_v59  ;;  %v393_v53 = vld [vmem:[#allocation5 + $0x2d0] sm:$0xff]  ;;  %v386_v54 = vld [vmem:[#allocation5 + $0x298] sm:$0xff]  ;;  %v8191_v59 = vcombine.low %v370_v46, %v378_v48 }
 0x113   : > { %v8206_v60 = vcombine.high %v385_v52, %v393_v53  ;;  %v8208_v0 = vcombine.high %v386_v54, %v394_v56  ;;  %v8205_v2 = vcombine.low %v385_v52, %v393_v53  ;;  %v497_v48 = vld [vmem:[#allocation5 + $0x610] sm:$0xff]  ;;  %v506_v52 = vld [vmem:[#allocation5 + $0x658] sm:$0xff] }
 0x115   : > { %3527 = vmatpush1.bf16.msra.mxu0 %v8585_v61  ;;  %3609 = vmatpush1.bf16.msra.mxu1 %v8587_v62  ;;  %v401_v61 = vld [vmem:[#allocation5 + $0x310] sm:$0xff] }
 0x116   : > { %3528 = vmatprep.subr.bf16.mxu0 %v8602_v63  ;;  %3610 = vmatprep.subr.bf16.mxu1 %v8604_v3  ;;  %v409_v62 = vld [vmem:[#allocation5 + $0x350] sm:$0xff]  ;;  %v402_v63 = vld [vmem:[#allocation5 + $0x318] sm:$0xff]  ;;  %v8207_v3 = vcombine.low %v386_v54, %v394_v56 }
 0x117   : > { %v8222_v4 = vcombine.high %v401_v61, %v409_v62  ;;  %v8224_v8 = vcombine.high %v402_v63, %v410_v1  ;;  %v8221_v10 = vcombine.low %v401_v61, %v409_v62  ;;  %v513_v56 = vld [vmem:[#allocation5 + $0x690] sm:$0xff]  ;;  %v522_v61 = vld [vmem:[#allocation5 + $0x6d8] sm:$0xff] }
 0x119   : > { %3529 = vmatpush1.bf16.msra.mxu0 %v8601_v5  ;;  %3611 = vmatpush1.bf16.msra.mxu1 %v8603_v6  ;;  %v417_v5 = vld [vmem:[#allocation5 + $0x390] sm:$0xff] }
 0x11a   : > { %3530 = vmatprep.subr.bf16.mxu0 %v8618_v7  ;;  %3612 = vmatprep.subr.bf16.mxu1 %v8620_v11  ;;  %v425_v6 = vld [vmem:[#allocation5 + $0x3d0] sm:$0xff]  ;;  %v418_v7 = vld [vmem:[#allocation5 + $0x398] sm:$0xff]  ;;  %v8223_v11 = vcombine.low %v402_v63, %v410_v1 }
 0x11b   : > { %v8238_v13 = vcombine.high %v417_v5, %v425_v6  ;;  %v8237_v19 = vcombine.low %v417_v5, %v425_v6  ;;  %v8239_v20 = vcombine.low %v418_v7, %v426_v9  ;;  %v529_v1 = vld [vmem:[#allocation5 + $0x710] sm:$0xff]  ;;  %v538_v5 = vld [vmem:[#allocation5 + $0x758] sm:$0xff] }
 0x11d   : > { %3531 = vmatpush1.bf16.msra.mxu0 %v8617_v15  ;;  %3613 = vmatpush1.bf16.msra.mxu1 %v8619_v16  ;;  %v441_v15 = vld [vmem:[#allocation5 + $0x450] sm:$0xff]  ;;  %v434_v16 = vld [vmem:[#allocation5 + $0x418] sm:$0xff] }
 0x11e   : > { %3623 = vmatprep.subr.bf16.mxu0 %v8126_v17  ;;  %3705 = vmatprep.subr.bf16.mxu1 %v8128_v21  ;;  %v8240_v17 = vcombine.high %v418_v7, %v426_v9  ;;  %v8254_v21 = vcombine.high %v433_v14, %v441_v15  ;;  %v8253_v29 = vcombine.low %v433_v14, %v441_v15  ;;  %v545_v9 = vld [vmem:[#allocation5 + $0x790] sm:$0xff]  ;;  %v554_v14 = vld [vmem:[#allocation5 + $0x7d8] sm:$0xff] }
 0x11f   : > { %v8255_v30 = vcombine.low %v434_v16, %v442_v18 }
 0x120   : > { %3533 = vmatmul.mubr.bf16.vlgmr.msra.gmra.mrb[0].mxu0 %v10691_v23  ;;  %3615 = vmatmul.mubr.bf16.vlgmr.msra.gmra.mrb[0].mxu1 %v10691_v23 }
 0x121   : > { %3624 = vmatpush1.bf16.msra.mxu0 %v8125_v25  ;;  %3706 = vmatpush1.bf16.msra.mxu1 %v8127_v26  ;;  %v457_v25 = vld [vmem:[#allocation5 + $0x4d0] sm:$0xff]  ;;  %v450_v26 = vld [vmem:[#allocation5 + $0x498] sm:$0xff] }
 0x122   : > { %3625 = vmatprep.subr.bf16.mxu0 %v8142_v27  ;;  %3707 = vmatprep.subr.bf16.mxu1 %v8144_v31  ;;  %v8256_v27 = vcombine.high %v434_v16, %v442_v18  ;;  %v8270_v31 = vcombine.high %v449_v22, %v457_v25  ;;  %v8269_v37 = vcombine.low %v449_v22, %v457_v25  ;;  %v561_v18 = vld [vmem:[#allocation5 + $0x810] sm:$0xff]  ;;  %v570_v22 = vld [vmem:[#allocation5 + $0x858] sm:$0xff] }
 0x123   : > { %3655 = vmatprep.mubr.bf16.mxu0 %v10676_v57  ;;  %3737 = vmatprep.mubr.bf16.mxu1 %v10676_v57  ;;  %v8271_v38 = vcombine.low %v450_v26, %v458_v28 }
 0x125   : > { %3626 = vmatpush1.bf16.msra.mxu0 %v8141_v33  ;;  %3708 = vmatpush1.bf16.msra.mxu1 %v8143_v34  ;;  %v473_v33 = vld [vmem:[#allocation5 + $0x550] sm:$0xff]  ;;  %v466_v34 = vld [vmem:[#allocation5 + $0x518] sm:$0xff] }
 0x126   : > { %3627 = vmatprep.subr.bf16.mxu0 %v8158_v35  ;;  %3709 = vmatprep.subr.bf16.mxu1 %v8160_v39  ;;  %v8272_v35 = vcombine.high %v450_v26, %v458_v28  ;;  %v8286_v39 = vcombine.high %v465_v32, %v473_v33  ;;  %v8285_v45 = vcombine.low %v465_v32, %v473_v33  ;;  %v577_v28 = vld [vmem:[#allocation5 + $0x890] sm:$0xff]  ;;  %v586_v32 = vld [vmem:[#allocation5 + $0x8d8] sm:$0xff] }
 0x127   : > { %v8287_v46 = vcombine.low %v466_v34, %v474_v36 }
 0x129   : > { %3628 = vmatpush1.bf16.msra.mxu0 %v8157_v41  ;;  %3710 = vmatpush1.bf16.msra.mxu1 %v8159_v42  ;;  %v489_v41 = vld [vmem:[#allocation5 + $0x5d0] sm:$0xff]  ;;  %v482_v42 = vld [vmem:[#allocation5 + $0x598] sm:$0xff] }
 0x12a   : > { %3629 = vmatprep.subr.bf16.mxu0 %v8174_v43  ;;  %3711 = vmatprep.subr.bf16.mxu1 %v8176_v47  ;;  %v8288_v43 = vcombine.high %v466_v34, %v474_v36  ;;  %v8302_v47 = vcombine.high %v481_v40, %v489_v41  ;;  %v8301_v53 = vcombine.low %v481_v40, %v489_v41  ;;  %v593_v36 = vld [vmem:[#allocation5 + $0x910] sm:$0xff]  ;;  %v602_v40 = vld [vmem:[#allocation5 + $0x958] sm:$0xff] }
 0x12b   : > { %v8303_v54 = vcombine.low %v482_v42, %v490_v44 }
 0x12d   : > { %3630 = vmatpush1.bf16.msra.mxu0 %v8173_v49  ;;  %3712 = vmatpush1.bf16.msra.mxu1 %v8175_v50  ;;  %v505_v49 = vld [vmem:[#allocation5 + $0x650] sm:$0xff]  ;;  %v498_v50 = vld [vmem:[#allocation5 + $0x618] sm:$0xff] }
 0x12e   : > { %3631 = vmatprep.subr.bf16.mxu0 %v8190_v51  ;;  %3713 = vmatprep.subr.bf16.mxu1 %v8192_v55  ;;  %v8304_v51 = vcombine.high %v482_v42, %v490_v44  ;;  %v8318_v55 = vcombine.high %v497_v48, %v505_v49  ;;  %v8317_v62 = vcombine.low %v497_v48, %v505_v49  ;;  %v609_v44 = vld [vmem:[#allocation5 + $0x990] sm:$0xff]  ;;  %v618_v48 = vld [vmem:[#allocation5 + $0x9d8] sm:$0xff] }
 0x12f   : > { %v8319_v63 = vcombine.low %v498_v50, %v506_v52 }
 0x131   : > { %3632 = vmatpush1.bf16.msra.mxu0 %v8189_v58  ;;  %3714 = vmatpush1.bf16.msra.mxu1 %v8191_v59  ;;  %v521_v58 = vld [vmem:[#allocation5 + $0x6d0] sm:$0xff]  ;;  %v514_v59 = vld [vmem:[#allocation5 + $0x698] sm:$0xff] }
 0x132   : > { %3633 = vmatprep.subr.bf16.mxu0 %v8206_v60  ;;  %3715 = vmatprep.subr.bf16.mxu1 %v8208_v0  ;;  %v8320_v60 = vcombine.high %v498_v50, %v506_v52  ;;  %v8334_v0 = vcombine.high %v513_v56, %v521_v58  ;;  %v8333_v6 = vcombine.low %v513_v56, %v521_v58  ;;  %v625_v52 = vld [vmem:[#allocation5 + $0xa10] sm:$0xff]  ;;  %v634_v56 = vld [vmem:[#allocation5 + $0xa58] sm:$0xff] }
 0x133   : > { %v8335_v7 = vcombine.low %v514_v59, %v522_v61 }
 0x135   : > { %3634 = vmatpush1.bf16.msra.mxu0 %v8205_v2  ;;  %3716 = vmatpush1.bf16.msra.mxu1 %v8207_v3  ;;  %v537_v2 = vld [vmem:[#allocation5 + $0x750] sm:$0xff]  ;;  %v530_v3 = vld [vmem:[#allocation5 + $0x718] sm:$0xff] }
 0x136   : > { %3635 = vmatprep.subr.bf16.mxu0 %v8222_v4  ;;  %3717 = vmatprep.subr.bf16.mxu1 %v8224_v8  ;;  %v8336_v4 = vcombine.high %v514_v59, %v522_v61  ;;  %v8350_v8 = vcombine.high %v529_v1, %v537_v2  ;;  %v8349_v15 = vcombine.low %v529_v1, %v537_v2  ;;  %v641_v61 = vld [vmem:[#allocation5 + $0xa90] sm:$0xff]  ;;  %v650_v1 = vld [vmem:[#allocation5 + $0xad8] sm:$0xff] }
 0x137   : > { %v8351_v16 = vcombine.low %v530_v3, %v538_v5 }
 0x139   : > { %3636 = vmatpush1.bf16.msra.mxu0 %v8221_v10  ;;  %3718 = vmatpush1.bf16.msra.mxu1 %v8223_v11  ;;  %v553_v10 = vld [vmem:[#allocation5 + $0x7d0] sm:$0xff]  ;;  %v546_v11 = vld [vmem:[#allocation5 + $0x798] sm:$0xff] }
 0x13a   : > { %3637 = vmatprep.subr.bf16.mxu0 %v8238_v13  ;;  %3719 = vmatprep.subr.bf16.mxu1 %v8240_v17  ;;  %v8352_v13 = vcombine.high %v530_v3, %v538_v5  ;;  %v8366_v17 = vcombine.high %v545_v9, %v553_v10  ;;  %v8365_v25 = vcombine.low %v545_v9, %v553_v10  ;;  %v657_v5 = vld [vmem:[#allocation5 + $0xb10] sm:$0xff]  ;;  %v666_v9 = vld [vmem:[#allocation5 + $0xb58] sm:$0xff] }
 0x13b   : > { %v8367_v26 = vcombine.low %v546_v11, %v554_v14 }
 0x13d   : > { %3638 = vmatpush1.bf16.msra.mxu0 %v8237_v19  ;;  %3720 = vmatpush1.bf16.msra.mxu1 %v8239_v20  ;;  %v569_v19 = vld [vmem:[#allocation5 + $0x850] sm:$0xff]  ;;  %v562_v20 = vld [vmem:[#allocation5 + $0x818] sm:$0xff] }
 0x13e   : > { %3639 = vmatprep.subr.bf16.mxu0 %v8254_v21  ;;  %3721 = vmatprep.subr.bf16.mxu1 %v8256_v27  ;;  %v8368_v21 = vcombine.high %v546_v11, %v554_v14  ;;  %v8382_v27 = vcombine.high %v561_v18, %v569_v19  ;;  %v8381_v33 = vcombine.low %v561_v18, %v569_v19  ;;  %v682_v18 = vld [vmem:[#allocation5 + $0xbd8] sm:$0xff] }
 0x13f   : > { %v8383_v34 = vcombine.low %v562_v20, %v570_v22 }
 0x141   : > { %3640 = vmatpush1.bf16.msra.mxu0 %v8253_v29  ;;  %3722 = vmatpush1.bf16.msra.mxu1 %v8255_v30  ;;  %v585_v29 = vld [vmem:[#allocation5 + $0x8d0] sm:$0xff]  ;;  %v578_v30 = vld [vmem:[#allocation5 + $0x898] sm:$0xff] }
 0x142   : > { %3641 = vmatprep.subr.bf16.mxu0 %v8270_v31  ;;  %3723 = vmatprep.subr.bf16.mxu1 %v8272_v35  ;;  %v8384_v31 = vcombine.high %v562_v20, %v570_v22  ;;  %v8398_v35 = vcombine.high %v577_v28, %v585_v29  ;;  %v8397_v41 = vcombine.low %v577_v28, %v585_v29  ;;  %v698_v28 = vld [vmem:[#allocation5 + $0xc58] sm:$0xff] }
 0x143   : > { %v8399_v42 = vcombine.low %v578_v30, %v586_v32 }
 0x145   : > { %3642 = vmatpush1.bf16.msra.mxu0 %v8269_v37  ;;  %3724 = vmatpush1.bf16.msra.mxu1 %v8271_v38  ;;  %v601_v37 = vld [vmem:[#allocation5 + $0x950] sm:$0xff]  ;;  %v594_v38 = vld [vmem:[#allocation5 + $0x918] sm:$0xff] }
 0x146   : > { %3643 = vmatprep.subr.bf16.mxu0 %v8286_v39  ;;  %3725 = vmatprep.subr.bf16.mxu1 %v8288_v43  ;;  %v8400_v39 = vcombine.high %v578_v30, %v586_v32  ;;  %v8414_v43 = vcombine.high %v593_v36, %v601_v37  ;;  %v8413_v49 = vcombine.low %v593_v36, %v601_v37  ;;  %v714_v36 = vld [vmem:[#allocation5 + $0xcd8] sm:$0xff] }
 0x147   : > { %v8415_v50 = vcombine.low %v594_v38, %v602_v40 }
 0x149   : > { %3644 = vmatpush1.bf16.msra.mxu0 %v8285_v45  ;;  %3726 = vmatpush1.bf16.msra.mxu1 %v8287_v46  ;;  %v617_v45 = vld [vmem:[#allocation5 + $0x9d0] sm:$0xff]  ;;  %v610_v46 = vld [vmem:[#allocation5 + $0x998] sm:$0xff] }
 0x14a   : > { %3645 = vmatprep.subr.bf16.mxu0 %v8302_v47  ;;  %3727 = vmatprep.subr.bf16.mxu1 %v8304_v51  ;;  %v8416_v47 = vcombine.high %v594_v38, %v602_v40  ;;  %v8430_v51 = vcombine.high %v609_v44, %v617_v45  ;;  %v8429_v58 = vcombine.low %v609_v44, %v617_v45  ;;  %v730_v44 = vld [vmem:[#allocation5 + $0xd58] sm:$0xff] }
 0x14b   : > { %v8431_v59 = vcombine.low %v610_v46, %v618_v48 }
 0x14d   : > { %3646 = vmatpush1.bf16.msra.mxu0 %v8301_v53  ;;  %3728 = vmatpush1.bf16.msra.mxu1 %v8303_v54  ;;  %v633_v53 = vld [vmem:[#allocation5 + $0xa50] sm:$0xff]  ;;  %v626_v54 = vld [vmem:[#allocation5 + $0xa18] sm:$0xff] }
 0x14e   : > { %3647 = vmatprep.subr.bf16.mxu0 %v8318_v55  ;;  %3729 = vmatprep.subr.bf16.mxu1 %v8320_v60  ;;  %v8432_v55 = vcombine.high %v610_v46, %v618_v48  ;;  %v8446_v60 = vcombine.high %v625_v52, %v633_v53  ;;  %v8445_v2 = vcombine.low %v625_v52, %v633_v53  ;;  %v746_v52 = vld [vmem:[#allocation5 + $0xdd8] sm:$0xff] }
 0x14f   : > { %v8447_v3 = vcombine.low %v626_v54, %v634_v56 }
 0x151   : > { %3648 = vmatpush1.bf16.msra.mxu0 %v8317_v62  ;;  %3730 = vmatpush1.bf16.msra.mxu1 %v8319_v63  ;;  %v649_v62 = vld [vmem:[#allocation5 + $0xad0] sm:$0xff]  ;;  %v642_v63 = vld [vmem:[#allocation5 + $0xa98] sm:$0xff] }
 0x152   : > { %3649 = vmatprep.subr.bf16.mxu0 %v8334_v0  ;;  %3731 = vmatprep.subr.bf16.mxu1 %v8336_v4  ;;  %v8448_v0 = vcombine.high %v626_v54, %v634_v56  ;;  %v8462_v4 = vcombine.high %v641_v61, %v649_v62  ;;  %v8461_v10 = vcombine.low %v641_v61, %v649_v62  ;;  %v762_v61 = vld [vmem:[#allocation5 + $0xe58] sm:$0xff] }
 0x153   : > { %v8463_v11 = vcombine.low %v642_v63, %v650_v1 }
 0x155   : > { %3650 = vmatpush1.bf16.msra.mxu0 %v8333_v6  ;;  %3732 = vmatpush1.bf16.msra.mxu1 %v8335_v7  ;;  %v665_v6 = vld [vmem:[#allocation5 + $0xb50] sm:$0xff]  ;;  %v658_v7 = vld [vmem:[#allocation5 + $0xb18] sm:$0xff] }
 0x156   : > { %3651 = vmatprep.subr.bf16.mxu0 %v8350_v8  ;;  %3733 = vmatprep.subr.bf16.mxu1 %v8352_v13  ;;  %v8464_v8 = vcombine.high %v642_v63, %v650_v1  ;;  %v8478_v13 = vcombine.high %v657_v5, %v665_v6  ;;  %v8480_v14 = vcombine.high %v658_v7, %v666_v9 }
 0x157   : > { %v8477_v19 = vcombine.low %v657_v5, %v665_v6  ;;  %v8479_v20 = vcombine.low %v658_v7, %v666_v9  ;;  %v778_v5 = vld [vmem:[#allocation5 + $0xed8] sm:$0xff] }
 0x159   : > { %3652 = vmatpush1.bf16.msra.mxu0 %v8349_v15  ;;  %3734 = vmatpush1.bf16.msra.mxu1 %v8351_v16  ;;  %v673_v15 = vld [vmem:[#allocation5 + $0xb90] sm:$0xff] }
 0x15a   : > { %3653 = vmatprep.subr.bf16.mxu0 %v8366_v17  ;;  %3735 = vmatprep.subr.bf16.mxu1 %v8368_v21  ;;  %v681_v16 = vld [vmem:[#allocation5 + $0xbd0] sm:$0xff]  ;;  %v674_v17 = vld [vmem:[#allocation5 + $0xb98] sm:$0xff] }
 0x15b   : > { %v8494_v21 = vcombine.high %v673_v15, %v681_v16  ;;  %v8496_v22 = vcombine.high %v674_v17, %v682_v18  ;;  %v8493_v29 = vcombine.low %v673_v15, %v681_v16  ;;  %v8495_v30 = vcombine.low %v674_v17, %v682_v18 }
 0x15d   : > { %3654 = vmatpush1.bf16.msra.mxu0 %v8365_v25  ;;  %3736 = vmatpush1.bf16.msra.mxu1 %v8367_v26  ;;  %v689_v25 = vld [vmem:[#allocation5 + $0xc10] sm:$0xff] }
 0x15e   : > { %3664 = vmatprep.subr.bf16.mxu0 %v8382_v27  ;;  %3746 = vmatprep.subr.bf16.mxu1 %v8384_v31  ;;  %v697_v26 = vld [vmem:[#allocation5 + $0xc50] sm:$0xff]  ;;  %v690_v27 = vld [vmem:[#allocation5 + $0xc18] sm:$0xff] }
 0x15f   : > { %v8510_v31 = vcombine.high %v689_v25, %v697_v26  ;;  %v8512_v32 = vcombine.high %v690_v27, %v698_v28  ;;  %v8509_v37 = vcombine.low %v689_v25, %v697_v26  ;;  %v8511_v38 = vcombine.low %v690_v27, %v698_v28 }
 0x160   : > { %3656 = vmatmul.mubr.bf16.vlgmr.msra.gmra.mrb[4].mxu0 %v10681_v12  ;;  %3738 = vmatmul.mubr.bf16.vlgmr.msra.gmra.mrb[4].mxu1 %v10681_v12 }
 0x161   : > { %3665 = vmatpush1.bf16.msra.mxu0 %v8381_v33  ;;  %3747 = vmatpush1.bf16.msra.mxu1 %v8383_v34  ;;  %v705_v33 = vld [vmem:[#allocation5 + $0xc90] sm:$0xff] }
 0x162   : > { %3666 = vmatprep.subr.bf16.mxu0 %v8398_v35  ;;  %3748 = vmatprep.subr.bf16.mxu1 %v8400_v39  ;;  %v713_v34 = vld [vmem:[#allocation5 + $0xcd0] sm:$0xff]  ;;  %v706_v35 = vld [vmem:[#allocation5 + $0xc98] sm:$0xff] }
 0x163   : > { %3696 = vmatprep.mubr.bf16.mxu0 %v10684_v24  ;;  %3778 = vmatprep.mubr.bf16.mxu1 %v10684_v24  ;;  %v8526_v39 = vcombine.high %v705_v33, %v713_v34  ;;  %v8528_v40 = vcombine.high %v706_v35, %v714_v36  ;;  %v8525_v45 = vcombine.low %v705_v33, %v713_v34 }
 0x164   : > { %v8527_v46 = vcombine.low %v706_v35, %v714_v36  ;;  %v323_v36 = vld [vmem:[#allocation5 + $0xa0] sm:$0xff] }
 0x165   : > { %3667 = vmatpush1.bf16.msra.mxu0 %v8397_v41  ;;  %3749 = vmatpush1.bf16.msra.mxu1 %v8399_v42  ;;  %v721_v41 = vld [vmem:[#allocation5 + $0xd10] sm:$0xff] }
 0x166   : > { %3668 = vmatprep.subr.bf16.mxu0 %v8414_v43  ;;  %3750 = vmatprep.subr.bf16.mxu1 %v8416_v47  ;;  %v729_v42 = vld [vmem:[#allocation5 + $0xd50] sm:$0xff]  ;;  %v722_v43 = vld [vmem:[#allocation5 + $0xd18] sm:$0xff] }
 0x167   : > { %v8542_v47 = vcombine.high %v721_v41, %v729_v42  ;;  %v8544_v48 = vcombine.high %v722_v43, %v730_v44  ;;  %v8541_v53 = vcombine.low %v721_v41, %v729_v42  ;;  %v8543_v54 = vcombine.low %v722_v43, %v730_v44 }
 0x169   : > { %3669 = vmatpush1.bf16.msra.mxu0 %v8413_v49  ;;  %3751 = vmatpush1.bf16.msra.mxu1 %v8415_v50  ;;  %v737_v49 = vld [vmem:[#allocation5 + $0xd90] sm:$0xff] }
 0x16a   : > { %3670 = vmatprep.subr.bf16.mxu0 %v8430_v51  ;;  %3752 = vmatprep.subr.bf16.mxu1 %v8432_v55  ;;  %v745_v50 = vld [vmem:[#allocation5 + $0xdd0] sm:$0xff]  ;;  %v738_v51 = vld [vmem:[#allocation5 + $0xd98] sm:$0xff] }
 0x16b   : > { %v8558_v55 = vcombine.high %v737_v49, %v745_v50  ;;  %v8560_v56 = vcombine.high %v738_v51, %v746_v52  ;;  %v8557_v62 = vcombine.low %v737_v49, %v745_v50  ;;  %v8559_v63 = vcombine.low %v738_v51, %v746_v52  ;;  %v355_v52 = vld [vmem:[#allocation5 + $0x1a0] sm:$0xff] }
 0x16d   : > { %3671 = vmatpush1.bf16.msra.mxu0 %v8429_v58  ;;  %3753 = vmatpush1.bf16.msra.mxu1 %v8431_v59  ;;  %v753_v58 = vld [vmem:[#allocation5 + $0xe10] sm:$0xff] }
 0x16e   : > { %3672 = vmatprep.subr.bf16.mxu0 %v8446_v60  ;;  %3754 = vmatprep.subr.bf16.mxu1 %v8448_v0  ;;  %v761_v59 = vld [vmem:[#allocation5 + $0xe50] sm:$0xff]  ;;  %v754_v60 = vld [vmem:[#allocation5 + $0xe18] sm:$0xff] }
 0x16f   : > { %v8574_v0 = vcombine.high %v753_v58, %v761_v59  ;;  %v8576_v1 = vcombine.high %v754_v60, %v762_v61  ;;  %v8573_v6 = vcombine.low %v753_v58, %v761_v59  ;;  %v8575_v7 = vcombine.low %v754_v60, %v762_v61  ;;  %v371_v61 = vld [vmem:[#allocation5 + $0x220] sm:$0xff] }
 0x171   : > { %3673 = vmatpush1.bf16.msra.mxu0 %v8445_v2  ;;  %3755 = vmatpush1.bf16.msra.mxu1 %v8447_v3  ;;  %v769_v2 = vld [vmem:[#allocation5 + $0xe90] sm:$0xff] }
 0x172   : > { %3674 = vmatprep.subr.bf16.mxu0 %v8462_v4  ;;  %3756 = vmatprep.subr.bf16.mxu1 %v8464_v8  ;;  %v777_v3 = vld [vmem:[#allocation5 + $0xed0] sm:$0xff]  ;;  %v770_v4 = vld [vmem:[#allocation5 + $0xe98] sm:$0xff] }
 0x173   : > { %v8590_v8 = vcombine.high %v769_v2, %v777_v3  ;;  %v8592_v9 = vcombine.high %v770_v4, %v778_v5  ;;  %v8589_v15 = vcombine.low %v769_v2, %v777_v3  ;;  %v8591_v16 = vcombine.low %v770_v4, %v778_v5  ;;  %v387_v5 = vld [vmem:[#allocation5 + $0x2a0] sm:$0xff] }
 0x175   : > { %3675 = vmatpush1.bf16.msra.mxu0 %v8461_v10  ;;  %3757 = vmatpush1.bf16.msra.mxu1 %v8463_v11  ;;  %v785_v10 = vld [vmem:[#allocation5 + $0xf10] sm:$0xff] }
 0x176   : > { %3676 = vmatprep.subr.bf16.mxu0 %v8478_v13  ;;  %3758 = vmatprep.subr.bf16.mxu1 %v8480_v14  ;;  %v793_v11 = vld [vmem:[#allocation5 + $0xf50] sm:$0xff]  ;;  %v786_v13 = vld [vmem:[#allocation5 + $0xf18] sm:$0xff] }
 0x177   : > { %v794_v14 = vld [vmem:[#allocation5 + $0xf58] sm:$0xff]  ;;  %v8606_v17 = vcombine.high %v785_v10, %v793_v11  ;;  %v8605_v25 = vcombine.low %v785_v10, %v793_v11 }
 0x178   : > { %v8608_v18 = vcombine.high %v786_v13, %v794_v14  ;;  %v8607_v26 = vcombine.low %v786_v13, %v794_v14  ;;  %v403_v14 = vld [vmem:[#allocation5 + $0x320] sm:$0xff] }
 0x179   : > { %3677 = vmatpush1.bf16.msra.mxu0 %v8477_v19  ;;  %3759 = vmatpush1.bf16.msra.mxu1 %v8479_v20  ;;  %v801_v19 = vld [vmem:[#allocation5 + $0xf90] sm:$0xff] }
 0x17a   : > { %3678 = vmatprep.subr.bf16.mxu0 %v8494_v21  ;;  %3760 = vmatprep.subr.bf16.mxu1 %v8496_v22  ;;  %v809_v20 = vld [vmem:[#allocation5 + $0xfd0] sm:$0xff]  ;;  %v802_v21 = vld [vmem:[#allocation5 + $0xf98] sm:$0xff] }
 0x17b   : > { %v810_v22 = vld [vmem:[#allocation5 + $0xfd8] sm:$0xff]  ;;  %v8622_v27 = vcombine.high %v801_v19, %v809_v20  ;;  %v8621_v33 = vcombine.low %v801_v19, %v809_v20 }
 0x17c   : > { %v8624_v28 = vcombine.high %v802_v21, %v810_v22  ;;  %v8623_v34 = vcombine.low %v802_v21, %v810_v22  ;;  %v419_v22 = vld [vmem:[#allocation5 + $0x3a0] sm:$0xff] }
 0x17d   : > { %3679 = vmatpush1.bf16.msra.mxu0 %v8493_v29  ;;  %3761 = vmatpush1.bf16.msra.mxu1 %v8495_v30  ;;  %v307_v29 = vld [vmem:[#allocation5 + $0x20] sm:$0xff] }
 0x17e   : > { %3680 = vmatprep.subr.bf16.mxu0 %v8510_v31  ;;  %3762 = vmatprep.subr.bf16.mxu1 %v8512_v32  ;;  %v315_v30 = vld [vmem:[#allocation5 + $0x60] sm:$0xff]  ;;  %v308_v31 = vld [vmem:[#allocation5 + $0x28] sm:$0xff] }
 0x17f   : > { %v316_v32 = vld [vmem:[#allocation5 + $0x68] sm:$0xff]  ;;  %v8130_v35 = vcombine.high %v307_v29, %v315_v30  ;;  %v8129_v41 = vcombine.low %v307_v29, %v315_v30 }
 0x180   : > { %v8131_v42 = vcombine.low %v308_v31, %v316_v32 }
 0x181   : > { %3681 = vmatpush1.bf16.msra.mxu0 %v8509_v37  ;;  %3763 = vmatpush1.bf16.msra.mxu1 %v8511_v38  ;;  %v331_v37 = vld [vmem:[#allocation5 + $0xe0] sm:$0xff]  ;;  %v324_v38 = vld [vmem:[#allocation5 + $0xa8] sm:$0xff] }
 0x182   : > { %3682 = vmatprep.subr.bf16.mxu0 %v8526_v39  ;;  %3764 = vmatprep.subr.bf16.mxu1 %v8528_v40  ;;  %v8132_v39 = vcombine.high %v308_v31, %v316_v32  ;;  %v332_v40 = vld [vmem:[#allocation5 + $0xe8] sm:$0xff]  ;;  %v8146_v43 = vcombine.high %v323_v36, %v331_v37  ;;  %v8145_v49 = vcombine.low %v323_v36, %v331_v37  ;;  %v435_v32 = vld [vmem:[#allocation5 + $0x420] sm:$0xff] }
 0x183   : > { %v8148_v44 = vcombine.high %v324_v38, %v332_v40  ;;  %v8147_v50 = vcombine.low %v324_v38, %v332_v40  ;;  %v444_v36 = vld [vmem:[#allocation5 + $0x468] sm:$0xff]  ;;  %v451_v40 = vld [vmem:[#allocation5 + $0x4a0] sm:$0xff] }
 0x185   : > { %3683 = vmatpush1.bf16.msra.mxu0 %v8525_v45  ;;  %3765 = vmatpush1.bf16.msra.mxu1 %v8527_v46  ;;  %v339_v45 = vld [vmem:[#allocation5 + $0x120] sm:$0xff] }
 0x186   : > { %3684 = vmatprep.subr.bf16.mxu0 %v8542_v47  ;;  %3766 = vmatprep.subr.bf16.mxu1 %v8544_v48  ;;  %v347_v46 = vld [vmem:[#allocation5 + $0x160] sm:$0xff]  ;;  %v340_v47 = vld [vmem:[#allocation5 + $0x128] sm:$0xff] }
 0x187   : > { %v348_v48 = vld [vmem:[#allocation5 + $0x168] sm:$0xff]  ;;  %v8162_v51 = vcombine.high %v339_v45, %v347_v46  ;;  %v8161_v58 = vcombine.low %v339_v45, %v347_v46 }
 0x188   : > { %v8163_v59 = vcombine.low %v340_v47, %v348_v48 }
 0x189   : > { %3685 = vmatpush1.bf16.msra.mxu0 %v8541_v53  ;;  %3767 = vmatpush1.bf16.msra.mxu1 %v8543_v54  ;;  %v363_v53 = vld [vmem:[#allocation5 + $0x1e0] sm:$0xff]  ;;  %v356_v54 = vld [vmem:[#allocation5 + $0x1a8] sm:$0xff] }
 0x18a   : > { %3686 = vmatprep.subr.bf16.mxu0 %v8558_v55  ;;  %3768 = vmatprep.subr.bf16.mxu1 %v8560_v56  ;;  %v8164_v55 = vcombine.high %v340_v47, %v348_v48  ;;  %v364_v56 = vld [vmem:[#allocation5 + $0x1e8] sm:$0xff]  ;;  %v8178_v60 = vcombine.high %v355_v52, %v363_v53  ;;  %v8177_v2 = vcombine.low %v355_v52, %v363_v53  ;;  %v467_v48 = vld [vmem:[#allocation5 + $0x520] sm:$0xff] }
 0x18b   : > { %v8179_v3 = vcombine.low %v356_v54, %v364_v56  ;;  %v476_v52 = vld [vmem:[#allocation5 + $0x568] sm:$0xff] }
 0x18d   : > { %3687 = vmatpush1.bf16.msra.mxu0 %v8557_v62  ;;  %3769 = vmatpush1.bf16.msra.mxu1 %v8559_v63  ;;  %v379_v62 = vld [vmem:[#allocation5 + $0x260] sm:$0xff]  ;;  %v372_v63 = vld [vmem:[#allocation5 + $0x228] sm:$0xff] }
 0x18e   : > { %3688 = vmatprep.subr.bf16.mxu0 %v8574_v0  ;;  %3770 = vmatprep.subr.bf16.mxu1 %v8576_v1  ;;  %v8180_v0 = vcombine.high %v356_v54, %v364_v56  ;;  %v380_v1 = vld [vmem:[#allocation5 + $0x268] sm:$0xff]  ;;  %v8194_v4 = vcombine.high %v371_v61, %v379_v62  ;;  %v8193_v10 = vcombine.low %v371_v61, %v379_v62  ;;  %v483_v56 = vld [vmem:[#allocation5 + $0x5a0] sm:$0xff] }
 0x18f   : > { %v8195_v11 = vcombine.low %v372_v63, %v380_v1  ;;  %v492_v61 = vld [vmem:[#allocation5 + $0x5e8] sm:$0xff] }
 0x191   : > { %3689 = vmatpush1.bf16.msra.mxu0 %v8573_v6  ;;  %3771 = vmatpush1.bf16.msra.mxu1 %v8575_v7  ;;  %v395_v6 = vld [vmem:[#allocation5 + $0x2e0] sm:$0xff]  ;;  %v388_v7 = vld [vmem:[#allocation5 + $0x2a8] sm:$0xff] }
 0x192   : > { %3690 = vmatprep.subr.bf16.mxu0 %v8590_v8  ;;  %3772 = vmatprep.subr.bf16.mxu1 %v8592_v9  ;;  %v8196_v8 = vcombine.high %v372_v63, %v380_v1  ;;  %v396_v9 = vld [vmem:[#allocation5 + $0x2e8] sm:$0xff]  ;;  %v8210_v13 = vcombine.high %v387_v5, %v395_v6  ;;  %v8209_v19 = vcombine.low %v387_v5, %v395_v6  ;;  %v499_v1 = vld [vmem:[#allocation5 + $0x620] sm:$0xff] }
 0x193   : > { %v8211_v20 = vcombine.low %v388_v7, %v396_v9  ;;  %v508_v5 = vld [vmem:[#allocation5 + $0x668] sm:$0xff] }
 0x195   : > { %3691 = vmatpush1.bf16.msra.mxu0 %v8589_v15  ;;  %3773 = vmatpush1.bf16.msra.mxu1 %v8591_v16  ;;  %v411_v15 = vld [vmem:[#allocation5 + $0x360] sm:$0xff]  ;;  %v404_v16 = vld [vmem:[#allocation5 + $0x328] sm:$0xff] }
 0x196   : > { %3692 = vmatprep.subr.bf16.mxu0 %v8606_v17  ;;  %3774 = vmatprep.subr.bf16.mxu1 %v8608_v18  ;;  %v8212_v17 = vcombine.high %v388_v7, %v396_v9  ;;  %v412_v18 = vld [vmem:[#allocation5 + $0x368] sm:$0xff]  ;;  %v8226_v21 = vcombine.high %v403_v14, %v411_v15  ;;  %v8225_v29 = vcombine.low %v403_v14, %v411_v15  ;;  %v515_v9 = vld [vmem:[#allocation5 + $0x6a0] sm:$0xff] }
 0x197   : > { %v8227_v30 = vcombine.low %v404_v16, %v412_v18  ;;  %v524_v14 = vld [vmem:[#allocation5 + $0x6e8] sm:$0xff] }
 0x199   : > { %3693 = vmatpush1.bf16.msra.mxu0 %v8605_v25  ;;  %3775 = vmatpush1.bf16.msra.mxu1 %v8607_v26  ;;  %v427_v25 = vld [vmem:[#allocation5 + $0x3e0] sm:$0xff]  ;;  %v420_v26 = vld [vmem:[#allocation5 + $0x3a8] sm:$0xff] }
 0x19a   : > { %3694 = vmatprep.subr.bf16.mxu0 %v8622_v27  ;;  %3776 = vmatprep.subr.bf16.mxu1 %v8624_v28  ;;  %v8228_v27 = vcombine.high %v404_v16, %v412_v18  ;;  %v428_v28 = vld [vmem:[#allocation5 + $0x3e8] sm:$0xff]  ;;  %v8242_v31 = vcombine.high %v419_v22, %v427_v25  ;;  %v8241_v37 = vcombine.low %v419_v22, %v427_v25  ;;  %v531_v18 = vld [vmem:[#allocation5 + $0x720] sm:$0xff] }
 0x19b   : > { %v8243_v38 = vcombine.low %v420_v26, %v428_v28  ;;  %v540_v22 = vld [vmem:[#allocation5 + $0x768] sm:$0xff] }
 0x19d   : > { %3695 = vmatpush1.bf16.msra.mxu0 %v8621_v33  ;;  %3777 = vmatpush1.bf16.msra.mxu1 %v8623_v34  ;;  %v443_v33 = vld [vmem:[#allocation5 + $0x460] sm:$0xff]  ;;  %v436_v34 = vld [vmem:[#allocation5 + $0x428] sm:$0xff] }
 0x19e   : > { %3787 = vmatprep.subr.bf16.mxu0 %v8130_v35  ;;  %3869 = vmatprep.subr.bf16.mxu1 %v8132_v39  ;;  %v8244_v35 = vcombine.high %v420_v26, %v428_v28  ;;  %v8258_v39 = vcombine.high %v435_v32, %v443_v33  ;;  %v8257_v45 = vcombine.low %v435_v32, %v443_v33  ;;  %v547_v28 = vld [vmem:[#allocation5 + $0x7a0] sm:$0xff]  ;;  %v556_v32 = vld [vmem:[#allocation5 + $0x7e8] sm:$0xff] }
 0x19f   : > { %v8259_v46 = vcombine.low %v436_v34, %v444_v36 }
 0x1a0   : > { %3697 = vmatmul.mubr.bf16.vlgmr.msra.gmra.mrb[4].mxu0 %v10691_v23  ;;  %3779 = vmatmul.mubr.bf16.vlgmr.msra.gmra.mrb[4].mxu1 %v10691_v23 }
 0x1a1   : > { %3788 = vmatpush1.bf16.msra.mxu0 %v8129_v41  ;;  %3870 = vmatpush1.bf16.msra.mxu1 %v8131_v42  ;;  %v459_v41 = vld [vmem:[#allocation5 + $0x4e0] sm:$0xff]  ;;  %v452_v42 = vld [vmem:[#allocation5 + $0x4a8] sm:$0xff] }
 0x1a2   : > { %3789 = vmatprep.subr.bf16.mxu0 %v8146_v43  ;;  %3871 = vmatprep.subr.bf16.mxu1 %v8148_v44  ;;  %v8260_v43 = vcombine.high %v436_v34, %v444_v36  ;;  %v460_v44 = vld [vmem:[#allocation5 + $0x4e8] sm:$0xff]  ;;  %v8274_v47 = vcombine.high %v451_v40, %v459_v41  ;;  %v8273_v53 = vcombine.low %v451_v40, %v459_v41  ;;  %v563_v36 = vld [vmem:[#allocation5 + $0x820] sm:$0xff] }
 0x1a3   : > { %3819 = vmatprep.mubr.bf16.mxu0 %v10676_v57  ;;  %3901 = vmatprep.mubr.bf16.mxu1 %v10676_v57  ;;  %v8275_v54 = vcombine.low %v452_v42, %v460_v44  ;;  %v572_v40 = vld [vmem:[#allocation5 + $0x868] sm:$0xff] }
 0x1a5   : > { %3790 = vmatpush1.bf16.msra.mxu0 %v8145_v49  ;;  %3872 = vmatpush1.bf16.msra.mxu1 %v8147_v50  ;;  %v475_v49 = vld [vmem:[#allocation5 + $0x560] sm:$0xff]  ;;  %v468_v50 = vld [vmem:[#allocation5 + $0x528] sm:$0xff] }
 0x1a6   : > { %3791 = vmatprep.subr.bf16.mxu0 %v8162_v51  ;;  %3873 = vmatprep.subr.bf16.mxu1 %v8164_v55  ;;  %v8276_v51 = vcombine.high %v452_v42, %v460_v44  ;;  %v8290_v55 = vcombine.high %v467_v48, %v475_v49  ;;  %v8289_v62 = vcombine.low %v467_v48, %v475_v49  ;;  %v579_v44 = vld [vmem:[#allocation5 + $0x8a0] sm:$0xff]  ;;  %v588_v48 = vld [vmem:[#allocation5 + $0x8e8] sm:$0xff] }
 0x1a7   : > { %v8291_v63 = vcombine.low %v468_v50, %v476_v52 }
 0x1a9   : > { %3792 = vmatpush1.bf16.msra.mxu0 %v8161_v58  ;;  %3874 = vmatpush1.bf16.msra.mxu1 %v8163_v59  ;;  %v491_v58 = vld [vmem:[#allocation5 + $0x5e0] sm:$0xff]  ;;  %v484_v59 = vld [vmem:[#allocation5 + $0x5a8] sm:$0xff] }
 0x1aa   : > { %3793 = vmatprep.subr.bf16.mxu0 %v8178_v60  ;;  %3875 = vmatprep.subr.bf16.mxu1 %v8180_v0  ;;  %v8292_v60 = vcombine.high %v468_v50, %v476_v52  ;;  %v8306_v0 = vcombine.high %v483_v56, %v491_v58  ;;  %v8305_v6 = vcombine.low %v483_v56, %v491_v58  ;;  %v595_v52 = vld [vmem:[#allocation5 + $0x920] sm:$0xff]  ;;  %v604_v56 = vld [vmem:[#allocation5 + $0x968] sm:$0xff] }
 0x1ab   : > { %v8307_v7 = vcombine.low %v484_v59, %v492_v61 }
 0x1ad   : > { %3794 = vmatpush1.bf16.msra.mxu0 %v8177_v2  ;;  %3876 = vmatpush1.bf16.msra.mxu1 %v8179_v3  ;;  %v507_v2 = vld [vmem:[#allocation5 + $0x660] sm:$0xff]  ;;  %v500_v3 = vld [vmem:[#allocation5 + $0x628] sm:$0xff] }
 0x1ae   : > { %3795 = vmatprep.subr.bf16.mxu0 %v8194_v4  ;;  %3877 = vmatprep.subr.bf16.mxu1 %v8196_v8  ;;  %v8308_v4 = vcombine.high %v484_v59, %v492_v61  ;;  %v8322_v8 = vcombine.high %v499_v1, %v507_v2  ;;  %v8321_v15 = vcombine.low %v499_v1, %v507_v2  ;;  %v620_v1 = vld [vmem:[#allocation5 + $0x9e8] sm:$0xff] }
 0x1af   : > { %v8323_v16 = vcombine.low %v500_v3, %v508_v5 }
 0x1b1   : > { %3796 = vmatpush1.bf16.msra.mxu0 %v8193_v10  ;;  %3878 = vmatpush1.bf16.msra.mxu1 %v8195_v11  ;;  %v523_v10 = vld [vmem:[#allocation5 + $0x6e0] sm:$0xff]  ;;  %v516_v11 = vld [vmem:[#allocation5 + $0x6a8] sm:$0xff] }
 0x1b2   : > { %3797 = vmatprep.subr.bf16.mxu0 %v8210_v13  ;;  %3879 = vmatprep.subr.bf16.mxu1 %v8212_v17  ;;  %v8324_v13 = vcombine.high %v500_v3, %v508_v5  ;;  %v8338_v17 = vcombine.high %v515_v9, %v523_v10  ;;  %v8337_v25 = vcombine.low %v515_v9, %v523_v10  ;;  %v636_v9 = vld [vmem:[#allocation5 + $0xa68] sm:$0xff] }
 0x1b3   : > { %v8339_v26 = vcombine.low %v516_v11, %v524_v14 }
 0x1b5   : > { %3798 = vmatpush1.bf16.msra.mxu0 %v8209_v19  ;;  %3880 = vmatpush1.bf16.msra.mxu1 %v8211_v20  ;;  %v539_v19 = vld [vmem:[#allocation5 + $0x760] sm:$0xff]  ;;  %v532_v20 = vld [vmem:[#allocation5 + $0x728] sm:$0xff] }
 0x1b6   : > { %3799 = vmatprep.subr.bf16.mxu0 %v8226_v21  ;;  %3881 = vmatprep.subr.bf16.mxu1 %v8228_v27  ;;  %v8340_v21 = vcombine.high %v516_v11, %v524_v14  ;;  %v8354_v27 = vcombine.high %v531_v18, %v539_v19  ;;  %v8353_v33 = vcombine.low %v531_v18, %v539_v19  ;;  %v652_v18 = vld [vmem:[#allocation5 + $0xae8] sm:$0xff] }
 0x1b7   : > { %v8355_v34 = vcombine.low %v532_v20, %v540_v22 }
 0x1b9   : > { %3800 = vmatpush1.bf16.msra.mxu0 %v8225_v29  ;;  %3882 = vmatpush1.bf16.msra.mxu1 %v8227_v30  ;;  %v555_v29 = vld [vmem:[#allocation5 + $0x7e0] sm:$0xff]  ;;  %v548_v30 = vld [vmem:[#allocation5 + $0x7a8] sm:$0xff] }
 0x1ba   : > { %3801 = vmatprep.subr.bf16.mxu0 %v8242_v31  ;;  %3883 = vmatprep.subr.bf16.mxu1 %v8244_v35  ;;  %v8356_v31 = vcombine.high %v532_v20, %v540_v22  ;;  %v8370_v35 = vcombine.high %v547_v28, %v555_v29  ;;  %v8369_v41 = vcombine.low %v547_v28, %v555_v29  ;;  %v668_v28 = vld [vmem:[#allocation5 + $0xb68] sm:$0xff] }
 0x1bb   : > { %v8371_v42 = vcombine.low %v548_v30, %v556_v32 }
 0x1bd   : > { %3802 = vmatpush1.bf16.msra.mxu0 %v8241_v37  ;;  %3884 = vmatpush1.bf16.msra.mxu1 %v8243_v38  ;;  %v571_v37 = vld [vmem:[#allocation5 + $0x860] sm:$0xff]  ;;  %v564_v38 = vld [vmem:[#allocation5 + $0x828] sm:$0xff] }
 0x1be   : > { %3803 = vmatprep.subr.bf16.mxu0 %v8258_v39  ;;  %3885 = vmatprep.subr.bf16.mxu1 %v8260_v43  ;;  %v8372_v39 = vcombine.high %v548_v30, %v556_v32  ;;  %v8386_v43 = vcombine.high %v563_v36, %v571_v37  ;;  %v8385_v49 = vcombine.low %v563_v36, %v571_v37 }
 0x1bf   : > { %v8387_v50 = vcombine.low %v564_v38, %v572_v40 }
 0x1c1   : > { %3804 = vmatpush1.bf16.msra.mxu0 %v8257_v45  ;;  %3886 = vmatpush1.bf16.msra.mxu1 %v8259_v46  ;;  %v587_v45 = vld [vmem:[#allocation5 + $0x8e0] sm:$0xff]  ;;  %v580_v46 = vld [vmem:[#allocation5 + $0x8a8] sm:$0xff] }
 0x1c2   : > { %3805 = vmatprep.subr.bf16.mxu0 %v8274_v47  ;;  %3887 = vmatprep.subr.bf16.mxu1 %v8276_v51  ;;  %v8388_v47 = vcombine.high %v564_v38, %v572_v40  ;;  %v8402_v51 = vcombine.high %v579_v44, %v587_v45  ;;  %v8401_v58 = vcombine.low %v579_v44, %v587_v45  ;;  %v676_v38 = vld [vmem:[#allocation5 + $0xba8] sm:$0xff] }
 0x1c3   : > { %v8403_v59 = vcombine.low %v580_v46, %v588_v48 }
 0x1c5   : > { %3806 = vmatpush1.bf16.msra.mxu0 %v8273_v53  ;;  %3888 = vmatpush1.bf16.msra.mxu1 %v8275_v54  ;;  %v8404_v53 = vcombine.high %v580_v46, %v588_v48  ;;  %v603_v54 = vld [vmem:[#allocation5 + $0x960] sm:$0xff] }
 0x1c6   : > { %3807 = vmatprep.subr.bf16.mxu0 %v8290_v55  ;;  %3889 = vmatprep.subr.bf16.mxu1 %v8292_v60  ;;  %v596_v55 = vld [vmem:[#allocation5 + $0x928] sm:$0xff]  ;;  %v8418_v60 = vcombine.high %v595_v52, %v603_v54  ;;  %v8417_v2 = vcombine.low %v595_v52, %v603_v54 }
 0x1c7   : > { %v8420_v61 = vcombine.high %v596_v55, %v604_v56  ;;  %v8419_v3 = vcombine.low %v596_v55, %v604_v56  ;;  %v700_v52 = vld [vmem:[#allocation5 + $0xc68] sm:$0xff] }
 0x1c9   : > { %3808 = vmatpush1.bf16.msra.mxu0 %v8289_v62  ;;  %3890 = vmatpush1.bf16.msra.mxu1 %v8291_v63  ;;  %v611_v62 = vld [vmem:[#allocation5 + $0x9a0] sm:$0xff] }
 0x1ca   : > { %3809 = vmatprep.subr.bf16.mxu0 %v8306_v0  ;;  %3891 = vmatprep.subr.bf16.mxu1 %v8308_v4  ;;  %v619_v63 = vld [vmem:[#allocation5 + $0x9e0] sm:$0xff]  ;;  %v612_v0 = vld [vmem:[#allocation5 + $0x9a8] sm:$0xff] }
 0x1cb   : > { %v8434_v4 = vcombine.high %v611_v62, %v619_v63  ;;  %v8436_v5 = vcombine.high %v612_v0, %v620_v1  ;;  %v8433_v10 = vcombine.low %v611_v62, %v619_v63  ;;  %v8435_v11 = vcombine.low %v612_v0, %v620_v1 }
 0x1cd   : > { %3810 = vmatpush1.bf16.msra.mxu0 %v8305_v6  ;;  %3892 = vmatpush1.bf16.msra.mxu1 %v8307_v7  ;;  %v627_v6 = vld [vmem:[#allocation5 + $0xa20] sm:$0xff] }
 0x1ce   : > { %3811 = vmatprep.subr.bf16.mxu0 %v8322_v8  ;;  %3893 = vmatprep.subr.bf16.mxu1 %v8324_v13  ;;  %v635_v7 = vld [vmem:[#allocation5 + $0xa60] sm:$0xff]  ;;  %v628_v8 = vld [vmem:[#allocation5 + $0xa28] sm:$0xff] }
 0x1cf   : > { %v8450_v13 = vcombine.high %v627_v6, %v635_v7  ;;  %v8452_v14 = vcombine.high %v628_v8, %v636_v9  ;;  %v8449_v19 = vcombine.low %v627_v6, %v635_v7  ;;  %v8451_v20 = vcombine.low %v628_v8, %v636_v9 }
 0x1d1   : > { %3812 = vmatpush1.bf16.msra.mxu0 %v8321_v15  ;;  %3894 = vmatpush1.bf16.msra.mxu1 %v8323_v16  ;;  %v643_v15 = vld [vmem:[#allocation5 + $0xaa0] sm:$0xff] }
 0x1d2   : > { %3813 = vmatprep.subr.bf16.mxu0 %v8338_v17  ;;  %3895 = vmatprep.subr.bf16.mxu1 %v8340_v21  ;;  %v651_v16 = vld [vmem:[#allocation5 + $0xae0] sm:$0xff]  ;;  %v644_v17 = vld [vmem:[#allocation5 + $0xaa8] sm:$0xff] }
 0x1d3   : > { %v8466_v21 = vcombine.high %v643_v15, %v651_v16  ;;  %v8468_v22 = vcombine.high %v644_v17, %v652_v18  ;;  %v8465_v29 = vcombine.low %v643_v15, %v651_v16  ;;  %v8467_v30 = vcombine.low %v644_v17, %v652_v18 }
 0x1d5   : > { %3814 = vmatpush1.bf16.msra.mxu0 %v8337_v25  ;;  %3896 = vmatpush1.bf16.msra.mxu1 %v8339_v26  ;;  %v659_v25 = vld [vmem:[#allocation5 + $0xb20] sm:$0xff] }
 0x1d6   : > { %3815 = vmatprep.subr.bf16.mxu0 %v8354_v27  ;;  %3897 = vmatprep.subr.bf16.mxu1 %v8356_v31  ;;  %v667_v26 = vld [vmem:[#allocation5 + $0xb60] sm:$0xff]  ;;  %v660_v27 = vld [vmem:[#allocation5 + $0xb28] sm:$0xff] }
 0x1d7   : > { %v8482_v31 = vcombine.high %v659_v25, %v667_v26  ;;  %v8483_v45 = vcombine.low %v660_v27, %v668_v28 }
 0x1d9   : > { %3816 = vmatpush1.bf16.msra.mxu0 %v8353_v33  ;;  %3898 = vmatpush1.bf16.msra.mxu1 %v8355_v34  ;;  %v8484_v33 = vcombine.high %v660_v27, %v668_v28  ;;  %v675_v34 = vld [vmem:[#allocation5 + $0xba0] sm:$0xff] }
 0x1da   : > { %3817 = vmatprep.subr.bf16.mxu0 %v8370_v35  ;;  %3899 = vmatprep.subr.bf16.mxu1 %v8372_v39  ;;  %v683_v35 = vld [vmem:[#allocation5 + $0xbe0] sm:$0xff]  ;;  %v684_v39 = vld [vmem:[#allocation5 + $0xbe8] sm:$0xff] }
 0x1db   : > { %v8498_v46 = vcombine.high %v675_v34, %v683_v35  ;;  %v8500_v48 = vcombine.high %v676_v38, %v684_v39  ;;  %v8499_v54 = vcombine.low %v676_v38, %v684_v39 }
 0x1dd   : > { %3818 = vmatpush1.bf16.msra.mxu0 %v8369_v41  ;;  %3900 = vmatpush1.bf16.msra.mxu1 %v8371_v42  ;;  %v8481_v42 = vcombine.low %v659_v25, %v667_v26 }
 0x1de   : > { %3828 = vmatprep.subr.bf16.mxu0 %v8386_v43  ;;  %3910 = vmatprep.subr.bf16.mxu1 %v8388_v47 }
 0x1e0   : > { %3820 = vmatmul.mubr.bf16.vlgmr.msra.gmra.mrb[8].mxu0 %v10681_v12  ;;  %3902 = vmatmul.mubr.bf16.vlgmr.msra.gmra.mrb[8].mxu1 %v10681_v12 }
 0x1e1   : > { %3829 = vmatpush1.bf16.msra.mxu0 %v8385_v49  ;;  %3911 = vmatpush1.bf16.msra.mxu1 %v8387_v50  ;;  %v691_v49 = vld [vmem:[#allocation5 + $0xc20] sm:$0xff] }
 0x1e2   : > { %3830 = vmatprep.subr.bf16.mxu0 %v8402_v51  ;;  %3912 = vmatprep.subr.bf16.mxu1 %v8404_v53  ;;  %v699_v50 = vld [vmem:[#allocation5 + $0xc60] sm:$0xff]  ;;  %v692_v51 = vld [vmem:[#allocation5 + $0xc28] sm:$0xff]  ;;  %v8497_v53 = vcombine.low %v675_v34, %v683_v35 }
 0x1e3   : > { %3860 = vmatprep.mubr.bf16.mxu0 %v10684_v24  ;;  %3942 = vmatprep.mubr.bf16.mxu1 %v10684_v24  ;;  %v8514_v55 = vcombine.high %v691_v49, %v699_v50  ;;  %v8516_v56 = vcombine.high %v692_v51, %v700_v52  ;;  %v8513_v62 = vcombine.low %v691_v49, %v699_v50  ;;  %v803_v49 = vld [vmem:[#allocation5 + $0xfa0] sm:$0xff] }
 0x1e4   : > { %v8515_v63 = vcombine.low %v692_v51, %v700_v52  ;;  %v811_v50 = vld [vmem:[#allocation5 + $0xfe0] sm:$0xff]  ;;  %v804_v51 = vld [vmem:[#allocation5 + $0xfa8] sm:$0xff] }
 0x1e5   : > { %3831 = vmatpush1.bf16.msra.mxu0 %v8401_v58  ;;  %3913 = vmatpush1.bf16.msra.mxu1 %v8403_v59  ;;  %v707_v58 = vld [vmem:[#allocation5 + $0xca0] sm:$0xff]  ;;  %v812_v52 = vld [vmem:[#allocation5 + $0xfe8] sm:$0xff] }
 0x1e6   : > { %3832 = vmatprep.subr.bf16.mxu0 %v8418_v60  ;;  %3914 = vmatprep.subr.bf16.mxu1 %v8420_v61  ;;  %v715_v59 = vld [vmem:[#allocation5 + $0xce0] sm:$0xff]  ;;  %v708_v60 = vld [vmem:[#allocation5 + $0xca8] sm:$0xff] }
 0x1e7   : > { %v716_v61 = vld [vmem:[#allocation5 + $0xce8] sm:$0xff]  ;;  %v8530_v0 = vcombine.high %v707_v58, %v715_v59  ;;  %v8529_v6 = vcombine.low %v707_v58, %v715_v59  ;;  %v309_v58 = vld [vmem:[#allocation5 + $0x30] sm:$0xff] }
 0x1e8   : > { %v8532_v1 = vcombine.high %v708_v60, %v716_v61  ;;  %v8531_v7 = vcombine.low %v708_v60, %v716_v61  ;;  %v317_v59 = vld [vmem:[#allocation5 + $0x70] sm:$0xff]  ;;  %v310_v60 = vld [vmem:[#allocation5 + $0x38] sm:$0xff] }
 0x1e9   : > { %3833 = vmatpush1.bf16.msra.mxu0 %v8417_v2  ;;  %3915 = vmatpush1.bf16.msra.mxu1 %v8419_v3  ;;  %v723_v2 = vld [vmem:[#allocation5 + $0xd20] sm:$0xff]  ;;  %v318_v61 = vld [vmem:[#allocation5 + $0x78] sm:$0xff] }
 0x1ea   : > { %3834 = vmatprep.subr.bf16.mxu0 %v8434_v4  ;;  %3916 = vmatprep.subr.bf16.mxu1 %v8436_v5  ;;  %v731_v3 = vld [vmem:[#allocation5 + $0xd60] sm:$0xff]  ;;  %v724_v4 = vld [vmem:[#allocation5 + $0xd28] sm:$0xff] }
 0x1eb   : > { %v732_v5 = vld [vmem:[#allocation5 + $0xd68] sm:$0xff]  ;;  %v8546_v8 = vcombine.high %v723_v2, %v731_v3  ;;  %v8545_v15 = vcombine.low %v723_v2, %v731_v3  ;;  %v325_v2 = vld [vmem:[#allocation5 + $0xb0] sm:$0xff] }
 0x1ec   : > { %v8548_v9 = vcombine.high %v724_v4, %v732_v5  ;;  %v8547_v16 = vcombine.low %v724_v4, %v732_v5  ;;  %v333_v3 = vld [vmem:[#allocation5 + $0xf0] sm:$0xff]  ;;  %v326_v4 = vld [vmem:[#allocation5 + $0xb8] sm:$0xff] }
 0x1ed   : > { %3835 = vmatpush1.bf16.msra.mxu0 %v8433_v10  ;;  %3917 = vmatpush1.bf16.msra.mxu1 %v8435_v11  ;;  %v739_v10 = vld [vmem:[#allocation5 + $0xda0] sm:$0xff]  ;;  %v334_v5 = vld [vmem:[#allocation5 + $0xf8] sm:$0xff] }
 0x1ee   : > { %3836 = vmatprep.subr.bf16.mxu0 %v8450_v13  ;;  %3918 = vmatprep.subr.bf16.mxu1 %v8452_v14  ;;  %v747_v11 = vld [vmem:[#allocation5 + $0xde0] sm:$0xff]  ;;  %v740_v13 = vld [vmem:[#allocation5 + $0xda8] sm:$0xff] }
 0x1ef   : > { %v748_v14 = vld [vmem:[#allocation5 + $0xde8] sm:$0xff]  ;;  %v8562_v17 = vcombine.high %v739_v10, %v747_v11  ;;  %v8561_v25 = vcombine.low %v739_v10, %v747_v11  ;;  %v341_v10 = vld [vmem:[#allocation5 + $0x130] sm:$0xff] }
 0x1f0   : > { %v8564_v18 = vcombine.high %v740_v13, %v748_v14  ;;  %v8563_v26 = vcombine.low %v740_v13, %v748_v14  ;;  %v349_v11 = vld [vmem:[#allocation5 + $0x170] sm:$0xff]  ;;  %v342_v13 = vld [vmem:[#allocation5 + $0x138] sm:$0xff] }
 0x1f1   : > { %3837 = vmatpush1.bf16.msra.mxu0 %v8449_v19  ;;  %3919 = vmatpush1.bf16.msra.mxu1 %v8451_v20  ;;  %v755_v19 = vld [vmem:[#allocation5 + $0xe20] sm:$0xff]  ;;  %v350_v14 = vld [vmem:[#allocation5 + $0x178] sm:$0xff] }
 0x1f2   : > { %3838 = vmatprep.subr.bf16.mxu0 %v8466_v21  ;;  %3920 = vmatprep.subr.bf16.mxu1 %v8468_v22  ;;  %v763_v20 = vld [vmem:[#allocation5 + $0xe60] sm:$0xff]  ;;  %v756_v21 = vld [vmem:[#allocation5 + $0xe28] sm:$0xff] }
 0x1f3   : > { %v10709_v32 = vpop.f32.mrb[0].mxu0  ;;  %v10711_v36 = vpop.f32.mrb[0].mxu1  ;;  %v764_v22 = vld [vmem:[#allocation5 + $0xe68] sm:$0xff]  ;;  %v8578_v27 = vcombine.high %v755_v19, %v763_v20  ;;  %v8577_v34 = vcombine.low %v755_v19, %v763_v20  ;;  %v357_v19 = vld [vmem:[#allocation5 + $0x1b0] sm:$0xff] }
 0x1f4   : > { %v10713_v37 = vpop.f32.mrb[1].mxu0  ;;  %v10715_v40 = vpop.f32.mrb[1].mxu1  ;;  %v8580_v28 = vcombine.high %v756_v21, %v764_v22  ;;  %v8579_v35 = vcombine.low %v756_v21, %v764_v22  ;;  %v365_v20 = vld [vmem:[#allocation5 + $0x1f0] sm:$0xff]  ;;  %v358_v21 = vld [vmem:[#allocation5 + $0x1b8] sm:$0xff] }
 0x1f5   : > { %v3538_v41 = vpop.f32.mrb[2].mxu0  ;;  %3839 = vmatpush1.bf16.msra.mxu0 %v8465_v29  ;;  %v3620_v43 = vpop.f32.mrb[2].mxu1  ;;  %3921 = vmatpush1.bf16.msra.mxu1 %v8467_v30  ;;  %v771_v29 = vld [vmem:[#allocation5 + $0xea0] sm:$0xff]  ;;  %v366_v22 = vld [vmem:[#allocation5 + $0x1f8] sm:$0xff] }
 0x1f6   : > { %v3539_v44 = vpop.f32.mrb[3].mxu0  ;;  %3840 = vmatprep.subr.bf16.mxu0 %v8482_v31  ;;  %v3621_v47 = vpop.f32.mrb[3].mxu1  ;;  %3922 = vmatprep.subr.bf16.mxu1 %v8484_v33  ;;  %v779_v30 = vld [vmem:[#allocation5 + $0xee0] sm:$0xff]  ;;  %v772_v31 = vld [vmem:[#allocation5 + $0xea8] sm:$0xff] }
 0x1f7   : > { %v780_v33 = vld [vmem:[#allocation5 + $0xee8] sm:$0xff]  ;;  %v8594_v38 = vcombine.high %v771_v29, %v779_v30  ;;  %v787_v41 = vld [vmem:[#allocation5 + $0xf20] sm:$0xff] }
 0x1f8   : > { %v8596_v39 = vcombine.high %v772_v31, %v780_v33  ;;  %v788_v43 = vld [vmem:[#allocation5 + $0xf28] sm:$0xff] }
 0x1f9   : > { %3841 = vmatpush1.bf16.msra.mxu0 %v8481_v42  ;;  %3923 = vmatpush1.bf16.msra.mxu1 %v8483_v45  ;;  %v795_v42 = vld [vmem:[#allocation5 + $0xf60] sm:$0xff]  ;;  %v796_v44 = vld [vmem:[#allocation5 + $0xf68] sm:$0xff]  ;;  %v8593_v45 = vcombine.low %v771_v29, %v779_v30  ;;  %v373_v29 = vld [vmem:[#allocation5 + $0x230] sm:$0xff] }
 0x1fa   : > { %3842 = vmatprep.subr.bf16.mxu0 %v8498_v46  ;;  %3924 = vmatprep.subr.bf16.mxu1 %v8500_v48  ;;  %v8595_v46 = vcombine.low %v772_v31, %v780_v33  ;;  %v8610_v47 = vcombine.high %v787_v41, %v795_v42  ;;  %v8612_v48 = vcombine.high %v788_v43, %v796_v44  ;;  %v381_v30 = vld [vmem:[#allocation5 + $0x270] sm:$0xff]  ;;  %v374_v31 = vld [vmem:[#allocation5 + $0x238] sm:$0xff] }
 0x1fb   : > { %v382_v33 = vld [vmem:[#allocation5 + $0x278] sm:$0xff] }
 0x1fd   : > { %3843 = vmatpush1.bf16.msra.mxu0 %v8497_v53  ;;  %3925 = vmatpush1.bf16.msra.mxu1 %v8499_v54  ;;  %v8609_v53 = vcombine.low %v787_v41, %v795_v42  ;;  %v8611_v54 = vcombine.low %v788_v43, %v796_v44  ;;  %v397_v41 = vld [vmem:[#allocation5 + $0x2f0] sm:$0xff]  ;;  %v390_v42 = vld [vmem:[#allocation5 + $0x2b8] sm:$0xff]  ;;  %v8197_v44 = vcombine.low %v373_v29, %v381_v30 }
 0x1fe   : > { %3844 = vmatprep.subr.bf16.mxu0 %v8514_v55  ;;  %3926 = vmatprep.subr.bf16.mxu1 %v8516_v56  ;;  %v8626_v55 = vcombine.high %v803_v49, %v811_v50  ;;  %v8628_v56 = vcombine.high %v804_v51, %v812_v52  ;;  %v398_v43 = vld [vmem:[#allocation5 + $0x2f8] sm:$0xff] }
 0x201   : > { %3845 = vmatpush1.bf16.msra.mxu0 %v8513_v62  ;;  %3927 = vmatpush1.bf16.msra.mxu1 %v8515_v63  ;;  %v8625_v62 = vcombine.low %v803_v49, %v811_v50  ;;  %v8627_v63 = vcombine.low %v804_v51, %v812_v52  ;;  %v413_v49 = vld [vmem:[#allocation5 + $0x370] sm:$0xff]  ;;  %v406_v50 = vld [vmem:[#allocation5 + $0x338] sm:$0xff] }
 0x202   : > { %3846 = vmatprep.subr.bf16.mxu0 %v8530_v0  ;;  %3928 = vmatprep.subr.bf16.mxu1 %v8532_v1  ;;  %v8134_v0 = vcombine.high %v309_v58, %v317_v59  ;;  %v8136_v1 = vcombine.high %v310_v60, %v318_v61  ;;  %v414_v51 = vld [vmem:[#allocation5 + $0x378] sm:$0xff] }
 0x205   : > { %3847 = vmatpush1.bf16.msra.mxu0 %v8529_v6  ;;  %3929 = vmatpush1.bf16.msra.mxu1 %v8531_v7  ;;  %v8133_v6 = vcombine.low %v309_v58, %v317_v59  ;;  %v8135_v7 = vcombine.low %v310_v60, %v318_v61  ;;  %v429_v58 = vld [vmem:[#allocation5 + $0x3f0] sm:$0xff]  ;;  %v422_v59 = vld [vmem:[#allocation5 + $0x3b8] sm:$0xff] }
 0x206   : > { %3848 = vmatprep.subr.bf16.mxu0 %v8546_v8  ;;  %3930 = vmatprep.subr.bf16.mxu1 %v8548_v9  ;;  %v8150_v8 = vcombine.high %v325_v2, %v333_v3  ;;  %v8152_v9 = vcombine.high %v326_v4, %v334_v5  ;;  %v430_v60 = vld [vmem:[#allocation5 + $0x3f8] sm:$0xff] }
 0x209   : > { %3849 = vmatpush1.bf16.msra.mxu0 %v8545_v15  ;;  %3931 = vmatpush1.bf16.msra.mxu1 %v8547_v16  ;;  %v8149_v15 = vcombine.low %v325_v2, %v333_v3  ;;  %v8151_v16 = vcombine.low %v326_v4, %v334_v5  ;;  %v445_v2 = vld [vmem:[#allocation5 + $0x470] sm:$0xff]  ;;  %v438_v3 = vld [vmem:[#allocation5 + $0x438] sm:$0xff] }
 0x20a   : > { %3850 = vmatprep.subr.bf16.mxu0 %v8562_v17  ;;  %3932 = vmatprep.subr.bf16.mxu1 %v8564_v18  ;;  %v8166_v17 = vcombine.high %v341_v10, %v349_v11  ;;  %v8168_v18 = vcombine.high %v342_v13, %v350_v14  ;;  %v446_v4 = vld [vmem:[#allocation5 + $0x478] sm:$0xff] }
 0x20d   : > { %3851 = vmatpush1.bf16.msra.mxu0 %v8561_v25  ;;  %3933 = vmatpush1.bf16.msra.mxu1 %v8563_v26  ;;  %v8165_v25 = vcombine.low %v341_v10, %v349_v11  ;;  %v8167_v26 = vcombine.low %v342_v13, %v350_v14  ;;  %v461_v10 = vld [vmem:[#allocation5 + $0x4f0] sm:$0xff]  ;;  %v454_v11 = vld [vmem:[#allocation5 + $0x4b8] sm:$0xff] }
 0x20e   : > { %3852 = vmatprep.subr.bf16.mxu0 %v8578_v27  ;;  %3934 = vmatprep.subr.bf16.mxu1 %v8580_v28  ;;  %v8182_v27 = vcombine.high %v357_v19, %v365_v20  ;;  %v8184_v28 = vcombine.high %v358_v21, %v366_v22  ;;  %v462_v13 = vld [vmem:[#allocation5 + $0x4f8] sm:$0xff] }
 0x211   : > { %3853 = vmatpush1.bf16.msra.mxu0 %v8577_v34  ;;  %3935 = vmatpush1.bf16.msra.mxu1 %v8579_v35  ;;  %v8181_v34 = vcombine.low %v357_v19, %v365_v20  ;;  %v8183_v35 = vcombine.low %v358_v21, %v366_v22  ;;  %v477_v19 = vld [vmem:[#allocation5 + $0x570] sm:$0xff]  ;;  %v470_v20 = vld [vmem:[#allocation5 + $0x538] sm:$0xff] }
 0x212   : > { %3854 = vmatprep.subr.bf16.mxu0 %v8594_v38  ;;  %3936 = vmatprep.subr.bf16.mxu1 %v8596_v39  ;;  %v8198_v38 = vcombine.high %v373_v29, %v381_v30  ;;  %v389_v39 = vld [vmem:[#allocation5 + $0x2b0] sm:$0xff]  ;;  %v478_v21 = vld [vmem:[#allocation5 + $0x578] sm:$0xff] }
 0x213   : > { %v8213_v52 = vcombine.low %v389_v39, %v397_v41  ;;  %v493_v29 = vld [vmem:[#allocation5 + $0x5f0] sm:$0xff]  ;;  %v486_v30 = vld [vmem:[#allocation5 + $0x5b8] sm:$0xff] }
 0x215   : > { %3855 = vmatpush1.bf16.msra.mxu0 %v8593_v45  ;;  %3937 = vmatpush1.bf16.msra.mxu1 %v8595_v46  ;;  %v8199_v45 = vcombine.low %v374_v31, %v382_v33  ;;  %v8214_v46 = vcombine.high %v389_v39, %v397_v41  ;;  %v509_v39 = vld [vmem:[#allocation5 + $0x670] sm:$0xff]  ;;  %v502_v41 = vld [vmem:[#allocation5 + $0x638] sm:$0xff] }
 0x216   : > { %3856 = vmatprep.subr.bf16.mxu0 %v8610_v47  ;;  %3938 = vmatprep.subr.bf16.mxu1 %v8612_v48  ;;  %v8216_v47 = vcombine.high %v390_v42, %v398_v43  ;;  %v405_v48 = vld [vmem:[#allocation5 + $0x330] sm:$0xff] }
 0x217   : > { %v8229_v61 = vcombine.low %v405_v48, %v413_v49 }
 0x219   : > { %3857 = vmatpush1.bf16.msra.mxu0 %v8609_v53  ;;  %3939 = vmatpush1.bf16.msra.mxu1 %v8611_v54  ;;  %v8215_v53 = vcombine.low %v390_v42, %v398_v43  ;;  %v8230_v54 = vcombine.high %v405_v48, %v413_v49  ;;  %v510_v42 = vld [vmem:[#allocation5 + $0x678] sm:$0xff]  ;;  %v525_v48 = vld [vmem:[#allocation5 + $0x6f0] sm:$0xff] }
 0x21a   : > { %3858 = vmatprep.subr.bf16.mxu0 %v8626_v55  ;;  %3940 = vmatprep.subr.bf16.mxu1 %v8628_v56  ;;  %v8232_v55 = vcombine.high %v406_v50, %v414_v51  ;;  %v421_v56 = vld [vmem:[#allocation5 + $0x3b0] sm:$0xff]  ;;  %v518_v49 = vld [vmem:[#allocation5 + $0x6b8] sm:$0xff] }
 0x21b   : > { %v8245_v5 = vcombine.low %v421_v56, %v429_v58 }
 0x21d   : > { %3859 = vmatpush1.bf16.msra.mxu0 %v8625_v62  ;;  %3941 = vmatpush1.bf16.msra.mxu1 %v8627_v63  ;;  %v8231_v62 = vcombine.low %v406_v50, %v414_v51  ;;  %v8246_v63 = vcombine.high %v421_v56, %v429_v58  ;;  %v526_v50 = vld [vmem:[#allocation5 + $0x6f8] sm:$0xff]  ;;  %v541_v56 = vld [vmem:[#allocation5 + $0x770] sm:$0xff] }
 0x21e   : > { %3951 = vmatprep.subr.bf16.mxu0 %v8134_v0  ;;  %4033 = vmatprep.subr.bf16.mxu1 %v8136_v1  ;;  %v8248_v0 = vcombine.high %v422_v59, %v430_v60  ;;  %v437_v1 = vld [vmem:[#allocation5 + $0x430] sm:$0xff]  ;;  %v534_v58 = vld [vmem:[#allocation5 + $0x738] sm:$0xff] }
 0x21f   : > { %v8261_v14 = vcombine.low %v437_v1, %v445_v2 }
 0x220   : > { %3861 = vmatmul.mubr.bf16.vlgmr.msra.gmra.mrb[8].mxu0 %v10691_v23  ;;  %3943 = vmatmul.mubr.bf16.vlgmr.msra.gmra.mrb[8].mxu1 %v10691_v23 }
 0x221   : > { %3952 = vmatpush1.bf16.msra.mxu0 %v8133_v6  ;;  %4034 = vmatpush1.bf16.msra.mxu1 %v8135_v7  ;;  %v8247_v6 = vcombine.low %v422_v59, %v430_v60  ;;  %v8262_v7 = vcombine.high %v437_v1, %v445_v2  ;;  %v542_v59 = vld [vmem:[#allocation5 + $0x778] sm:$0xff]  ;;  %v557_v1 = vld [vmem:[#allocation5 + $0x7f0] sm:$0xff] }
 0x222   : > { %3953 = vmatprep.subr.bf16.mxu0 %v8150_v8  ;;  %4035 = vmatprep.subr.bf16.mxu1 %v8152_v9  ;;  %v8264_v8 = vcombine.high %v438_v3, %v446_v4  ;;  %v453_v9 = vld [vmem:[#allocation5 + $0x4b0] sm:$0xff]  ;;  %v550_v2 = vld [vmem:[#allocation5 + $0x7b8] sm:$0xff] }
 0x223   : > { %3983 = vmatprep.mubr.bf16.mxu0 %v10676_v57  ;;  %4065 = vmatprep.mubr.bf16.mxu1 %v10676_v57  ;;  %v8200_v57 = vcombine.high %v374_v31, %v382_v33  ;;  %v8277_v22 = vcombine.low %v453_v9, %v461_v10  ;;  %v494_v31 = vld [vmem:[#allocation5 + $0x5f8] sm:$0xff] }
 0x225   : > { %3954 = vmatpush1.bf16.msra.mxu0 %v8149_v15  ;;  %4036 = vmatpush1.bf16.msra.mxu1 %v8151_v16  ;;  %v8263_v15 = vcombine.low %v438_v3, %v446_v4  ;;  %v8278_v16 = vcombine.high %v453_v9, %v461_v10  ;;  %v558_v3 = vld [vmem:[#allocation5 + $0x7f8] sm:$0xff]  ;;  %v573_v9 = vld [vmem:[#allocation5 + $0x870] sm:$0xff] }
 0x226   : > { %3955 = vmatprep.subr.bf16.mxu0 %v8166_v17  ;;  %4037 = vmatprep.subr.bf16.mxu1 %v8168_v18  ;;  %v8280_v17 = vcombine.high %v454_v11, %v462_v13  ;;  %v469_v18 = vld [vmem:[#allocation5 + $0x530] sm:$0xff]  ;;  %v566_v10 = vld [vmem:[#allocation5 + $0x838] sm:$0xff] }
 0x227   : > { %v8293_v33 = vcombine.low %v469_v18, %v477_v19 }
 0x229   : > { %3956 = vmatpush1.bf16.msra.mxu0 %v8165_v25  ;;  %4038 = vmatpush1.bf16.msra.mxu1 %v8167_v26  ;;  %v8279_v25 = vcombine.low %v454_v11, %v462_v13  ;;  %v8294_v26 = vcombine.high %v469_v18, %v477_v19  ;;  %v574_v11 = vld [vmem:[#allocation5 + $0x878] sm:$0xff]  ;;  %v589_v18 = vld [vmem:[#allocation5 + $0x8f0] sm:$0xff] }
 0x22a   : > { %3957 = vmatprep.subr.bf16.mxu0 %v8182_v27  ;;  %4039 = vmatprep.subr.bf16.mxu1 %v8184_v28  ;;  %v8296_v27 = vcombine.high %v470_v20, %v478_v21  ;;  %v485_v28 = vld [vmem:[#allocation5 + $0x5b0] sm:$0xff]  ;;  %v582_v19 = vld [vmem:[#allocation5 + $0x8b8] sm:$0xff] }
 0x22b   : > { %v8309_v43 = vcombine.low %v485_v28, %v493_v29 }
 0x22d   : > { %3958 = vmatpush1.bf16.msra.mxu0 %v8181_v34  ;;  %4040 = vmatpush1.bf16.msra.mxu1 %v8183_v35  ;;  %v8295_v34 = vcombine.low %v470_v20, %v478_v21  ;;  %v8310_v35 = vcombine.high %v485_v28, %v493_v29  ;;  %v590_v20 = vld [vmem:[#allocation5 + $0x8f8] sm:$0xff]  ;;  %v605_v28 = vld [vmem:[#allocation5 + $0x970] sm:$0xff] }
 0x22e   : > { %3959 = vmatprep.subr.bf16.mxu0 %v8198_v38  ;;  %4041 = vmatprep.subr.bf16.mxu1 %v8200_v57  ;;  %v8312_v38 = vcombine.high %v486_v30, %v494_v31  ;;  %v501_v57 = vld [vmem:[#allocation5 + $0x630] sm:$0xff]  ;;  %v598_v29 = vld [vmem:[#allocation5 + $0x938] sm:$0xff] }
 0x22f   : > { %v8325_v51 = vcombine.low %v501_v57, %v509_v39 }
 0x231   : > { %3960 = vmatpush1.bf16.msra.mxu0 %v8197_v44  ;;  %4042 = vmatpush1.bf16.msra.mxu1 %v8199_v45  ;;  %v8311_v44 = vcombine.low %v486_v30, %v494_v31  ;;  %v8326_v45 = vcombine.high %v501_v57, %v509_v39  ;;  %v606_v30 = vld [vmem:[#allocation5 + $0x978] sm:$0xff]  ;;  %v613_v57 = vld [vmem:[#allocation5 + $0x9b0] sm:$0xff] }
 0x232   : > { %3961 = vmatprep.subr.bf16.mxu0 %v8214_v46  ;;  %4043 = vmatprep.subr.bf16.mxu1 %v8216_v47  ;;  %v8328_v46 = vcombine.high %v502_v41, %v510_v42  ;;  %v517_v47 = vld [vmem:[#allocation5 + $0x6b0] sm:$0xff] }
 0x233   : > { %v8341_v60 = vcombine.low %v517_v47, %v525_v48  ;;  %v621_v39 = vld [vmem:[#allocation5 + $0x9f0] sm:$0xff] }
 0x235   : > { %3962 = vmatpush1.bf16.msra.mxu0 %v8213_v52  ;;  %4044 = vmatpush1.bf16.msra.mxu1 %v8215_v53  ;;  %v8327_v52 = vcombine.low %v502_v41, %v510_v42  ;;  %v8342_v53 = vcombine.high %v517_v47, %v525_v48  ;;  %v614_v41 = vld [vmem:[#allocation5 + $0x9b8] sm:$0xff]  ;;  %v629_v47 = vld [vmem:[#allocation5 + $0xa30] sm:$0xff] }
 0x236   : > { %3963 = vmatprep.subr.bf16.mxu0 %v8230_v54  ;;  %4045 = vmatprep.subr.bf16.mxu1 %v8232_v55  ;;  %v8344_v54 = vcombine.high %v518_v49, %v526_v50  ;;  %v533_v55 = vld [vmem:[#allocation5 + $0x730] sm:$0xff]  ;;  %v622_v42 = vld [vmem:[#allocation5 + $0x9f8] sm:$0xff] }
 0x237   : > { %v8357_v4 = vcombine.low %v533_v55, %v541_v56  ;;  %v637_v48 = vld [vmem:[#allocation5 + $0xa70] sm:$0xff] }
 0x239   : > { %3964 = vmatpush1.bf16.msra.mxu0 %v8229_v61  ;;  %4046 = vmatpush1.bf16.msra.mxu1 %v8231_v62  ;;  %v8343_v61 = vcombine.low %v518_v49, %v526_v50  ;;  %v8358_v62 = vcombine.high %v533_v55, %v541_v56  ;;  %v630_v49 = vld [vmem:[#allocation5 + $0xa38] sm:$0xff]  ;;  %v645_v56 = vld [vmem:[#allocation5 + $0xab0] sm:$0xff] }
 0x23a   : > { %3965 = vmatprep.subr.bf16.mxu0 %v8246_v63  ;;  %4047 = vmatprep.subr.bf16.mxu1 %v8248_v0  ;;  %v8360_v63 = vcombine.high %v534_v58, %v542_v59  ;;  %v549_v0 = vld [vmem:[#allocation5 + $0x7b0] sm:$0xff]  ;;  %v638_v50 = vld [vmem:[#allocation5 + $0xa78] sm:$0xff] }
 0x23b   : > { %v8373_v13 = vcombine.low %v549_v0, %v557_v1  ;;  %v8456_v55 = vcombine.high %v630_v49, %v638_v50 }
 0x23d   : > { %3966 = vmatpush1.bf16.msra.mxu0 %v8245_v5  ;;  %4048 = vmatpush1.bf16.msra.mxu1 %v8247_v6  ;;  %v8359_v5 = vcombine.low %v534_v58, %v542_v59  ;;  %v8374_v6 = vcombine.high %v549_v0, %v557_v1  ;;  %v653_v58 = vld [vmem:[#allocation5 + $0xaf0] sm:$0xff]  ;;  %v646_v59 = vld [vmem:[#allocation5 + $0xab8] sm:$0xff] }
 0x23e   : > { %3967 = vmatprep.subr.bf16.mxu0 %v8262_v7  ;;  %4049 = vmatprep.subr.bf16.mxu1 %v8264_v8  ;;  %v8376_v7 = vcombine.high %v550_v2, %v558_v3  ;;  %v565_v8 = vld [vmem:[#allocation5 + $0x830] sm:$0xff]  ;;  %v8470_v0 = vcombine.high %v645_v56, %v653_v58 }
 0x23f   : > { %v8389_v21 = vcombine.low %v565_v8, %v573_v9 }
 0x241   : > { %3968 = vmatpush1.bf16.msra.mxu0 %v8261_v14  ;;  %4050 = vmatpush1.bf16.msra.mxu1 %v8263_v15  ;;  %v8375_v14 = vcombine.low %v550_v2, %v558_v3  ;;  %v8390_v15 = vcombine.high %v565_v8, %v573_v9  ;;  %v661_v2 = vld [vmem:[#allocation5 + $0xb30] sm:$0xff] }
 0x242   : > { %3969 = vmatprep.subr.bf16.mxu0 %v8278_v16  ;;  %4051 = vmatprep.subr.bf16.mxu1 %v8280_v17  ;;  %v8392_v16 = vcombine.high %v566_v10, %v574_v11  ;;  %v581_v17 = vld [vmem:[#allocation5 + $0x8b0] sm:$0xff] }
 0x243   : > { %v8405_v31 = vcombine.low %v581_v17, %v589_v18  ;;  %v669_v3 = vld [vmem:[#allocation5 + $0xb70] sm:$0xff] }
 0x244   : > { %v8486_v9 = vcombine.high %v661_v2, %v669_v3 }
 0x245   : > { %3970 = vmatpush1.bf16.msra.mxu0 %v8277_v22  ;;  %4052 = vmatpush1.bf16.msra.mxu1 %v8279_v25  ;;  %v8391_v22 = vcombine.low %v566_v10, %v574_v11  ;;  %v8406_v25 = vcombine.high %v581_v17, %v589_v18  ;;  %v678_v17 = vld [vmem:[#allocation5 + $0xbb8] sm:$0xff] }
 0x246   : > { %3971 = vmatprep.subr.bf16.mxu0 %v8294_v26  ;;  %4053 = vmatprep.subr.bf16.mxu1 %v8296_v27  ;;  %v8408_v26 = vcombine.high %v582_v19, %v590_v20  ;;  %v597_v27 = vld [vmem:[#allocation5 + $0x930] sm:$0xff]  ;;  %v686_v18 = vld [vmem:[#allocation5 + $0xbf8] sm:$0xff] }
 0x249   : > { %3972 = vmatpush1.bf16.msra.mxu0 %v8293_v33  ;;  %4054 = vmatpush1.bf16.msra.mxu1 %v8295_v34  ;;  %v819_v33 = vlaneseq  ;;  %v8407_v34 = vcombine.low %v582_v19, %v590_v20  ;;  %v8485_v20 = vcombine.low %v661_v2, %v669_v3 }
 0x24a   : > { %3973 = vmatprep.subr.bf16.mxu0 %v8310_v35  ;;  %4055 = vmatprep.subr.bf16.mxu1 %v8312_v38  ;;  %v8422_v35 = vcombine.high %v597_v27, %v605_v28  ;;  %v8424_v38 = vcombine.high %v598_v29, %v606_v30 }
 0x24d   : > { %3974 = vmatpush1.bf16.msra.mxu0 %v8309_v43  ;;  %4056 = vmatpush1.bf16.msra.mxu1 %v8311_v44  ;;  %v8421_v43 = vcombine.low %v597_v27, %v605_v28  ;;  %v10725_v44 = vshrl.u32 %v819_v33, 7  ;;  %v694_v33 = vld [vmem:[#allocation5 + $0xc38] sm:$0xff] }
 0x24e   : > { %3975 = vmatprep.subr.bf16.mxu0 %v8326_v45  ;;  %4057 = vmatprep.subr.bf16.mxu1 %v8328_v46  ;;  %v8438_v45 = vcombine.high %v613_v57, %v621_v39  ;;  %v8440_v46 = vcombine.high %v614_v41, %v622_v42 }
 0x251   : > { %3976 = vmatpush1.bf16.msra.mxu0 %v8325_v51  ;;  %4058 = vmatpush1.bf16.msra.mxu1 %v8327_v52  ;;  %v8437_v51 = vcombine.low %v613_v57, %v621_v39  ;;  %v10728_v52 = vsub.s32 1, %v10725_v44  ;;  %v8503_v57 = vcombine.low %v678_v17, %v686_v18 }
 0x252   : > { %3977 = vmatprep.subr.bf16.mxu0 %v8342_v53  ;;  %4059 = vmatprep.subr.bf16.mxu1 %v8344_v54  ;;  %v8454_v53 = vcombine.high %v629_v47, %v637_v48  ;;  %v10730_v54 = vld [vmem:[#allocation7] sm:$0xff] }
 0x255   : > { %3978 = vmatpush1.bf16.msra.mxu0 %v8341_v60  ;;  %4060 = vmatpush1.bf16.msra.mxu1 %v8343_v61  ;;  %v654_v60 = vld [vmem:[#allocation5 + $0xaf8] sm:$0xff]  ;;  %v8453_v61 = vcombine.low %v629_v47, %v637_v48 }
 0x256   : > { %3979 = vmatprep.subr.bf16.mxu0 %v8358_v62  ;;  %4061 = vmatprep.subr.bf16.mxu1 %v8360_v63  ;;  %v826_v62 = vrot.slane %v10730_v54, %v10728_v52  ;;  %v8455_v63 = vcombine.low %v630_v49, %v638_v50  ;;  %v8472_v1 = vcombine.high %v646_v59, %v654_v60  ;;  %v725_v50 = vld [vmem:[#allocation5 + $0xd30] sm:$0xff] }
 0x257   : > { %v8471_v8 = vcombine.low %v646_v59, %v654_v60  ;;  %v741_v60 = vld [vmem:[#allocation5 + $0xdb0] sm:$0xff] }
 0x259   : > { %3980 = vmatpush1.bf16.msra.mxu0 %v8357_v4  ;;  %4062 = vmatpush1.bf16.msra.mxu1 %v8359_v5  ;;  %v662_v4 = vld [vmem:[#allocation5 + $0xb38] sm:$0xff] }
 0x25a   : > { %3981 = vmatprep.subr.bf16.mxu0 %v8374_v6  ;;  %4063 = vmatprep.subr.bf16.mxu1 %v8376_v7  ;;  %v670_v5 = vld [vmem:[#allocation5 + $0xb78] sm:$0xff]  ;;  %v8469_v6 = vcombine.low %v645_v56, %v653_v58  ;;  %v10735_v7 = vadd.f32 %v10713_v37, %v826_v62 }
 0x25b   : > { %v8488_v11 = vcombine.high %v662_v4, %v670_v5  ;;  %v742_v62 = vld [vmem:[#allocation5 + $0xdb8] sm:$0xff] }
 0x25d   : > { %3982 = vmatpush1.bf16.msra.mxu0 %v8373_v13  ;;  %4064 = vmatpush1.bf16.msra.mxu1 %v8375_v14  ;;  %v677_v13 = vld [vmem:[#allocation5 + $0xbb0] sm:$0xff] }
 0x25e   : > { %3992 = vmatprep.subr.bf16.mxu0 %v8390_v15  ;;  %4074 = vmatprep.subr.bf16.mxu1 %v8392_v16  ;;  %v685_v14 = vld [vmem:[#allocation5 + $0xbf0] sm:$0xff] }
 0x25f   : > { %v8502_v27 = vcombine.high %v677_v13, %v685_v14 }
 0x260   : > { %3984 = vmatmul.mubr.bf16.vlgmr.msra.gmra.mrb[12].mxu0 %v10681_v12  ;;  %4066 = vmatmul.mubr.bf16.vlgmr.msra.gmra.mrb[12].mxu1 %v10681_v12  ;;  %v8423_v12 = vcombine.low %v598_v29, %v606_v30  ;;  %v8504_v29 = vcombine.high %v678_v17, %v686_v18  ;;  %v693_v30 = vld [vmem:[#allocation5 + $0xc30] sm:$0xff] }
 0x261   : > { %3993 = vmatpush1.bf16.msra.mxu0 %v8389_v21  ;;  %4075 = vmatpush1.bf16.msra.mxu1 %v8391_v22  ;;  %v4116_v21 = vsub.f32 0.0, %v10735_v7 }
 0x262   : > { %3994 = vmatprep.subr.bf16.mxu0 %v8406_v25  ;;  %4076 = vmatprep.subr.bf16.mxu1 %v8408_v26  ;;  %v8487_v26 = vcombine.low %v662_v4, %v670_v5  ;;  %v757_v4 = vld [vmem:[#allocation5 + $0xe30] sm:$0xff] }
 0x263   : > { %4024 = vmatprep.mubr.bf16.mxu0 %v10684_v24  ;;  %4106 = vmatprep.mubr.bf16.mxu1 %v10684_v24  ;;  %v8439_v24 = vcombine.low %v614_v41, %v622_v42  ;;  %v709_v42 = vld [vmem:[#allocation5 + $0xcb0] sm:$0xff] }
 0x264   : > { %v765_v5 = vld [vmem:[#allocation5 + $0xe70] sm:$0xff] }
 0x265   : > { %3995 = vmatpush1.bf16.msra.mxu0 %v8405_v31  ;;  %4077 = vmatpush1.bf16.msra.mxu1 %v8407_v34  ;;  %v701_v31 = vld [vmem:[#allocation5 + $0xc70] sm:$0xff]  ;;  %v702_v34 = vld [vmem:[#allocation5 + $0xc78] sm:$0xff] }
 0x266   : > { %3996 = vmatprep.subr.bf16.mxu0 %v8422_v35  ;;  %4078 = vmatprep.subr.bf16.mxu1 %v8424_v38  ;;  %v8501_v35 = vcombine.low %v677_v13, %v685_v14  ;;  %v4133_v38 = vmul.f32 1.442695, %v4116_v21  ;;  %v8518_v39 = vcombine.high %v693_v30, %v701_v31  ;;  %v8520_v41 = vcombine.high %v694_v33, %v702_v34  ;;  %v774_v21 = vld [vmem:[#allocation5 + $0xeb8] sm:$0xff] }
 0x267   : > { %v8519_v47 = vcombine.low %v694_v33, %v702_v34  ;;  %v8582_v14 = vcombine.high %v757_v4, %v765_v5  ;;  %v798_v33 = vld [vmem:[#allocation5 + $0xf78] sm:$0xff] }
 0x268   : > { %10119 = vpow2.f32 %v4133_v38 }
 0x269   : > { %3997 = vmatpush1.bf16.msra.mxu0 %v8421_v43  ;;  %4079 = vmatpush1.bf16.msra.mxu1 %v8423_v12  ;;  %v717_v43 = vld [vmem:[#allocation5 + $0xcf0] sm:$0xff]  ;;  %v710_v12 = vld [vmem:[#allocation5 + $0xcb8] sm:$0xff] }
 0x26a   : > { %3998 = vmatprep.subr.bf16.mxu0 %v8438_v45  ;;  %4080 = vmatprep.subr.bf16.mxu1 %v8440_v46  ;;  %v718_v45 = vld [vmem:[#allocation5 + $0xcf8] sm:$0xff]  ;;  %v8517_v46 = vcombine.low %v693_v30, %v701_v31  ;;  %v8534_v48 = vcombine.high %v709_v42, %v717_v43  ;;  %v797_v30 = vld [vmem:[#allocation5 + $0xf70] sm:$0xff] }
 0x26b   : > { %v8536_v49 = vcombine.high %v710_v12, %v718_v45  ;;  %v8535_v56 = vcombine.low %v710_v12, %v718_v45  ;;  %v790_v31 = vld [vmem:[#allocation5 + $0xf38] sm:$0xff] }
 0x26c   : > { %v8615_v45 = vcombine.low %v790_v31, %v798_v33 }
 0x26d   : > { %3999 = vmatpush1.bf16.msra.mxu0 %v8437_v51  ;;  %4081 = vmatpush1.bf16.msra.mxu1 %v8439_v24  ;;  %v733_v51 = vld [vmem:[#allocation5 + $0xd70] sm:$0xff]  ;;  %v726_v24 = vld [vmem:[#allocation5 + $0xd38] sm:$0xff] }
 0x26e   : > { %4000 = vmatprep.subr.bf16.mxu0 %v8454_v53  ;;  %4082 = vmatprep.subr.bf16.mxu1 %v8456_v55  ;;  %v734_v53 = vld [vmem:[#allocation5 + $0xd78] sm:$0xff]  ;;  %v8533_v55 = vcombine.low %v709_v42, %v717_v43  ;;  %v8550_v58 = vcombine.high %v725_v50, %v733_v51 }
 0x26f   : > { %v8552_v59 = vcombine.high %v726_v24, %v734_v53  ;;  %v806_v42 = vld [vmem:[#allocation5 + $0xfb8] sm:$0xff] }
 0x270   : > { %v814_v43 = vld [vmem:[#allocation5 + $0xff8] sm:$0xff] }
 0x271   : > { %4001 = vmatpush1.bf16.msra.mxu0 %v8453_v61  ;;  %4083 = vmatpush1.bf16.msra.mxu1 %v8455_v63  ;;  %v749_v61 = vld [vmem:[#allocation5 + $0xdf0] sm:$0xff]  ;;  %v750_v63 = vld [vmem:[#allocation5 + $0xdf8] sm:$0xff] }
 0x272   : > { %4002 = vmatprep.subr.bf16.mxu0 %v8470_v0  ;;  %4084 = vmatprep.subr.bf16.mxu1 %v8472_v1  ;;  %v8549_v0 = vcombine.low %v725_v50, %v733_v51  ;;  %v8551_v1 = vcombine.low %v726_v24, %v734_v53  ;;  %v8566_v2 = vcombine.high %v741_v60, %v749_v61  ;;  %v9353_v51 = vld [vmem:[#allocation8 + $0x4] ss:$16 sps:$4 sm:$0xff]   ;;  %v9356_v24 = vld [vmem:[#allocation8 + $0xc] ss:$16 sps:$4 sm:$0xff]  }
 0x273   : > { %v10737_v10 = vpop.f32.mrb[4].mxu0  ;;  %v10739_v15 = vpop.f32.mrb[4].mxu1  ;;  %v8568_v3 = vcombine.high %v742_v62, %v750_v63  ;;  %v8567_v13 = vcombine.low %v742_v62, %v750_v63  ;;  %v8631_v50 = vcombine.low %v806_v42, %v814_v43  ;;  %v9360_v62 = vld [vmem:[#allocation8 + $0x28] ss:$16 sps:$4 sm:$0xff]   ;;  %v9365_v63 = vld [vmem:[#allocation8 + $0x44] ss:$16 sps:$4 sm:$0xff]  }
 0x274   : > { %v10741_v16 = vpop.f32.mrb[5].mxu0  ;;  %v10743_v19 = vpop.f32.mrb[5].mxu1 }
 0x275   : > { %v3702_v37 = vpop.f32.mrb[6].mxu0  ;;  %4003 = vmatpush1.bf16.msra.mxu0 %v8469_v6  ;;  %v3784_v22 = vpop.f32.mrb[6].mxu1  ;;  %4085 = vmatpush1.bf16.msra.mxu1 %v8471_v8  ;;  %v758_v8 = vld [vmem:[#allocation5 + $0xe38] sm:$0xff] }
 0x276   : > { %v3703_v25 = vpop.f32.mrb[7].mxu0  ;;  %4004 = vmatprep.subr.bf16.mxu0 %v8486_v9  ;;  %v3785_v28 = vpop.f32.mrb[7].mxu1  ;;  %4086 = vmatprep.subr.bf16.mxu1 %v8488_v11  ;;  %v766_v9 = vld [vmem:[#allocation5 + $0xe78] sm:$0xff]  ;;  %v8565_v11 = vcombine.low %v741_v60, %v749_v61  ;;  %v773_v37 = vld [vmem:[#allocation5 + $0xeb0] sm:$0xff] }
 0x277   : > { %v10120_v6 = vpop.eup %10119  ;;  %v8584_v18 = vcombine.high %v758_v8, %v766_v9  ;;  %v782_v22 = vld [vmem:[#allocation5 + $0xef8] sm:$0xff]  ;;  %v8581_v25 = vcombine.low %v757_v4, %v765_v5  ;;  %v9357_v61 = vld [vmem:[#allocation8 + $0x20] ss:$16 sps:$4 sm:$0xff]   ;;  %v10753_v5 = vsub.s32 3, %v10725_v44 }
 0x278   : > { %v4164_v17 = vadd.f32 1.0, %v10120_v6  ;;  %v8600_v28 = vcombine.high %v774_v21, %v782_v22  ;;  %v9362_v60 = vld [vmem:[#allocation8 + $0x2c] ss:$16 sps:$4 sm:$0xff]   ;;  %v9369_v4 = vld [vmem:[#allocation8 + $0x60] ss:$16 sps:$4 sm:$0xff]  }
 0x279   : > { %4005 = vmatpush1.bf16.msra.mxu0 %v8485_v20  ;;  %4087 = vmatpush1.bf16.msra.mxu1 %v8487_v26  ;;  %v781_v20 = vld [vmem:[#allocation5 + $0xef0] sm:$0xff]  ;;  %v8583_v26 = vcombine.low %v758_v8, %v766_v9  ;;  %v9372_v6 = vld [vmem:[#allocation8 + $0x68] ss:$16 sps:$4 sm:$0xff]   ;;  %v9380_v9 = vld [vmem:[#allocation8 + $0x8c] ss:$16 sps:$4 sm:$0xff]  }
 0x27a   : > { %4006 = vmatprep.subr.bf16.mxu0 %v8502_v27  ;;  %4088 = vmatprep.subr.bf16.mxu1 %v8504_v29  ;;  %v8598_v27 = vcombine.high %v773_v37, %v781_v20  ;;  %10121 = vrcp.f32 %v4164_v17  ;;  %v789_v29 = vld [vmem:[#allocation5 + $0xf30] sm:$0xff]  ;;  %v8597_v34 = vcombine.low %v773_v37, %v781_v20  ;;  %v9378_v17 = vld [vmem:[#allocation8 + $0x88] ss:$16 sps:$4 sm:$0xff]   ;;  %v9386_v37 = vld [vmem:[#allocation8 + $0xac] ss:$16 sps:$4 sm:$0xff]  }
 0x27b   : > { %v8614_v38 = vcombine.high %v789_v29, %v797_v30  ;;  %v8613_v12 = vcombine.low %v789_v29, %v797_v30  ;;  %v9377_v8 = vld [vmem:[#allocation8 + $0x84] ss:$16 sps:$4 sm:$0xff]   ;;  %v9387_v29 = vld [vmem:[#allocation8 + $0xc0] ss:$16 sps:$4 sm:$0xff]  }
 0x27d   : > { %4007 = vmatpush1.bf16.msra.mxu0 %v8501_v35  ;;  %4089 = vmatpush1.bf16.msra.mxu1 %v8503_v57  ;;  %v8599_v35 = vcombine.low %v774_v21, %v782_v22  ;;  %v8616_v57 = vcombine.high %v790_v31, %v798_v33  ;;  %v9381_v21 = vld [vmem:[#allocation8 + $0xa0] ss:$16 sps:$4 sm:$0xff]   ;;  %v9395_v31 = vld [vmem:[#allocation8 + $0xe4] ss:$16 sps:$4 sm:$0xff]   ;;  %v9398_v33 = vld [vmem:[#allocation8 + $0xec] ss:$16 sps:$4 sm:$0xff]  }
 0x27e   : > { %4008 = vmatprep.subr.bf16.mxu0 %v8518_v39  ;;  %4090 = vmatprep.subr.bf16.mxu1 %v8520_v41  ;;  %v805_v39 = vld [vmem:[#allocation5 + $0xfb0] sm:$0xff] }
 0x27f   : > { %v813_v41 = vld [vmem:[#allocation5 + $0xff0] sm:$0xff] }
 0x281   : > { %4009 = vmatpush1.bf16.msra.mxu0 %v8517_v46  ;;  %4091 = vmatpush1.bf16.msra.mxu1 %v8519_v47  ;;  %v8630_v46 = vcombine.high %v805_v39, %v813_v41  ;;  %v8632_v47 = vcombine.high %v806_v42, %v814_v43  ;;  %v9402_v42 = vld [vmem:[#allocation8 + $0x108] ss:$16 sps:$4 sm:$0xff]   ;;  %v9407_v43 = vld [vmem:[#allocation8 + $0x124] ss:$16 sps:$4 sm:$0xff]  }
 0x282   : > { %4010 = vmatprep.subr.bf16.mxu0 %v8534_v48  ;;  %4092 = vmatprep.subr.bf16.mxu1 %v8536_v49  ;;  %v8629_v49 = vcombine.low %v805_v39, %v813_v41  ;;  %v9404_v39 = vld [vmem:[#allocation8 + $0x10c] ss:$16 sps:$4 sm:$0xff]   ;;  %v9399_v41 = vld [vmem:[#allocation8 + $0x100] ss:$16 sps:$4 sm:$0xff]  }
 0x284   : > { %v10122_v48 = vpop.eup %10121 }
 0x285   : > { %4011 = vmatpush1.bf16.msra.mxu0 %v8533_v55  ;;  %4093 = vmatpush1.bf16.msra.mxu1 %v8535_v56  ;;  %v4196_v53 = vmul.f32 %v10122_v48, %v10735_v7  ;;  %v9351_v55 = vld [vmem:[#allocation8] ss:$16 sps:$4 sm:$0xff]   ;;  %v9354_v56 = vld [vmem:[#allocation8 + $0x8] ss:$16 sps:$4 sm:$0xff]   ;;  %v9368_v7 = vld [vmem:[#allocation8 + $0x4c] ss:$16 sps:$4 sm:$0xff]  }
 0x286   : > { %4012 = vmatprep.subr.bf16.mxu0 %v8550_v58  ;;  %4094 = vmatprep.subr.bf16.mxu1 %v8552_v59  ;;  %v9359_v58 = vld [vmem:[#allocation8 + $0x24] ss:$16 sps:$4 sm:$0xff]   ;;  %v9416_v48 = vld [vmem:[#allocation8 + $0x14c] ss:$16 sps:$4 sm:$0xff]  }
 0x287   : > { %v4212_v59 = vpack.c.bf16 %v4196_v53, %v4196_v53  ;;  %v9422_v53 = vld [vmem:[#allocation8 + $0x16c] ss:$16 sps:$4 sm:$0xff]  }
 0x289   : > { %4013 = vmatpush1.bf16.msra.mxu0 %v8549_v0  ;;  %4095 = vmatpush1.bf16.msra.mxu1 %v8551_v1  ;;  %v9363_v0 = vld [vmem:[#allocation8 + $0x40] ss:$16 sps:$4 sm:$0xff]   ;;  %v9366_v1 = vld [vmem:[#allocation8 + $0x48] ss:$16 sps:$4 sm:$0xff]  }
 0x28a   : > { %4014 = vmatprep.subr.bf16.mxu0 %v8566_v2  ;;  %4096 = vmatprep.subr.bf16.mxu1 %v8568_v3  ;;  %v9371_v2 = vld [vmem:[#allocation8 + $0x64] ss:$16 sps:$4 sm:$0xff]   ;;  %v9374_v3 = vld [vmem:[#allocation8 + $0x6c] ss:$16 sps:$4 sm:$0xff]  }
 0x28d   : > { %4015 = vmatpush1.bf16.msra.mxu0 %v8565_v11  ;;  %4097 = vmatpush1.bf16.msra.mxu1 %v8567_v13  ;;  %v9375_v13 = vld [vmem:[#allocation8 + $0x80] ss:$16 sps:$4 sm:$0xff]  }
 0x28e   : > { %4016 = vmatprep.subr.bf16.mxu0 %v8582_v14  ;;  %4098 = vmatprep.subr.bf16.mxu1 %v8584_v18  ;;  %v834_v14 = vrot.slane %v10730_v54, %v10753_v5  ;;  %v9383_v18 = vld [vmem:[#allocation8 + $0xa4] ss:$16 sps:$4 sm:$0xff]  }
 0x290   : > { %v10763_v22 = vadd.f32 %v10715_v40, %v834_v14  ;;  %v9446_v14 = vld [vmem:[#allocation8 + $0x1ec] ss:$16 sps:$4 sm:$0xff]  }
 0x291   : > { %4017 = vmatpush1.bf16.msra.mxu0 %v8581_v25  ;;  %4099 = vmatpush1.bf16.msra.mxu1 %v8583_v26  ;;  %v9384_v25 = vld [vmem:[#allocation8 + $0xa8] ss:$16 sps:$4 sm:$0xff]   ;;  %v9389_v26 = vld [vmem:[#allocation8 + $0xc4] ss:$16 sps:$4 sm:$0xff]  }
 0x292   : > { %4018 = vmatprep.subr.bf16.mxu0 %v8598_v27  ;;  %4100 = vmatprep.subr.bf16.mxu1 %v8600_v28  ;;  %v9392_v27 = vld [vmem:[#allocation8 + $0xcc] ss:$16 sps:$4 sm:$0xff]   ;;  %v4118_v30 = vsub.f32 0.0, %v10763_v22 }
 0x295   : > { %4019 = vmatpush1.bf16.msra.mxu0 %v8597_v34  ;;  %4101 = vmatpush1.bf16.msra.mxu1 %v8599_v35  ;;  %v9393_v34 = vld [vmem:[#allocation8 + $0xe0] ss:$16 sps:$4 sm:$0xff]   ;;  %v4137_v35 = vmul.f32 1.442695, %v4118_v30  ;;  %v9450_v30 = vld [vmem:[#allocation8 + $0x208] ss:$16 sps:$4 sm:$0xff]  }
 0x296   : > { %4020 = vmatprep.subr.bf16.mxu0 %v8614_v38  ;;  %4102 = vmatprep.subr.bf16.mxu1 %v8616_v57  ;;  %v9396_v38 = vld [vmem:[#allocation8 + $0xe8] ss:$16 sps:$4 sm:$0xff]   ;;  %v9401_v57 = vld [vmem:[#allocation8 + $0x104] ss:$16 sps:$4 sm:$0xff]  }
 0x299   : > { %4021 = vmatpush1.bf16.msra.mxu0 %v8613_v12  ;;  %4103 = vmatpush1.bf16.msra.mxu1 %v8615_v45  ;;  %v9410_v12 = vld [vmem:[#allocation8 + $0x12c] ss:$16 sps:$4 sm:$0xff]   ;;  %v9405_v45 = vld [vmem:[#allocation8 + $0x120] ss:$16 sps:$4 sm:$0xff]  }
 0x29a   : > { %4022 = vmatprep.subr.bf16.mxu0 %v8630_v46  ;;  %4104 = vmatprep.subr.bf16.mxu1 %v8632_v47  ;;  %v9408_v46 = vld [vmem:[#allocation8 + $0x128] ss:$16 sps:$4 sm:$0xff]   ;;  %v9413_v47 = vld [vmem:[#allocation8 + $0x144] ss:$16 sps:$4 sm:$0xff]  }
 0x29d   : > { %4023 = vmatpush1.bf16.msra.mxu0 %v8629_v49  ;;  %4105 = vmatpush1.bf16.msra.mxu1 %v8631_v50  ;;  %v9411_v49 = vld [vmem:[#allocation8 + $0x140] ss:$16 sps:$4 sm:$0xff]  }
 0x29e   : > { %7321 = vmatprep.subr.bf16.mxu0 %v9353_v51  ;;  %7649 = vmatprep.subr.bf16.mxu1 %v9356_v24  ;;  %v9414_v51 = vld [vmem:[#allocation8 + $0x148] ss:$16 sps:$4 sm:$0xff]   ;;  %v9419_v24 = vld [vmem:[#allocation8 + $0x164] ss:$16 sps:$4 sm:$0xff]  }
 0x2a0   : > { %4025 = vmatmul.mubr.bf16.vlgmr.msra.gmra.mrb[12].mxu0 %v10691_v23  ;;  %4107 = vmatmul.mubr.bf16.vlgmr.msra.gmra.mrb[12].mxu1 %v10691_v23  ;;  %v10750_v23 = vsub.s32 0, %v10725_v44 }
 0x2a1   : > { %7322 = vmatpush1.bf16.msra.mxu0 %v9351_v55  ;;  %7353 = vmatprep.mubr.bf16.mxu0 %v4212_v59 }
 0x2a2   : > { %7650 = vmatpush1.bf16.msra.mxu1 %v9354_v56  ;;  %7681 = vmatprep.mubr.bf16.mxu1 %v4212_v59  ;;  %v822_v11 = vrot.slane %v10730_v54, %v10750_v23  ;;  %v9420_v59 = vld [vmem:[#allocation8 + $0x168] ss:$16 sps:$4 sm:$0xff]  }
 0x2a3   : > { %7323 = vmatprep.subr.bf16.mxu0 %v9359_v58  ;;  %7651 = vmatprep.subr.bf16.mxu1 %v9362_v60  ;;  %v9417_v58 = vld [vmem:[#allocation8 + $0x160] ss:$16 sps:$4 sm:$0xff]   ;;  %v9425_v60 = vld [vmem:[#allocation8 + $0x184] ss:$16 sps:$4 sm:$0xff]  }
 0x2a4   : > { %v10760_v20 = vadd.f32 %v10709_v32, %v822_v11  ;;  %v9390_v32 = vld [vmem:[#allocation8 + $0xc8] ss:$16 sps:$4 sm:$0xff]   ;;  %v9443_v11 = vld [vmem:[#allocation8 + $0x1e4] ss:$16 sps:$4 sm:$0xff]  }
 0x2a5   : > { %7324 = vmatpush1.bf16.msra.mxu0 %v9357_v61 }
 0x2a6   : > { %7652 = vmatpush1.bf16.msra.mxu1 %v9360_v62  ;;  %7325 = vmatprep.subr.bf16.mxu0 %v9365_v63  ;;  %v4115_v28 = vsub.f32 0.0, %v10760_v20  ;;  %v9428_v62 = vld [vmem:[#allocation8 + $0x18c] ss:$16 sps:$4 sm:$0xff]   ;;  %v9423_v63 = vld [vmem:[#allocation8 + $0x180] ss:$16 sps:$4 sm:$0xff]  }
 0x2a7   : > { %7653 = vmatprep.subr.bf16.mxu1 %v9368_v7  ;;  %v9426_v7 = vld [vmem:[#allocation8 + $0x188] ss:$16 sps:$4 sm:$0xff]  }
 0x2a8   : > { %v4131_v40 = vmul.f32 1.442695, %v4115_v28  ;;  %v9447_v28 = vld [vmem:[#allocation8 + $0x200] ss:$16 sps:$4 sm:$0xff]  }
 0x2a9   : > { %7326 = vmatpush1.bf16.msra.mxu0 %v9363_v0  ;;  %v9431_v0 = vld [vmem:[#allocation8 + $0x1a4] ss:$16 sps:$4 sm:$0xff]  }
 0x2aa   : > { %7654 = vmatpush1.bf16.msra.mxu1 %v9366_v1  ;;  %7327 = vmatprep.subr.bf16.mxu0 %v9371_v2  ;;  %10123 = vpow2.f32 %v4131_v40  ;;  %v9434_v1 = vld [vmem:[#allocation8 + $0x1ac] ss:$16 sps:$4 sm:$0xff]   ;;  %v9429_v2 = vld [vmem:[#allocation8 + $0x1a0] ss:$16 sps:$4 sm:$0xff]   ;;  %v9456_v40 = vld [vmem:[#allocation8 + $0x228] ss:$16 sps:$4 sm:$0xff]  }
 0x2ab   : > { %7655 = vmatprep.subr.bf16.mxu1 %v9374_v3  ;;  %10125 = vpow2.f32 %v4137_v35  ;;  %v9432_v3 = vld [vmem:[#allocation8 + $0x1a8] ss:$16 sps:$4 sm:$0xff]   ;;  %v9459_v35 = vld [vmem:[#allocation8 + $0x240] ss:$16 sps:$4 sm:$0xff]  }
 0x2ad   : > { %7328 = vmatpush1.bf16.msra.mxu0 %v9369_v4  ;;  %v9437_v4 = vld [vmem:[#allocation8 + $0x1c4] ss:$16 sps:$4 sm:$0xff]  }
 0x2ae   : > { %7656 = vmatpush1.bf16.msra.mxu1 %v9372_v6  ;;  %7329 = vmatprep.subr.bf16.mxu0 %v9377_v8  ;;  %v9440_v6 = vld [vmem:[#allocation8 + $0x1cc] ss:$16 sps:$4 sm:$0xff]   ;;  %v9435_v8 = vld [vmem:[#allocation8 + $0x1c0] ss:$16 sps:$4 sm:$0xff]  }
 0x2af   : > { %7657 = vmatprep.subr.bf16.mxu1 %v9380_v9  ;;  %v9438_v9 = vld [vmem:[#allocation8 + $0x1c8] ss:$16 sps:$4 sm:$0xff]  }
 0x2b1   : > { %7330 = vmatpush1.bf16.msra.mxu0 %v9375_v13 }
 0x2b2   : > { %7658 = vmatpush1.bf16.msra.mxu1 %v9378_v17  ;;  %7331 = vmatprep.subr.bf16.mxu0 %v9383_v18  ;;  %v9441_v18 = vld [vmem:[#allocation8 + $0x1e0] ss:$16 sps:$4 sm:$0xff]  }
 0x2b3   : > { %7659 = vmatprep.subr.bf16.mxu1 %v9386_v37 }
 0x2b4   : > { %v10124_v50 = vpop.eup %10123 }
 0x2b5   : > { %7332 = vmatpush1.bf16.msra.mxu0 %v9381_v21  ;;  %v10126_v55 = vpop.eup %10125  ;;  %v4163_v56 = vadd.f32 1.0, %v10124_v50  ;;  %v9444_v21 = vld [vmem:[#allocation8 + $0x1e8] ss:$16 sps:$4 sm:$0xff]  }
 0x2b6   : > { %7660 = vmatpush1.bf16.msra.mxu1 %v9384_v25  ;;  %7333 = vmatprep.subr.bf16.mxu0 %v9389_v26  ;;  %v4166_v61 = vadd.f32 1.0, %v10126_v55  ;;  %v9449_v25 = vld [vmem:[#allocation8 + $0x204] ss:$16 sps:$4 sm:$0xff]   ;;  %v9452_v26 = vld [vmem:[#allocation8 + $0x20c] ss:$16 sps:$4 sm:$0xff]  }
 0x2b7   : > { %7661 = vmatprep.subr.bf16.mxu1 %v9392_v27  ;;  %10127 = vrcp.f32 %v4163_v56  ;;  %v9474_v50 = vld [vmem:[#allocation8 + $0x288] ss:$16 sps:$4 sm:$0xff]   ;;  %v9477_v56 = vld [vmem:[#allocation8 + $0x2a0] ss:$16 sps:$4 sm:$0xff]  }
 0x2b8   : > { %10129 = vrcp.f32 %v4166_v61 }
 0x2b9   : > { %7334 = vmatpush1.bf16.msra.mxu0 %v9387_v29 }
 0x2ba   : > { %7662 = vmatpush1.bf16.msra.mxu1 %v9390_v32  ;;  %7335 = vmatprep.subr.bf16.mxu0 %v9395_v31  ;;  %v9455_v32 = vld [vmem:[#allocation8 + $0x224] ss:$16 sps:$4 sm:$0xff]  }
 0x2bb   : > { %7663 = vmatprep.subr.bf16.mxu1 %v9398_v33  ;;  %v9458_v33 = vld [vmem:[#allocation8 + $0x22c] ss:$16 sps:$4 sm:$0xff]  }
 0x2bd   : > { %7336 = vmatpush1.bf16.msra.mxu0 %v9393_v34  ;;  %v9461_v34 = vld [vmem:[#allocation8 + $0x244] ss:$16 sps:$4 sm:$0xff]  }
 0x2be   : > { %7664 = vmatpush1.bf16.msra.mxu1 %v9396_v38  ;;  %7337 = vmatprep.subr.bf16.mxu0 %v9401_v57  ;;  %v9462_v38 = vld [vmem:[#allocation8 + $0x248] ss:$16 sps:$4 sm:$0xff]   ;;  %v9467_v57 = vld [vmem:[#allocation8 + $0x264] ss:$16 sps:$4 sm:$0xff]  }
 0x2bf   : > { %7665 = vmatprep.subr.bf16.mxu1 %v9404_v39  ;;  %v9470_v39 = vld [vmem:[#allocation8 + $0x26c] ss:$16 sps:$4 sm:$0xff]  }
 0x2c1   : > { %7338 = vmatpush1.bf16.msra.mxu0 %v9399_v41  ;;  %v10128_v13 = vpop.eup %10127  ;;  %v10770_v41 = vsub.s32 2, %v10725_v44 }
 0x2c2   : > { %7666 = vmatpush1.bf16.msra.mxu1 %v9402_v42  ;;  %7339 = vmatprep.subr.bf16.mxu0 %v9407_v43  ;;  %v10130_v17 = vpop.eup %10129  ;;  %v4195_v37 = vmul.f32 %v10128_v13, %v10760_v20  ;;  %v9453_v20 = vld [vmem:[#allocation8 + $0x220] ss:$16 sps:$4 sm:$0xff]   ;;  %v841_v42 = vsub.s32 5, %v10725_v44 }
 0x2c3   : > { %7667 = vmatprep.subr.bf16.mxu1 %v9410_v12  ;;  %v4198_v27 = vmul.f32 %v10130_v17, %v10763_v22  ;;  %v9464_v22 = vld [vmem:[#allocation8 + $0x24c] ss:$16 sps:$4 sm:$0xff]   ;;  %v9465_v43 = vld [vmem:[#allocation8 + $0x260] ss:$16 sps:$4 sm:$0xff]   ;;  %v9468_v12 = vld [vmem:[#allocation8 + $0x268] ss:$16 sps:$4 sm:$0xff]  }
 0x2c4   : > { %v4211_v29 = vpack.c.bf16 %v4195_v37, %v4195_v37  ;;  %v9497_v17 = vld [vmem:[#allocation8 + $0x304] ss:$16 sps:$4 sm:$0xff]   ;;  %v9495_v37 = vld [vmem:[#allocation8 + $0x300] ss:$16 sps:$4 sm:$0xff]  }
 0x2c5   : > { %7340 = vmatpush1.bf16.msra.mxu0 %v9405_v45  ;;  %v4214_v31 = vpack.c.bf16 %v4198_v27, %v4198_v27  ;;  %v9473_v45 = vld [vmem:[#allocation8 + $0x284] ss:$16 sps:$4 sm:$0xff]   ;;  %v9501_v27 = vld [vmem:[#allocation8 + $0x320] ss:$16 sps:$4 sm:$0xff]  }
 0x2c6   : > { %7668 = vmatpush1.bf16.msra.mxu1 %v9408_v46  ;;  %7341 = vmatprep.subr.bf16.mxu0 %v9413_v47  ;;  %v9476_v46 = vld [vmem:[#allocation8 + $0x28c] ss:$16 sps:$4 sm:$0xff]   ;;  %v830_v47 = vrot.slane %v10730_v54, %v10770_v41 }
 0x2c7   : > { %7669 = vmatprep.subr.bf16.mxu1 %v9416_v48  ;;  %v842_v48 = vrot.slane %v10730_v54, %v841_v42  ;;  %v9485_v54 = vld [vmem:[#allocation8 + $0x2c4] ss:$16 sps:$4 sm:$0xff]  }
 0x2c9   : > { %7342 = vmatpush1.bf16.msra.mxu0 %v9411_v49  ;;  %v9471_v49 = vld [vmem:[#allocation8 + $0x280] ss:$16 sps:$4 sm:$0xff]   ;;  %v10782_v55 = vadd.f32 %v10741_v16, %v842_v48 }
 0x2ca   : > { %7670 = vmatpush1.bf16.msra.mxu1 %v9414_v51  ;;  %7343 = vmatprep.subr.bf16.mxu0 %v9419_v24  ;;  %v9479_v51 = vld [vmem:[#allocation8 + $0x2a4] ss:$16 sps:$4 sm:$0xff]   ;;  %v9482_v24 = vld [vmem:[#allocation8 + $0x2ac] ss:$16 sps:$4 sm:$0xff]   ;;  %v9525_v48 = vld [vmem:[#allocation8 + $0x3a0] ss:$16 sps:$4 sm:$0xff]  }
 0x2cb   : > { %7671 = vmatprep.subr.bf16.mxu1 %v9422_v53  ;;  %v10779_v53 = vadd.f32 %v10711_v36, %v830_v47  ;;  %v4120_v36 = vsub.f32 0.0, %v10782_v55  ;;  %v9530_v47 = vld [vmem:[#allocation8 + $0x3ac] ss:$16 sps:$4 sm:$0xff]  }
 0x2cd   : > { %7344 = vmatpush1.bf16.msra.mxu0 %v9417_v58  ;;  %v9480_v58 = vld [vmem:[#allocation8 + $0x2a8] ss:$16 sps:$4 sm:$0xff]   ;;  %v4117_v61 = vsub.f32 0.0, %v10779_v53  ;;  %v4141_v13 = vmul.f32 1.442695, %v4120_v36 }
 0x2ce   : > { %7672 = vmatpush1.bf16.msra.mxu1 %v9420_v59  ;;  %7345 = vmatprep.subr.bf16.mxu0 %v9425_v60  ;;  %v9488_v60 = vld [vmem:[#allocation8 + $0x2cc] ss:$16 sps:$4 sm:$0xff]   ;;  %v9537_v36 = vld [vmem:[#allocation8 + $0x3e0] ss:$16 sps:$4 sm:$0xff]  }
 0x2cf   : > { %7673 = vmatprep.subr.bf16.mxu1 %v9428_v62 }
 0x2d1   : > { %7346 = vmatpush1.bf16.msra.mxu0 %v9423_v63 }
 0x2d2   : > { %7674 = vmatpush1.bf16.msra.mxu1 %v9426_v7  ;;  %7347 = vmatprep.subr.bf16.mxu0 %v9431_v0  ;;  %v9483_v0 = vld [vmem:[#allocation8 + $0x2c0] ss:$16 sps:$4 sm:$0xff]  }
 0x2d3   : > { %7675 = vmatprep.subr.bf16.mxu1 %v9434_v1 }
 0x2d5   : > { %7348 = vmatpush1.bf16.msra.mxu0 %v9429_v2 }
 0x2d6   : > { %7676 = vmatpush1.bf16.msra.mxu1 %v9432_v3  ;;  %7349 = vmatprep.subr.bf16.mxu0 %v9437_v4  ;;  %v9486_v3 = vld [vmem:[#allocation8 + $0x2c8] ss:$16 sps:$4 sm:$0xff]   ;;  %v9491_v4 = vld [vmem:[#allocation8 + $0x2e4] ss:$16 sps:$4 sm:$0xff]  }
 0x2d7   : > { %7677 = vmatprep.subr.bf16.mxu1 %v9440_v6 }
 0x2d9   : > { %7350 = vmatpush1.bf16.msra.mxu0 %v9435_v8  ;;  %v9494_v8 = vld [vmem:[#allocation8 + $0x2ec] ss:$16 sps:$4 sm:$0xff]  }
 0x2da   : > { %7678 = vmatpush1.bf16.msra.mxu1 %v9438_v9  ;;  %7351 = vmatprep.subr.bf16.mxu0 %v9443_v11  ;;  %v4135_v9 = vmul.f32 1.442695, %v4117_v61  ;;  %v9489_v11 = vld [vmem:[#allocation8 + $0x2e0] ss:$16 sps:$4 sm:$0xff]  }
 0x2db   : > { %7679 = vmatprep.subr.bf16.mxu1 %v9446_v14  ;;  %v9492_v14 = vld [vmem:[#allocation8 + $0x2e8] ss:$16 sps:$4 sm:$0xff]  }
 0x2dc   : > { %10131 = vpow2.f32 %v4135_v9  ;;  %v9551_v9 = vld [vmem:[#allocation8 + $0x424] ss:$16 sps:$4 sm:$0xff]  }
 0x2dd   : > { %7352 = vmatpush1.bf16.msra.mxu0 %v9441_v18  ;;  %v9500_v18 = vld [vmem:[#allocation8 + $0x30c] ss:$16 sps:$4 sm:$0xff]   ;;  %10133 = vpow2.f32 %v4141_v13 }
 0x2de   : > { %7680 = vmatpush1.bf16.msra.mxu1 %v9444_v21  ;;  %7362 = vmatprep.subr.bf16.mxu0 %v9449_v25  ;;  %v9498_v21 = vld [vmem:[#allocation8 + $0x308] ss:$16 sps:$4 sm:$0xff]   ;;  %v9503_v25 = vld [vmem:[#allocation8 + $0x324] ss:$16 sps:$4 sm:$0xff]   ;;  %v9554_v13 = vld [vmem:[#allocation8 + $0x42c] ss:$16 sps:$4 sm:$0xff]  }
 0x2df   : > { %7690 = vmatprep.subr.bf16.mxu1 %v9452_v26  ;;  %v9506_v26 = vld [vmem:[#allocation8 + $0x32c] ss:$16 sps:$4 sm:$0xff]  }
 0x2e0   : > { %7354 = vmatmul.mubr.bf16.vlgmr.msra.gmra.mrb[16].mxu0 %v4211_v29 }
 0x2e1   : > { %7682 = vmatmul.mubr.bf16.vlgmr.msra.gmra.mrb[16].mxu1 %v4211_v29  ;;  %7363 = vmatpush1.bf16.msra.mxu0 %v9447_v28  ;;  %v9504_v28 = vld [vmem:[#allocation8 + $0x328] ss:$16 sps:$4 sm:$0xff]   ;;  %v9509_v29 = vld [vmem:[#allocation8 + $0x344] ss:$16 sps:$4 sm:$0xff]  }
 0x2e2   : > { %7394 = vmatprep.mubr.bf16.mxu0 %v4214_v31  ;;  %7691 = vmatpush1.bf16.msra.mxu1 %v9450_v30  ;;  %v9512_v30 = vld [vmem:[#allocation8 + $0x34c] ss:$16 sps:$4 sm:$0xff]  }
 0x2e3   : > { %7722 = vmatprep.mubr.bf16.mxu1 %v4214_v31  ;;  %7364 = vmatprep.subr.bf16.mxu0 %v9455_v32  ;;  %v9507_v32 = vld [vmem:[#allocation8 + $0x340] ss:$16 sps:$4 sm:$0xff]  }
 0x2e4   : > { %7692 = vmatprep.subr.bf16.mxu1 %v9458_v33  ;;  %v9510_v33 = vld [vmem:[#allocation8 + $0x348] ss:$16 sps:$4 sm:$0xff]  }
 0x2e5   : > { %7365 = vmatpush1.bf16.msra.mxu0 %v9453_v20  ;;  %v9515_v20 = vld [vmem:[#allocation8 + $0x364] ss:$16 sps:$4 sm:$0xff]  }
 0x2e6   : > { %7693 = vmatpush1.bf16.msra.mxu1 %v9456_v40  ;;  %7366 = vmatprep.subr.bf16.mxu0 %v9461_v34  ;;  %v10132_v31 = vpop.eup %10131  ;;  %v9518_v40 = vld [vmem:[#allocation8 + $0x36c] ss:$16 sps:$4 sm:$0xff]  }
 0x2e7   : > { %7694 = vmatprep.subr.bf16.mxu1 %v9464_v22  ;;  %v10134_v34 = vpop.eup %10133  ;;  %v4165_v22 = vadd.f32 1.0, %v10132_v31  ;;  %v10798_v31 = vld [vmem:[#allocation7] sm:$0xff] }
 0x2e9   : > { %7367 = vmatpush1.bf16.msra.mxu0 %v9459_v35  ;;  %v9513_v35 = vld [vmem:[#allocation8 + $0x360] ss:$16 sps:$4 sm:$0xff]   ;;  %10135 = vrcp.f32 %v4165_v22  ;;  %v9575_v22 = vld [vmem:[#allocation8 + $0x4a4] ss:$16 sps:$4 sm:$0xff]  }
 0x2ea   : > { %7695 = vmatpush1.bf16.msra.mxu1 %v9462_v38  ;;  %7368 = vmatprep.subr.bf16.mxu0 %v9467_v57  ;;  %v9516_v38 = vld [vmem:[#allocation8 + $0x368] ss:$16 sps:$4 sm:$0xff]   ;;  %v9521_v57 = vld [vmem:[#allocation8 + $0x384] ss:$16 sps:$4 sm:$0xff]  }
 0x2eb   : > { %7696 = vmatprep.subr.bf16.mxu1 %v9470_v39  ;;  %v4168_v39 = vadd.f32 1.0, %v10134_v34  ;;  %v9570_v34 = vld [vmem:[#allocation8 + $0x488] ss:$16 sps:$4 sm:$0xff]  }
 0x2ed   : > { %7369 = vmatpush1.bf16.msra.mxu0 %v9465_v43  ;;  %v9524_v43 = vld [vmem:[#allocation8 + $0x38c] ss:$16 sps:$4 sm:$0xff]   ;;  %10137 = vrcp.f32 %v4168_v39 }
 0x2ee   : > { %7697 = vmatpush1.bf16.msra.mxu1 %v9468_v12  ;;  %7370 = vmatprep.subr.bf16.mxu0 %v9473_v45  ;;  %v9519_v12 = vld [vmem:[#allocation8 + $0x380] ss:$16 sps:$4 sm:$0xff]   ;;  %v9522_v45 = vld [vmem:[#allocation8 + $0x388] ss:$16 sps:$4 sm:$0xff]  }
 0x2ef   : > { %7698 = vmatprep.subr.bf16.mxu1 %v9476_v46  ;;  %v9527_v46 = vld [vmem:[#allocation8 + $0x3a4] ss:$16 sps:$4 sm:$0xff]  }
 0x2f1   : > { %7371 = vmatpush1.bf16.msra.mxu0 %v9471_v49  ;;  %v9528_v49 = vld [vmem:[#allocation8 + $0x3a8] ss:$16 sps:$4 sm:$0xff]  }
 0x2f2   : > { %7699 = vmatpush1.bf16.msra.mxu1 %v9474_v50  ;;  %7372 = vmatprep.subr.bf16.mxu0 %v9479_v51  ;;  %v9533_v50 = vld [vmem:[#allocation8 + $0x3c4] ss:$16 sps:$4 sm:$0xff]   ;;  %v9536_v51 = vld [vmem:[#allocation8 + $0x3cc] ss:$16 sps:$4 sm:$0xff]  }
 0x2f3   : > { %v10784_v59 = vpop.f32.mrb[8].mxu0  ;;  %7700 = vmatprep.subr.bf16.mxu1 %v9482_v24  ;;  %v10787_v62 = vpop.f32.mrb[8].mxu1  ;;  %v9531_v24 = vld [vmem:[#allocation8 + $0x3c0] ss:$16 sps:$4 sm:$0xff]  }
 0x2f4   : > { %v10789_v63 = vpop.f32.mrb[9].mxu0  ;;  %v10792_v16 = vpop.f32.mrb[9].mxu1 }
 0x2f5   : > { %v3866_v7 = vpop.f32.mrb[10].mxu0  ;;  %7373 = vmatpush1.bf16.msra.mxu0 %v9477_v56  ;;  %v3948_v1 = vpop.f32.mrb[10].mxu1  ;;  %v9534_v56 = vld [vmem:[#allocation8 + $0x3c8] ss:$16 sps:$4 sm:$0xff]  }
 0x2f6   : > { %7701 = vmatpush1.bf16.msra.mxu1 %v9480_v58  ;;  %v3867_v2 = vpop.f32.mrb[11].mxu0  ;;  %7374 = vmatprep.subr.bf16.mxu0 %v9485_v54  ;;  %v3949_v6 = vpop.f32.mrb[11].mxu1  ;;  %v9539_v58 = vld [vmem:[#allocation8 + $0x3e4] ss:$16 sps:$4 sm:$0xff]  }
 0x2f7   : > { %7702 = vmatprep.subr.bf16.mxu1 %v9488_v60  ;;  %v10136_v54 = vpop.eup %10135  ;;  %v9542_v60 = vld [vmem:[#allocation8 + $0x3ec] ss:$16 sps:$4 sm:$0xff]   ;;  %v9545_v1 = vld [vmem:[#allocation8 + $0x404] ss:$16 sps:$4 sm:$0xff]  }
 0x2f8   : > { %v10138_v61 = vpop.eup %10137  ;;  %v4197_v7 = vmul.f32 %v10136_v54, %v10779_v53  ;;  %v9548_v2 = vld [vmem:[#allocation8 + $0x40c] ss:$16 sps:$4 sm:$0xff]   ;;  %v9549_v53 = vld [vmem:[#allocation8 + $0x420] ss:$16 sps:$4 sm:$0xff]  }
 0x2f9   : > { %7375 = vmatpush1.bf16.msra.mxu0 %v9483_v0  ;;  %v9540_v0 = vld [vmem:[#allocation8 + $0x3e8] ss:$16 sps:$4 sm:$0xff]   ;;  %v9596_v54 = vld [vmem:[#allocation8 + $0x50c] ss:$16 sps:$4 sm:$0xff]  }
 0x2fa   : > { %7703 = vmatpush1.bf16.msra.mxu1 %v9486_v3  ;;  %7376 = vmatprep.subr.bf16.mxu0 %v9491_v4  ;;  %v4200_v3 = vmul.f32 %v10138_v61, %v10782_v55  ;;  %v9543_v4 = vld [vmem:[#allocation8 + $0x400] ss:$16 sps:$4 sm:$0xff]   ;;  %v4213_v6 = vpack.c.bf16 %v4197_v7, %v4197_v7  ;;  %v9560_v55 = vld [vmem:[#allocation8 + $0x44c] ss:$16 sps:$4 sm:$0xff]   ;;  %v9594_v61 = vld [vmem:[#allocation8 + $0x508] ss:$16 sps:$4 sm:$0xff]  }
 0x2fb   : > { %7704 = vmatprep.subr.bf16.mxu1 %v9494_v8  ;;  %v9546_v8 = vld [vmem:[#allocation8 + $0x408] ss:$16 sps:$4 sm:$0xff]   ;;  %v9602_v7 = vld [vmem:[#allocation8 + $0x52c] ss:$16 sps:$4 sm:$0xff]  }
 0x2fd   : > { %7377 = vmatpush1.bf16.msra.mxu0 %v9489_v11  ;;  %v4216_v11 = vpack.c.bf16 %v4200_v3, %v4200_v3  ;;  %v9608_v3 = vld [vmem:[#allocation8 + $0x54c] ss:$16 sps:$4 sm:$0xff]  }
 0x2fe   : > { %7705 = vmatpush1.bf16.msra.mxu1 %v9492_v14  ;;  %7378 = vmatprep.subr.bf16.mxu0 %v9497_v17  ;;  %v9552_v14 = vld [vmem:[#allocation8 + $0x428] ss:$16 sps:$4 sm:$0xff]   ;;  %v9557_v17 = vld [vmem:[#allocation8 + $0x444] ss:$16 sps:$4 sm:$0xff]  }
 0x2ff   : > { %7706 = vmatprep.subr.bf16.mxu1 %v9500_v18  ;;  %v9555_v18 = vld [vmem:[#allocation8 + $0x440] ss:$16 sps:$4 sm:$0xff]  }
 0x301   : > { %7379 = vmatpush1.bf16.msra.mxu0 %v9495_v37  ;;  %v9558_v37 = vld [vmem:[#allocation8 + $0x448] ss:$16 sps:$4 sm:$0xff]  }
 0x302   : > { %7707 = vmatpush1.bf16.msra.mxu1 %v9498_v21  ;;  %7380 = vmatprep.subr.bf16.mxu0 %v9503_v25  ;;  %v9563_v21 = vld [vmem:[#allocation8 + $0x464] ss:$16 sps:$4 sm:$0xff]   ;;  %v9566_v25 = vld [vmem:[#allocation8 + $0x46c] ss:$16 sps:$4 sm:$0xff]  }
 0x303   : > { %7708 = vmatprep.subr.bf16.mxu1 %v9506_v26  ;;  %v837_v26 = vsub.s32 4, %v10725_v44 }
 0x305   : > { %7381 = vmatpush1.bf16.msra.mxu0 %v9501_v27  ;;  %v9561_v27 = vld [vmem:[#allocation8 + $0x460] ss:$16 sps:$4 sm:$0xff]  }
 0x306   : > { %7709 = vmatpush1.bf16.msra.mxu1 %v9504_v28  ;;  %7382 = vmatprep.subr.bf16.mxu0 %v9509_v29  ;;  %v849_v28 = vsub.s32 7, %v10725_v44  ;;  %v9564_v29 = vld [vmem:[#allocation8 + $0x468] ss:$16 sps:$4 sm:$0xff]  }
 0x307   : > { %7710 = vmatprep.subr.bf16.mxu1 %v9512_v30  ;;  %v9569_v30 = vld [vmem:[#allocation8 + $0x484] ss:$16 sps:$4 sm:$0xff]  }
 0x309   : > { %7383 = vmatpush1.bf16.msra.mxu0 %v9507_v32  ;;  %v9572_v32 = vld [vmem:[#allocation8 + $0x48c] ss:$16 sps:$4 sm:$0xff]  }
 0x30a   : > { %7711 = vmatpush1.bf16.msra.mxu1 %v9510_v33  ;;  %7384 = vmatprep.subr.bf16.mxu0 %v9515_v20  ;;  %v838_v33 = vrot.slane %v10798_v31, %v837_v26  ;;  %v9567_v20 = vld [vmem:[#allocation8 + $0x480] ss:$16 sps:$4 sm:$0xff]  }
 0x30b   : > { %7712 = vmatprep.subr.bf16.mxu1 %v9518_v40  ;;  %v850_v40 = vrot.slane %v10798_v31, %v849_v28 }
 0x30d   : > { %7385 = vmatpush1.bf16.msra.mxu0 %v9513_v35  ;;  %v9578_v35 = vld [vmem:[#allocation8 + $0x4ac] ss:$16 sps:$4 sm:$0xff]   ;;  %v10810_v39 = vadd.f32 %v10743_v19, %v850_v40  ;;  %v9627_v40 = vld [vmem:[#allocation8 + $0x5c0] ss:$16 sps:$4 sm:$0xff]  }
 0x30e   : > { %7713 = vmatpush1.bf16.msra.mxu1 %v9516_v38  ;;  %7386 = vmatprep.subr.bf16.mxu0 %v9521_v57  ;;  %v10807_v38 = vadd.f32 %v10737_v10, %v838_v33  ;;  %v9573_v57 = vld [vmem:[#allocation8 + $0x4a0] ss:$16 sps:$4 sm:$0xff]   ;;  %v9582_v10 = vld [vmem:[#allocation8 + $0x4c8] ss:$16 sps:$4 sm:$0xff]   ;;  %v9629_v33 = vld [vmem:[#allocation8 + $0x5c4] ss:$16 sps:$4 sm:$0xff]  }
 0x30f   : > { %7714 = vmatprep.subr.bf16.mxu1 %v9524_v43  ;;  %v9576_v43 = vld [vmem:[#allocation8 + $0x4a8] ss:$16 sps:$4 sm:$0xff]  }
 0x311   : > { %7387 = vmatpush1.bf16.msra.mxu0 %v9519_v12  ;;  %v9581_v12 = vld [vmem:[#allocation8 + $0x4c4] ss:$16 sps:$4 sm:$0xff]  }
 0x312   : > { %7715 = vmatpush1.bf16.msra.mxu1 %v9522_v45  ;;  %7388 = vmatprep.subr.bf16.mxu0 %v9527_v46  ;;  %v9584_v45 = vld [vmem:[#allocation8 + $0x4cc] ss:$16 sps:$4 sm:$0xff]   ;;  %v4119_v46 = vsub.f32 0.0, %v10807_v38 }
 0x313   : > { %7716 = vmatprep.subr.bf16.mxu1 %v9530_v47  ;;  %v9579_v47 = vld [vmem:[#allocation8 + $0x4c0] ss:$16 sps:$4 sm:$0xff]  }
 0x314   : > { %v4139_v19 = vmul.f32 1.442695, %v4119_v46  ;;  %v9636_v46 = vld [vmem:[#allocation8 + $0x5e8] ss:$16 sps:$4 sm:$0xff]  }
 0x315   : > { %7389 = vmatpush1.bf16.msra.mxu0 %v9525_v48  ;;  %v4122_v48 = vsub.f32 0.0, %v10810_v39 }
 0x316   : > { %7717 = vmatpush1.bf16.msra.mxu1 %v9528_v49  ;;  %7390 = vmatprep.subr.bf16.mxu0 %v9533_v50  ;;  %v9587_v49 = vld [vmem:[#allocation8 + $0x4e4] ss:$16 sps:$4 sm:$0xff]   ;;  %v9590_v50 = vld [vmem:[#allocation8 + $0x4ec] ss:$16 sps:$4 sm:$0xff]   ;;  %10139 = vpow2.f32 %v4139_v19  ;;  %v9642_v19 = vld [vmem:[#allocation8 + $0x608] ss:$16 sps:$4 sm:$0xff]  }
 0x317   : > { %7718 = vmatprep.subr.bf16.mxu1 %v9536_v51  ;;  %v9585_v51 = vld [vmem:[#allocation8 + $0x4e0] ss:$16 sps:$4 sm:$0xff]  }
 0x319   : > { %7391 = vmatpush1.bf16.msra.mxu0 %v9531_v24  ;;  %v4145_v24 = vmul.f32 1.442695, %v4122_v48  ;;  %v9644_v48 = vld [vmem:[#allocation8 + $0x60c] ss:$16 sps:$4 sm:$0xff]  }
 0x31a   : > { %7719 = vmatpush1.bf16.msra.mxu1 %v9534_v56  ;;  %7392 = vmatprep.subr.bf16.mxu0 %v9539_v58  ;;  %v9588_v56 = vld [vmem:[#allocation8 + $0x4e8] ss:$16 sps:$4 sm:$0xff]   ;;  %v9593_v58 = vld [vmem:[#allocation8 + $0x504] ss:$16 sps:$4 sm:$0xff]  }
 0x31b   : > { %7720 = vmatprep.subr.bf16.mxu1 %v9542_v60  ;;  %v9591_v60 = vld [vmem:[#allocation8 + $0x500] ss:$16 sps:$4 sm:$0xff]   ;;  %10141 = vpow2.f32 %v4145_v24 }
 0x31d   : > { %7393 = vmatpush1.bf16.msra.mxu0 %v9537_v36  ;;  %v9599_v36 = vld [vmem:[#allocation8 + $0x524] ss:$16 sps:$4 sm:$0xff]  }
 0x31e   : > { %7721 = vmatpush1.bf16.msra.mxu1 %v9540_v0  ;;  %7403 = vmatprep.subr.bf16.mxu0 %v9545_v1  ;;  %v9597_v0 = vld [vmem:[#allocation8 + $0x520] ss:$16 sps:$4 sm:$0xff]   ;;  %v9600_v1 = vld [vmem:[#allocation8 + $0x528] ss:$16 sps:$4 sm:$0xff]  }
 0x31f   : > { %7731 = vmatprep.subr.bf16.mxu1 %v9548_v2  ;;  %v9605_v2 = vld [vmem:[#allocation8 + $0x544] ss:$16 sps:$4 sm:$0xff]  }
 0x320   : > { %7395 = vmatmul.mubr.bf16.vlgmr.msra.gmra.mrb[16].mxu0 %v4213_v6 }
 0x321   : > { %7723 = vmatmul.mubr.bf16.vlgmr.msra.gmra.mrb[16].mxu1 %v4213_v6  ;;  %7404 = vmatpush1.bf16.msra.mxu0 %v9543_v4  ;;  %v9603_v4 = vld [vmem:[#allocation8 + $0x540] ss:$16 sps:$4 sm:$0xff]   ;;  %v10140_v6 = vpop.eup %10139 }
 0x322   : > { %7435 = vmatprep.mubr.bf16.mxu0 %v4216_v11  ;;  %7732 = vmatpush1.bf16.msra.mxu1 %v9546_v8  ;;  %v9606_v8 = vld [vmem:[#allocation8 + $0x548] ss:$16 sps:$4 sm:$0xff]  }
 0x323   : > { %7763 = vmatprep.mubr.bf16.mxu1 %v4216_v11  ;;  %7405 = vmatprep.subr.bf16.mxu0 %v9551_v9  ;;  %v9611_v9 = vld [vmem:[#allocation8 + $0x564] ss:$16 sps:$4 sm:$0xff]   ;;  %v9614_v11 = vld [vmem:[#allocation8 + $0x56c] ss:$16 sps:$4 sm:$0xff]  }
 0x324   : > { %7733 = vmatprep.subr.bf16.mxu1 %v9554_v13 }
 0x325   : > { %7406 = vmatpush1.bf16.msra.mxu0 %v9549_v53  ;;  %v10142_v13 = vpop.eup %10141  ;;  %v4167_v53 = vadd.f32 1.0, %v10140_v6  ;;  %v9668_v6 = vld [vmem:[#allocation8 + $0x68c] ss:$16 sps:$4 sm:$0xff]  }
 0x326   : > { %7734 = vmatpush1.bf16.msra.mxu1 %v9552_v14  ;;  %7407 = vmatprep.subr.bf16.mxu0 %v9557_v17  ;;  %v9609_v14 = vld [vmem:[#allocation8 + $0x560] ss:$16 sps:$4 sm:$0xff]   ;;  %v9612_v17 = vld [vmem:[#allocation8 + $0x568] ss:$16 sps:$4 sm:$0xff]  }
 0x327   : > { %7735 = vmatprep.subr.bf16.mxu1 %v9560_v55  ;;  %v9617_v55 = vld [vmem:[#allocation8 + $0x584] ss:$16 sps:$4 sm:$0xff]   ;;  %10143 = vrcp.f32 %v4167_v53 }
 0x328   : > { %v9671_v53 = vld [vmem:[#allocation8 + $0x6a4] ss:$16 sps:$4 sm:$0xff]  }
 0x329   : > { %7408 = vmatpush1.bf16.msra.mxu0 %v9555_v18  ;;  %v4170_v18 = vadd.f32 1.0, %v10142_v13  ;;  %v9666_v13 = vld [vmem:[#allocation8 + $0x688] ss:$16 sps:$4 sm:$0xff]  }
 0x32a   : > { %7736 = vmatpush1.bf16.msra.mxu1 %v9558_v37  ;;  %7409 = vmatprep.subr.bf16.mxu0 %v9563_v21  ;;  %v9620_v37 = vld [vmem:[#allocation8 + $0x58c] ss:$16 sps:$4 sm:$0xff]   ;;  %v9615_v21 = vld [vmem:[#allocation8 + $0x580] ss:$16 sps:$4 sm:$0xff]  }
 0x32b   : > { %7737 = vmatprep.subr.bf16.mxu1 %v9566_v25  ;;  %v9618_v25 = vld [vmem:[#allocation8 + $0x588] ss:$16 sps:$4 sm:$0xff]   ;;  %10145 = vrcp.f32 %v4170_v18  ;;  %v9669_v18 = vld [vmem:[#allocation8 + $0x6a0] ss:$16 sps:$4 sm:$0xff]  }
 0x32d   : > { %7410 = vmatpush1.bf16.msra.mxu0 %v9561_v27  ;;  %v9623_v27 = vld [vmem:[#allocation8 + $0x5a4] ss:$16 sps:$4 sm:$0xff]  }
 0x32e   : > { %7738 = vmatpush1.bf16.msra.mxu1 %v9564_v29  ;;  %7411 = vmatprep.subr.bf16.mxu0 %v9569_v30  ;;  %v9626_v29 = vld [vmem:[#allocation8 + $0x5ac] ss:$16 sps:$4 sm:$0xff]   ;;  %v9621_v30 = vld [vmem:[#allocation8 + $0x5a0] ss:$16 sps:$4 sm:$0xff]  }
 0x32f   : > { %7739 = vmatprep.subr.bf16.mxu1 %v9572_v32  ;;  %v9624_v32 = vld [vmem:[#allocation8 + $0x5a8] ss:$16 sps:$4 sm:$0xff]  }
 0x331   : > { %7412 = vmatpush1.bf16.msra.mxu0 %v9567_v20  ;;  %v9632_v20 = vld [vmem:[#allocation8 + $0x5cc] ss:$16 sps:$4 sm:$0xff]  }
 0x332   : > { %7740 = vmatpush1.bf16.msra.mxu1 %v9570_v34  ;;  %7413 = vmatprep.subr.bf16.mxu0 %v9575_v22  ;;  %v9630_v34 = vld [vmem:[#allocation8 + $0x5c8] ss:$16 sps:$4 sm:$0xff]   ;;  %v9635_v22 = vld [vmem:[#allocation8 + $0x5e4] ss:$16 sps:$4 sm:$0xff]  }
 0x333   : > { %7741 = vmatprep.subr.bf16.mxu1 %v9578_v35  ;;  %v10144_v35 = vpop.eup %10143 }
 0x335   : > { %7414 = vmatpush1.bf16.msra.mxu0 %v9573_v57  ;;  %v9638_v57 = vld [vmem:[#allocation8 + $0x5ec] ss:$16 sps:$4 sm:$0xff]  }
 0x336   : > { %7742 = vmatpush1.bf16.msra.mxu1 %v9576_v43  ;;  %7415 = vmatprep.subr.bf16.mxu0 %v9581_v12  ;;  %v10146_v43 = vpop.eup %10145  ;;  %v9633_v12 = vld [vmem:[#allocation8 + $0x5e0] ss:$16 sps:$4 sm:$0xff]  }
 0x337   : > { %7743 = vmatprep.subr.bf16.mxu1 %v9584_v45  ;;  %v4199_v45 = vmul.f32 %v10144_v35, %v10807_v38  ;;  %v9645_v38 = vld [vmem:[#allocation8 + $0x620] ss:$16 sps:$4 sm:$0xff]  }
 0x339   : > { %7416 = vmatpush1.bf16.msra.mxu0 %v9579_v47  ;;  %v9641_v47 = vld [vmem:[#allocation8 + $0x604] ss:$16 sps:$4 sm:$0xff]  }
 0x33a   : > { %7744 = vmatpush1.bf16.msra.mxu1 %v9582_v10  ;;  %7417 = vmatprep.subr.bf16.mxu0 %v9587_v49  ;;  %v4202_v10 = vmul.f32 %v10146_v43, %v10810_v39  ;;  %v9639_v49 = vld [vmem:[#allocation8 + $0x600] ss:$16 sps:$4 sm:$0xff]   ;;  %v9656_v39 = vld [vmem:[#allocation8 + $0x64c] ss:$16 sps:$4 sm:$0xff]  }
 0x33b   : > { %7745 = vmatprep.subr.bf16.mxu1 %v9590_v50  ;;  %v4215_v50 = vpack.c.bf16 %v4199_v45, %v4199_v45 }
 0x33c   : > { %v4218_v24 = vpack.c.bf16 %v4202_v10, %v4202_v10  ;;  %v9687_v10 = vld [vmem:[#allocation8 + $0x700] ss:$16 sps:$4 sm:$0xff]  }
 0x33d   : > { %7418 = vmatpush1.bf16.msra.mxu0 %v9585_v51  ;;  %v9647_v51 = vld [vmem:[#allocation8 + $0x624] ss:$16 sps:$4 sm:$0xff]  }
 0x33e   : > { %7746 = vmatpush1.bf16.msra.mxu1 %v9588_v56  ;;  %7419 = vmatprep.subr.bf16.mxu0 %v9593_v58  ;;  %v9650_v56 = vld [vmem:[#allocation8 + $0x62c] ss:$16 sps:$4 sm:$0xff]   ;;  %v9648_v58 = vld [vmem:[#allocation8 + $0x628] ss:$16 sps:$4 sm:$0xff]  }
 0x33f   : > { %7747 = vmatprep.subr.bf16.mxu1 %v9596_v54  ;;  %v9653_v54 = vld [vmem:[#allocation8 + $0x644] ss:$16 sps:$4 sm:$0xff]  }
 0x341   : > { %7420 = vmatpush1.bf16.msra.mxu0 %v9591_v60  ;;  %v9651_v60 = vld [vmem:[#allocation8 + $0x640] ss:$16 sps:$4 sm:$0xff]  }
 0x342   : > { %7748 = vmatpush1.bf16.msra.mxu1 %v9594_v61  ;;  %7421 = vmatprep.subr.bf16.mxu0 %v9599_v36  ;;  %v9654_v61 = vld [vmem:[#allocation8 + $0x648] ss:$16 sps:$4 sm:$0xff]   ;;  %v9659_v36 = vld [vmem:[#allocation8 + $0x664] ss:$16 sps:$4 sm:$0xff]  }
 0x343   : > { %7749 = vmatprep.subr.bf16.mxu1 %v9602_v7  ;;  %v9662_v7 = vld [vmem:[#allocation8 + $0x66c] ss:$16 sps:$4 sm:$0xff]  }
 0x345   : > { %7422 = vmatpush1.bf16.msra.mxu0 %v9597_v0  ;;  %v845_v0 = vsub.s32 6, %v10725_v44  ;;  %v10064_v44 = vld [vmem:[#allocation8 + $0xecc] ss:$16 sps:$4 sm:$0xff]  }
 0x346   : > { %7750 = vmatpush1.bf16.msra.mxu1 %v9600_v1  ;;  %7423 = vmatprep.subr.bf16.mxu0 %v9605_v2  ;;  %v9657_v1 = vld [vmem:[#allocation8 + $0x660] ss:$16 sps:$4 sm:$0xff]   ;;  %v10817_v2 = vld [vmem:[#allocation7 + $0x8] sm:$0xff] }
 0x347   : > { %7751 = vmatprep.subr.bf16.mxu1 %v9608_v3  ;;  %v9660_v3 = vld [vmem:[#allocation8 + $0x668] ss:$16 sps:$4 sm:$0xff]  }
 0x349   : > { %7424 = vmatpush1.bf16.msra.mxu0 %v9603_v4  ;;  %v9665_v4 = vld [vmem:[#allocation8 + $0x684] ss:$16 sps:$4 sm:$0xff]  }
 0x34a   : > { %7752 = vmatpush1.bf16.msra.mxu1 %v9606_v8  ;;  %7425 = vmatprep.subr.bf16.mxu0 %v9611_v9  ;;  %v846_v8 = vrot.slane %v10798_v31, %v845_v0  ;;  %v858_v9 = vrot.slane %v10817_v2, %v10728_v52  ;;  %v9672_v31 = vld [vmem:[#allocation8 + $0x6a8] ss:$16 sps:$4 sm:$0xff]  }
 0x34b   : > { %7753 = vmatprep.subr.bf16.mxu1 %v9614_v11  ;;  %v9663_v11 = vld [vmem:[#allocation8 + $0x680] ss:$16 sps:$4 sm:$0xff]  }
 0x34d   : > { %7426 = vmatpush1.bf16.msra.mxu0 %v9609_v14  ;;  %v9674_v14 = vld [vmem:[#allocation8 + $0x6ac] ss:$16 sps:$4 sm:$0xff]  }
 0x34e   : > { %7754 = vmatpush1.bf16.msra.mxu1 %v9612_v17  ;;  %7427 = vmatprep.subr.bf16.mxu0 %v9617_v55  ;;  %v10825_v17 = vadd.f32 %v10739_v15, %v846_v8  ;;  %v10828_v55 = vadd.f32 %v10789_v63, %v858_v9  ;;  %v9716_v8 = vld [vmem:[#allocation8 + $0x78c] ss:$16 sps:$4 sm:$0xff]   ;;  %v9711_v9 = vld [vmem:[#allocation8 + $0x780] ss:$16 sps:$4 sm:$0xff]  }
 0x34f   : > { %7755 = vmatprep.subr.bf16.mxu1 %v9620_v37  ;;  %v9677_v37 = vld [vmem:[#allocation8 + $0x6c4] ss:$16 sps:$4 sm:$0xff]  }
 0x350   : > { %v4124_v15 = vsub.f32 0.0, %v10828_v55 }
 0x351   : > { %7428 = vmatpush1.bf16.msra.mxu0 %v9615_v21 }
 0x352   : > { %7756 = vmatpush1.bf16.msra.mxu1 %v9618_v25  ;;  %7429 = vmatprep.subr.bf16.mxu0 %v9623_v27  ;;  %v9680_v25 = vld [vmem:[#allocation8 + $0x6cc] ss:$16 sps:$4 sm:$0xff]   ;;  %v4121_v27 = vsub.f32 0.0, %v10825_v17  ;;  %v4149_v45 = vmul.f32 1.442695, %v4124_v15 }
 0x353   : > { %7757 = vmatprep.subr.bf16.mxu1 %v9626_v29  ;;  %v9731_v15 = vld [vmem:[#allocation8 + $0x7e4] ss:$16 sps:$4 sm:$0xff]  }
 0x354   : > { %v4143_v43 = vmul.f32 1.442695, %v4121_v27  ;;  %v9726_v27 = vld [vmem:[#allocation8 + $0x7c8] ss:$16 sps:$4 sm:$0xff]  }
 0x355   : > { %7430 = vmatpush1.bf16.msra.mxu0 %v9621_v30 }
 0x356   : > { %7758 = vmatpush1.bf16.msra.mxu1 %v9624_v32  ;;  %7431 = vmatprep.subr.bf16.mxu0 %v9629_v33  ;;  %v9675_v33 = vld [vmem:[#allocation8 + $0x6c0] ss:$16 sps:$4 sm:$0xff]   ;;  %10147 = vpow2.f32 %v4143_v43 }
 0x357   : > { %7759 = vmatprep.subr.bf16.mxu1 %v9632_v20  ;;  %10149 = vpow2.f32 %v4149_v45 }
 0x359   : > { %7432 = vmatpush1.bf16.msra.mxu0 %v9627_v40 }
 0x35a   : > { %7760 = vmatpush1.bf16.msra.mxu1 %v9630_v34  ;;  %7433 = vmatprep.subr.bf16.mxu0 %v9635_v22  ;;  %v9678_v34 = vld [vmem:[#allocation8 + $0x6c8] ss:$16 sps:$4 sm:$0xff]   ;;  %v9683_v22 = vld [vmem:[#allocation8 + $0x6e4] ss:$16 sps:$4 sm:$0xff]  }
 0x35b   : > { %7761 = vmatprep.subr.bf16.mxu1 %v9638_v57  ;;  %v9686_v57 = vld [vmem:[#allocation8 + $0x6ec] ss:$16 sps:$4 sm:$0xff]  }
 0x35d   : > { %7434 = vmatpush1.bf16.msra.mxu0 %v9633_v12  ;;  %v9681_v12 = vld [vmem:[#allocation8 + $0x6e0] ss:$16 sps:$4 sm:$0xff]  }
 0x35e   : > { %7762 = vmatpush1.bf16.msra.mxu1 %v9636_v46  ;;  %7444 = vmatprep.subr.bf16.mxu0 %v9641_v47  ;;  %v9684_v46 = vld [vmem:[#allocation8 + $0x6e8] ss:$16 sps:$4 sm:$0xff]   ;;  %v9689_v47 = vld [vmem:[#allocation8 + $0x704] ss:$16 sps:$4 sm:$0xff]  }
 0x35f   : > { %7772 = vmatprep.subr.bf16.mxu1 %v9644_v48  ;;  %v9692_v48 = vld [vmem:[#allocation8 + $0x70c] ss:$16 sps:$4 sm:$0xff]  }
 0x360   : > { %7436 = vmatmul.mubr.bf16.vlgmr.msra.gmra.mrb[16].mxu0 %v4215_v50 }
 0x361   : > { %7764 = vmatmul.mubr.bf16.vlgmr.msra.gmra.mrb[16].mxu1 %v4215_v50  ;;  %7445 = vmatpush1.bf16.msra.mxu0 %v9639_v49  ;;  %v9690_v49 = vld [vmem:[#allocation8 + $0x708] ss:$16 sps:$4 sm:$0xff]   ;;  %v9695_v50 = vld [vmem:[#allocation8 + $0x724] ss:$16 sps:$4 sm:$0xff]  }
 0x362   : > { %7476 = vmatprep.mubr.bf16.mxu0 %v4218_v24  ;;  %7773 = vmatpush1.bf16.msra.mxu1 %v9642_v19  ;;  %v9698_v19 = vld [vmem:[#allocation8 + $0x72c] ss:$16 sps:$4 sm:$0xff]  }
 0x363   : > { %7804 = vmatprep.mubr.bf16.mxu1 %v4218_v24  ;;  %7446 = vmatprep.subr.bf16.mxu0 %v9647_v51  ;;  %v9693_v51 = vld [vmem:[#allocation8 + $0x720] ss:$16 sps:$4 sm:$0xff]   ;;  %v9696_v24 = vld [vmem:[#allocation8 + $0x728] ss:$16 sps:$4 sm:$0xff]  }
 0x364   : > { %7774 = vmatprep.subr.bf16.mxu1 %v9650_v56  ;;  %v9701_v56 = vld [vmem:[#allocation8 + $0x744] ss:$16 sps:$4 sm:$0xff]  }
 0x365   : > { %7447 = vmatpush1.bf16.msra.mxu0 %v9645_v38  ;;  %v9704_v38 = vld [vmem:[#allocation8 + $0x74c] ss:$16 sps:$4 sm:$0xff]  }
 0x366   : > { %7775 = vmatpush1.bf16.msra.mxu1 %v9648_v58  ;;  %7448 = vmatprep.subr.bf16.mxu0 %v9653_v54  ;;  %v9699_v58 = vld [vmem:[#allocation8 + $0x740] ss:$16 sps:$4 sm:$0xff]   ;;  %v10148_v54 = vpop.eup %10147 }
 0x367   : > { %7776 = vmatprep.subr.bf16.mxu1 %v9656_v39  ;;  %v9702_v39 = vld [vmem:[#allocation8 + $0x748] ss:$16 sps:$4 sm:$0xff]  }
 0x369   : > { %7449 = vmatpush1.bf16.msra.mxu0 %v9651_v60  ;;  %v9707_v60 = vld [vmem:[#allocation8 + $0x764] ss:$16 sps:$4 sm:$0xff]  }
 0x36a   : > { %7777 = vmatpush1.bf16.msra.mxu1 %v9654_v61  ;;  %7450 = vmatprep.subr.bf16.mxu0 %v9659_v36  ;;  %v9710_v61 = vld [vmem:[#allocation8 + $0x76c] ss:$16 sps:$4 sm:$0xff]   ;;  %v10150_v36 = vpop.eup %10149 }
 0x36b   : > { %7778 = vmatprep.subr.bf16.mxu1 %v9662_v7  ;;  %v4169_v7 = vadd.f32 1.0, %v10148_v54  ;;  %v9761_v54 = vld [vmem:[#allocation8 + $0x884] ss:$16 sps:$4 sm:$0xff]  }
 0x36d   : > { %7451 = vmatpush1.bf16.msra.mxu0 %v9657_v1  ;;  %v9705_v1 = vld [vmem:[#allocation8 + $0x760] ss:$16 sps:$4 sm:$0xff]   ;;  %10151 = vrcp.f32 %v4169_v7  ;;  %v9762_v7 = vld [vmem:[#allocation8 + $0x888] ss:$16 sps:$4 sm:$0xff]  }
 0x36e   : > { %7779 = vmatpush1.bf16.msra.mxu1 %v9660_v3  ;;  %7452 = vmatprep.subr.bf16.mxu0 %v9665_v4  ;;  %v9708_v3 = vld [vmem:[#allocation8 + $0x768] ss:$16 sps:$4 sm:$0xff]   ;;  %v9713_v4 = vld [vmem:[#allocation8 + $0x784] ss:$16 sps:$4 sm:$0xff]  }
 0x36f   : > { %7780 = vmatprep.subr.bf16.mxu1 %v9668_v6  ;;  %v4172_v6 = vadd.f32 1.0, %v10150_v36  ;;  %v866_v36 = vrot.slane %v10817_v2, %v10753_v5 }
 0x371   : > { %7453 = vmatpush1.bf16.msra.mxu0 %v9663_v11  ;;  %v9714_v11 = vld [vmem:[#allocation8 + $0x788] ss:$16 sps:$4 sm:$0xff]   ;;  %10153 = vrcp.f32 %v4172_v6  ;;  %v9765_v6 = vld [vmem:[#allocation8 + $0x8a0] ss:$16 sps:$4 sm:$0xff]  }
 0x372   : > { %7781 = vmatpush1.bf16.msra.mxu1 %v9666_v13  ;;  %7454 = vmatprep.subr.bf16.mxu0 %v9671_v53  ;;  %v9719_v13 = vld [vmem:[#allocation8 + $0x7a4] ss:$16 sps:$4 sm:$0xff]   ;;  %v9722_v53 = vld [vmem:[#allocation8 + $0x7ac] ss:$16 sps:$4 sm:$0xff]  }
 0x373   : > { %v10830_v21 = vpop.f32.mrb[12].mxu0  ;;  %7782 = vmatprep.subr.bf16.mxu1 %v9674_v14  ;;  %v10833_v29 = vpop.f32.mrb[12].mxu1  ;;  %v9717_v14 = vld [vmem:[#allocation8 + $0x7a0] ss:$16 sps:$4 sm:$0xff]  }
 0x374   : > { %v10835_v30 = vpop.f32.mrb[13].mxu0  ;;  %v10838_v63 = vpop.f32.mrb[13].mxu1 }
 0x375   : > { %v4030_v32 = vpop.f32.mrb[14].mxu0  ;;  %7455 = vmatpush1.bf16.msra.mxu0 %v9669_v18  ;;  %v4112_v20 = vpop.f32.mrb[14].mxu1  ;;  %v9720_v18 = vld [vmem:[#allocation8 + $0x7a8] ss:$16 sps:$4 sm:$0xff]  }
 0x376   : > { %7783 = vmatpush1.bf16.msra.mxu1 %v9672_v31  ;;  %v4031_v40 = vpop.f32.mrb[15].mxu0  ;;  %7456 = vmatprep.subr.bf16.mxu0 %v9677_v37  ;;  %v4113_v35 = vpop.f32.mrb[15].mxu1  ;;  %v9725_v31 = vld [vmem:[#allocation8 + $0x7c4] ss:$16 sps:$4 sm:$0xff]   ;;  %v9728_v37 = vld [vmem:[#allocation8 + $0x7cc] ss:$16 sps:$4 sm:$0xff]  }
 0x377   : > { %7784 = vmatprep.subr.bf16.mxu1 %v9680_v25  ;;  %v9723_v25 = vld [vmem:[#allocation8 + $0x7c0] ss:$16 sps:$4 sm:$0xff]   ;;  %v10152_v32 = vpop.eup %10151  ;;  %v9737_v35 = vld [vmem:[#allocation8 + $0x804] ss:$16 sps:$4 sm:$0xff]  }
 0x378   : > { %v9729_v40 = vld [vmem:[#allocation8 + $0x7e0] ss:$16 sps:$4 sm:$0xff]  }
 0x379   : > { %7457 = vmatpush1.bf16.msra.mxu0 %v9675_v33  ;;  %v9734_v33 = vld [vmem:[#allocation8 + $0x7ec] ss:$16 sps:$4 sm:$0xff]  }
 0x37a   : > { %7785 = vmatpush1.bf16.msra.mxu1 %v9678_v34  ;;  %7458 = vmatprep.subr.bf16.mxu0 %v9683_v22  ;;  %v4201_v34 = vmul.f32 %v10152_v32, %v10825_v17  ;;  %v9732_v22 = vld [vmem:[#allocation8 + $0x7e8] ss:$16 sps:$4 sm:$0xff]   ;;  %v9741_v17 = vld [vmem:[#allocation8 + $0x820] ss:$16 sps:$4 sm:$0xff]   ;;  %v9785_v32 = vld [vmem:[#allocation8 + $0x904] ss:$16 sps:$4 sm:$0xff]  }
 0x37b   : > { %7786 = vmatprep.subr.bf16.mxu1 %v9686_v57  ;;  %v10154_v20 = vpop.eup %10153  ;;  %v9740_v57 = vld [vmem:[#allocation8 + $0x80c] ss:$16 sps:$4 sm:$0xff]  }
 0x37c   : > { %v4204_v43 = vmul.f32 %v10154_v20, %v10828_v55  ;;  %v4217_v45 = vpack.c.bf16 %v4201_v34, %v4201_v34  ;;  %v9752_v55 = vld [vmem:[#allocation8 + $0x84c] ss:$16 sps:$4 sm:$0xff]   ;;  %v9783_v20 = vld [vmem:[#allocation8 + $0x900] ss:$16 sps:$4 sm:$0xff]   ;;  %v9791_v34 = vld [vmem:[#allocation8 + $0x924] ss:$16 sps:$4 sm:$0xff]  }
 0x37d   : > { %7459 = vmatpush1.bf16.msra.mxu0 %v9681_v12  ;;  %v9735_v12 = vld [vmem:[#allocation8 + $0x800] ss:$16 sps:$4 sm:$0xff]  }
 0x37e   : > { %7787 = vmatpush1.bf16.msra.mxu1 %v9684_v46  ;;  %7460 = vmatprep.subr.bf16.mxu0 %v9689_v47  ;;  %v9738_v46 = vld [vmem:[#allocation8 + $0x808] ss:$16 sps:$4 sm:$0xff]   ;;  %v9743_v47 = vld [vmem:[#allocation8 + $0x824] ss:$16 sps:$4 sm:$0xff]  }
 0x37f   : > { %7788 = vmatprep.subr.bf16.mxu1 %v9692_v48  ;;  %v4220_v48 = vpack.c.bf16 %v4204_v43, %v4204_v43  ;;  %v9797_v43 = vld [vmem:[#allocation8 + $0x944] ss:$16 sps:$4 sm:$0xff]  }
 0x381   : > { %7461 = vmatpush1.bf16.msra.mxu0 %v9687_v10  ;;  %v9746_v10 = vld [vmem:[#allocation8 + $0x82c] ss:$16 sps:$4 sm:$0xff]  }
 0x382   : > { %7789 = vmatpush1.bf16.msra.mxu1 %v9690_v49  ;;  %7462 = vmatprep.subr.bf16.mxu0 %v9695_v50  ;;  %v9744_v49 = vld [vmem:[#allocation8 + $0x828] ss:$16 sps:$4 sm:$0xff]   ;;  %v9749_v50 = vld [vmem:[#allocation8 + $0x844] ss:$16 sps:$4 sm:$0xff]  }
 0x383   : > { %7790 = vmatprep.subr.bf16.mxu1 %v9698_v19  ;;  %v9747_v19 = vld [vmem:[#allocation8 + $0x840] ss:$16 sps:$4 sm:$0xff]  }
 0x385   : > { %7463 = vmatpush1.bf16.msra.mxu0 %v9693_v51  ;;  %v9750_v51 = vld [vmem:[#allocation8 + $0x848] ss:$16 sps:$4 sm:$0xff]  }
 0x386   : > { %7791 = vmatpush1.bf16.msra.mxu1 %v9696_v24  ;;  %7464 = vmatprep.subr.bf16.mxu0 %v9701_v56  ;;  %v9755_v24 = vld [vmem:[#allocation8 + $0x864] ss:$16 sps:$4 sm:$0xff]   ;;  %v9758_v56 = vld [vmem:[#allocation8 + $0x86c] ss:$16 sps:$4 sm:$0xff]  }
 0x387   : > { %7792 = vmatprep.subr.bf16.mxu1 %v9704_v38  ;;  %v9753_v38 = vld [vmem:[#allocation8 + $0x860] ss:$16 sps:$4 sm:$0xff]  }
 0x389   : > { %7465 = vmatpush1.bf16.msra.mxu0 %v9699_v58  ;;  %v9756_v58 = vld [vmem:[#allocation8 + $0x868] ss:$16 sps:$4 sm:$0xff]  }
 0x38a   : > { %7793 = vmatpush1.bf16.msra.mxu1 %v9702_v39  ;;  %7466 = vmatprep.subr.bf16.mxu0 %v9707_v60  ;;  %v9764_v39 = vld [vmem:[#allocation8 + $0x88c] ss:$16 sps:$4 sm:$0xff]   ;;  %v854_v60 = vrot.slane %v10817_v2, %v10750_v23 }
 0x38b   : > { %7794 = vmatprep.subr.bf16.mxu1 %v9710_v61  ;;  %v9759_v61 = vld [vmem:[#allocation8 + $0x880] ss:$16 sps:$4 sm:$0xff]  }
 0x38d   : > { %7467 = vmatpush1.bf16.msra.mxu0 %v9705_v1  ;;  %v9767_v1 = vld [vmem:[#allocation8 + $0x8a4] ss:$16 sps:$4 sm:$0xff]  }
 0x38e   : > { %7795 = vmatpush1.bf16.msra.mxu1 %v9708_v3  ;;  %7468 = vmatprep.subr.bf16.mxu0 %v9713_v4  ;;  %v9770_v3 = vld [vmem:[#allocation8 + $0x8ac] ss:$16 sps:$4 sm:$0xff]   ;;  %v10847_v4 = vadd.f32 %v10784_v59, %v854_v60  ;;  %v9774_v59 = vld [vmem:[#allocation8 + $0x8c8] ss:$16 sps:$4 sm:$0xff]  }
 0x38f   : > { %7796 = vmatprep.subr.bf16.mxu1 %v9716_v8  ;;  %v10850_v8 = vadd.f32 %v10792_v16, %v866_v36  ;;  %v9816_v60 = vld [vmem:[#allocation8 + $0x9a8] ss:$16 sps:$4 sm:$0xff]   ;;  %v9824_v36 = vld [vmem:[#allocation8 + $0x9cc] ss:$16 sps:$4 sm:$0xff]  }
 0x391   : > { %7469 = vmatpush1.bf16.msra.mxu0 %v9711_v9  ;;  %v9768_v9 = vld [vmem:[#allocation8 + $0x8a8] ss:$16 sps:$4 sm:$0xff]  }
 0x392   : > { %7797 = vmatpush1.bf16.msra.mxu1 %v9714_v11  ;;  %7470 = vmatprep.subr.bf16.mxu0 %v9719_v13  ;;  %v9773_v11 = vld [vmem:[#allocation8 + $0x8c4] ss:$16 sps:$4 sm:$0xff]   ;;  %v9776_v13 = vld [vmem:[#allocation8 + $0x8cc] ss:$16 sps:$4 sm:$0xff]  }
 0x393   : > { %7798 = vmatprep.subr.bf16.mxu1 %v9722_v53  ;;  %v4123_v53 = vsub.f32 0.0, %v10847_v4 }
 0x395   : > { %7471 = vmatpush1.bf16.msra.mxu0 %v9717_v14  ;;  %v9771_v14 = vld [vmem:[#allocation8 + $0x8c0] ss:$16 sps:$4 sm:$0xff]   ;;  %v4147_v16 = vmul.f32 1.442695, %v4123_v53 }
 0x396   : > { %7799 = vmatpush1.bf16.msra.mxu1 %v9720_v18  ;;  %7472 = vmatprep.subr.bf16.mxu0 %v9725_v31  ;;  %v4126_v18 = vsub.f32 0.0, %v10850_v8  ;;  %v9779_v31 = vld [vmem:[#allocation8 + $0x8e4] ss:$16 sps:$4 sm:$0xff]  }
 0x397   : > { %7800 = vmatprep.subr.bf16.mxu1 %v9728_v37  ;;  %v9782_v37 = vld [vmem:[#allocation8 + $0x8ec] ss:$16 sps:$4 sm:$0xff]   ;;  %10155 = vpow2.f32 %v4147_v16 }
 0x399   : > { %7473 = vmatpush1.bf16.msra.mxu0 %v9723_v25  ;;  %v9777_v25 = vld [vmem:[#allocation8 + $0x8e0] ss:$16 sps:$4 sm:$0xff]  }
 0x39a   : > { %7801 = vmatpush1.bf16.msra.mxu1 %v9726_v27  ;;  %7474 = vmatprep.subr.bf16.mxu0 %v9731_v15  ;;  %v4153_v27 = vmul.f32 1.442695, %v4126_v18  ;;  %v9780_v15 = vld [vmem:[#allocation8 + $0x8e8] ss:$16 sps:$4 sm:$0xff]   ;;  %v9833_v18 = vld [vmem:[#allocation8 + $0xa04] ss:$16 sps:$4 sm:$0xff]  }
 0x39b   : > { %7802 = vmatprep.subr.bf16.mxu1 %v9734_v33  ;;  %v9788_v33 = vld [vmem:[#allocation8 + $0x90c] ss:$16 sps:$4 sm:$0xff]  }
 0x39c   : > { %10157 = vpow2.f32 %v4153_v27  ;;  %v9839_v27 = vld [vmem:[#allocation8 + $0xa24] ss:$16 sps:$4 sm:$0xff]  }
 0x39d   : > { %7475 = vmatpush1.bf16.msra.mxu0 %v9729_v40  ;;  %v9786_v40 = vld [vmem:[#allocation8 + $0x908] ss:$16 sps:$4 sm:$0xff]  }
 0x39e   : > { %7803 = vmatpush1.bf16.msra.mxu1 %v9732_v22  ;;  %7485 = vmatprep.subr.bf16.mxu0 %v9737_v35  ;;  %v9794_v22 = vld [vmem:[#allocation8 + $0x92c] ss:$16 sps:$4 sm:$0xff]   ;;  %v9789_v35 = vld [vmem:[#allocation8 + $0x920] ss:$16 sps:$4 sm:$0xff]  }
 0x39f   : > { %7813 = vmatprep.subr.bf16.mxu1 %v9740_v57  ;;  %v9792_v57 = vld [vmem:[#allocation8 + $0x928] ss:$16 sps:$4 sm:$0xff]  }
 0x3a0   : > { %7477 = vmatmul.mubr.bf16.vlgmr.msra.gmra.mrb[16].mxu0 %v4217_v45 }
 0x3a1   : > { %7805 = vmatmul.mubr.bf16.vlgmr.msra.gmra.mrb[16].mxu1 %v4217_v45  ;;  %7486 = vmatpush1.bf16.msra.mxu0 %v9735_v12  ;;  %v9800_v12 = vld [vmem:[#allocation8 + $0x94c] ss:$16 sps:$4 sm:$0xff]   ;;  %v9795_v45 = vld [vmem:[#allocation8 + $0x940] ss:$16 sps:$4 sm:$0xff]  }
 0x3a2   : > { %7517 = vmatprep.mubr.bf16.mxu0 %v4220_v48  ;;  %7814 = vmatpush1.bf16.msra.mxu1 %v9738_v46  ;;  %v10156_v46 = vpop.eup %10155 }
 0x3a3   : > { %7845 = vmatprep.mubr.bf16.mxu1 %v4220_v48  ;;  %7487 = vmatprep.subr.bf16.mxu0 %v9743_v47  ;;  %v9798_v47 = vld [vmem:[#allocation8 + $0x948] ss:$16 sps:$4 sm:$0xff]   ;;  %v9803_v48 = vld [vmem:[#allocation8 + $0x964] ss:$16 sps:$4 sm:$0xff]  }
 0x3a4   : > { %7815 = vmatprep.subr.bf16.mxu1 %v9746_v10  ;;  %v9806_v10 = vld [vmem:[#allocation8 + $0x96c] ss:$16 sps:$4 sm:$0xff]  }
 0x3a5   : > { %7488 = vmatpush1.bf16.msra.mxu0 %v9741_v17 }
 0x3a6   : > { %7816 = vmatpush1.bf16.msra.mxu1 %v9744_v49  ;;  %7489 = vmatprep.subr.bf16.mxu0 %v9749_v50  ;;  %v10158_v17 = vpop.eup %10157  ;;  %v4171_v49 = vadd.f32 1.0, %v10156_v46  ;;  %v9801_v50 = vld [vmem:[#allocation8 + $0x960] ss:$16 sps:$4 sm:$0xff]   ;;  %v862_v46 = vrot.slane %v10817_v2, %v10770_v41 }
 0x3a7   : > { %7817 = vmatprep.subr.bf16.mxu1 %v9752_v55  ;;  %v9804_v55 = vld [vmem:[#allocation8 + $0x968] ss:$16 sps:$4 sm:$0xff]  }
 0x3a8   : > { %10159 = vrcp.f32 %v4171_v49  ;;  %v9866_v49 = vld [vmem:[#allocation8 + $0xaac] ss:$16 sps:$4 sm:$0xff]  }
 0x3a9   : > { %7490 = vmatpush1.bf16.msra.mxu0 %v9747_v19  ;;  %v9809_v19 = vld [vmem:[#allocation8 + $0x984] ss:$16 sps:$4 sm:$0xff]  }
 0x3aa   : > { %7818 = vmatpush1.bf16.msra.mxu1 %v9750_v51  ;;  %7491 = vmatprep.subr.bf16.mxu0 %v9755_v24  ;;  %v4174_v51 = vadd.f32 1.0, %v10158_v17  ;;  %v9812_v24 = vld [vmem:[#allocation8 + $0x98c] ss:$16 sps:$4 sm:$0xff]   ;;  %v9863_v17 = vld [vmem:[#allocation8 + $0xaa4] ss:$16 sps:$4 sm:$0xff]  }
 0x3ab   : > { %7819 = vmatprep.subr.bf16.mxu1 %v9758_v56  ;;  %v9807_v56 = vld [vmem:[#allocation8 + $0x980] ss:$16 sps:$4 sm:$0xff]  }
 0x3ac   : > { %10161 = vrcp.f32 %v4174_v51  ;;  %v9864_v51 = vld [vmem:[#allocation8 + $0xaa8] ss:$16 sps:$4 sm:$0xff]  }
 0x3ad   : > { %7492 = vmatpush1.bf16.msra.mxu0 %v9753_v38  ;;  %v9810_v38 = vld [vmem:[#allocation8 + $0x988] ss:$16 sps:$4 sm:$0xff]  }
 0x3ae   : > { %7820 = vmatpush1.bf16.msra.mxu1 %v9756_v58  ;;  %7493 = vmatprep.subr.bf16.mxu0 %v9761_v54  ;;  %v9815_v58 = vld [vmem:[#allocation8 + $0x9a4] ss:$16 sps:$4 sm:$0xff]   ;;  %v9818_v54 = vld [vmem:[#allocation8 + $0x9ac] ss:$16 sps:$4 sm:$0xff]  }
 0x3af   : > { %7821 = vmatprep.subr.bf16.mxu1 %v9764_v39  ;;  %v9813_v39 = vld [vmem:[#allocation8 + $0x9a0] ss:$16 sps:$4 sm:$0xff]  }
 0x3b1   : > { %7494 = vmatpush1.bf16.msra.mxu0 %v9759_v61  ;;  %v9821_v61 = vld [vmem:[#allocation8 + $0x9c4] ss:$16 sps:$4 sm:$0xff]  }
 0x3b2   : > { %7822 = vmatpush1.bf16.msra.mxu1 %v9762_v7  ;;  %7495 = vmatprep.subr.bf16.mxu0 %v9767_v1  ;;  %v9819_v7 = vld [vmem:[#allocation8 + $0x9c0] ss:$16 sps:$4 sm:$0xff]   ;;  %v9822_v1 = vld [vmem:[#allocation8 + $0x9c8] ss:$16 sps:$4 sm:$0xff]  }
 0x3b3   : > { %7823 = vmatprep.subr.bf16.mxu1 %v9770_v3  ;;  %v9827_v3 = vld [vmem:[#allocation8 + $0x9e4] ss:$16 sps:$4 sm:$0xff]  }
 0x3b5   : > { %7496 = vmatpush1.bf16.msra.mxu0 %v9765_v6  ;;  %v10160_v6 = vpop.eup %10159 }
 0x3b6   : > { %7824 = vmatpush1.bf16.msra.mxu1 %v9768_v9  ;;  %7497 = vmatprep.subr.bf16.mxu0 %v9773_v11  ;;  %v9830_v9 = vld [vmem:[#allocation8 + $0x9ec] ss:$16 sps:$4 sm:$0xff]   ;;  %v10162_v11 = vpop.eup %10161  ;;  %v4203_v53 = vmul.f32 %v10160_v6, %v10847_v4  ;;  %v9837_v4 = vld [vmem:[#allocation8 + $0xa20] ss:$16 sps:$4 sm:$0xff]   ;;  %v9882_v6 = vld [vmem:[#allocation8 + $0xb08] ss:$16 sps:$4 sm:$0xff]  }
 0x3b7   : > { %7825 = vmatprep.subr.bf16.mxu1 %v9776_v13  ;;  %v9825_v13 = vld [vmem:[#allocation8 + $0x9e0] ss:$16 sps:$4 sm:$0xff]  }
 0x3b8   : > { %v4219_v16 = vpack.c.bf16 %v4203_v53, %v4203_v53  ;;  %v9888_v53 = vld [vmem:[#allocation8 + $0xb28] ss:$16 sps:$4 sm:$0xff]  }
 0x3b9   : > { %7498 = vmatpush1.bf16.msra.mxu0 %v9771_v14  ;;  %v9828_v14 = vld [vmem:[#allocation8 + $0x9e8] ss:$16 sps:$4 sm:$0xff]  }
 0x3ba   : > { %7826 = vmatpush1.bf16.msra.mxu1 %v9774_v59  ;;  %7499 = vmatprep.subr.bf16.mxu0 %v9779_v31  ;;  %v9836_v59 = vld [vmem:[#allocation8 + $0xa0c] ss:$16 sps:$4 sm:$0xff]   ;;  %v4206_v31 = vmul.f32 %v10162_v11, %v10850_v8 }
 0x3bb   : > { %7827 = vmatprep.subr.bf16.mxu1 %v9782_v37  ;;  %v9831_v37 = vld [vmem:[#allocation8 + $0xa00] ss:$16 sps:$4 sm:$0xff]   ;;  %v9848_v8 = vld [vmem:[#allocation8 + $0xa4c] ss:$16 sps:$4 sm:$0xff]  }
 0x3bc   : > { %v9890_v11 = vld [vmem:[#allocation8 + $0xb2c] ss:$16 sps:$4 sm:$0xff]  }
 0x3bd   : > { %7500 = vmatpush1.bf16.msra.mxu0 %v9777_v25  ;;  %v9834_v25 = vld [vmem:[#allocation8 + $0xa08] ss:$16 sps:$4 sm:$0xff]  }
 0x3be   : > { %7828 = vmatpush1.bf16.msra.mxu1 %v9780_v15  ;;  %7501 = vmatprep.subr.bf16.mxu0 %v9785_v32  ;;  %v4222_v15 = vpack.c.bf16 %v4206_v31, %v4206_v31  ;;  %v9842_v32 = vld [vmem:[#allocation8 + $0xa2c] ss:$16 sps:$4 sm:$0xff]  }
 0x3bf   : > { %7829 = vmatprep.subr.bf16.mxu1 %v9788_v33  ;;  %v9840_v33 = vld [vmem:[#allocation8 + $0xa28] ss:$16 sps:$4 sm:$0xff]  }
 0x3c1   : > { %7502 = vmatpush1.bf16.msra.mxu0 %v9783_v20  ;;  %v9845_v20 = vld [vmem:[#allocation8 + $0xa44] ss:$16 sps:$4 sm:$0xff]  }
 0x3c2   : > { %7830 = vmatpush1.bf16.msra.mxu1 %v9786_v40  ;;  %7503 = vmatprep.subr.bf16.mxu0 %v9791_v34  ;;  %v9843_v40 = vld [vmem:[#allocation8 + $0xa40] ss:$16 sps:$4 sm:$0xff]   ;;  %v9846_v34 = vld [vmem:[#allocation8 + $0xa48] ss:$16 sps:$4 sm:$0xff]  }
 0x3c3   : > { %7831 = vmatprep.subr.bf16.mxu1 %v9794_v22  ;;  %v9851_v22 = vld [vmem:[#allocation8 + $0xa64] ss:$16 sps:$4 sm:$0xff]  }
 0x3c5   : > { %7504 = vmatpush1.bf16.msra.mxu0 %v9789_v35  ;;  %v9854_v35 = vld [vmem:[#allocation8 + $0xa6c] ss:$16 sps:$4 sm:$0xff]  }
 0x3c6   : > { %7832 = vmatpush1.bf16.msra.mxu1 %v9792_v57  ;;  %7505 = vmatprep.subr.bf16.mxu0 %v9797_v43  ;;  %v9849_v57 = vld [vmem:[#allocation8 + $0xa60] ss:$16 sps:$4 sm:$0xff]   ;;  %v9852_v43 = vld [vmem:[#allocation8 + $0xa68] ss:$16 sps:$4 sm:$0xff]  }
 0x3c7   : > { %7833 = vmatprep.subr.bf16.mxu1 %v9800_v12  ;;  %v9857_v12 = vld [vmem:[#allocation8 + $0xa84] ss:$16 sps:$4 sm:$0xff]  }
 0x3c9   : > { %7506 = vmatpush1.bf16.msra.mxu0 %v9795_v45  ;;  %v9860_v45 = vld [vmem:[#allocation8 + $0xa8c] ss:$16 sps:$4 sm:$0xff]  }
 0x3ca   : > { %7834 = vmatpush1.bf16.msra.mxu1 %v9798_v47  ;;  %7507 = vmatprep.subr.bf16.mxu0 %v9803_v48  ;;  %v9855_v47 = vld [vmem:[#allocation8 + $0xa80] ss:$16 sps:$4 sm:$0xff]   ;;  %v874_v48 = vrot.slane %v10817_v2, %v841_v42  ;;  %v9872_v42 = vld [vmem:[#allocation8 + $0xacc] ss:$16 sps:$4 sm:$0xff]  }
 0x3cb   : > { %7835 = vmatprep.subr.bf16.mxu1 %v9806_v10  ;;  %v9858_v10 = vld [vmem:[#allocation8 + $0xa88] ss:$16 sps:$4 sm:$0xff]  }
 0x3cd   : > { %7508 = vmatpush1.bf16.msra.mxu0 %v9801_v50  ;;  %v10862_v50 = vadd.f32 %v10787_v62, %v862_v46  ;;  %v9870_v62 = vld [vmem:[#allocation8 + $0xac8] ss:$16 sps:$4 sm:$0xff]   ;;  %v9915_v46 = vld [vmem:[#allocation8 + $0xbc0] ss:$16 sps:$4 sm:$0xff]  }
 0x3ce   : > { %7836 = vmatpush1.bf16.msra.mxu1 %v9804_v55  ;;  %7509 = vmatprep.subr.bf16.mxu0 %v9809_v19  ;;  %v9861_v55 = vld [vmem:[#allocation8 + $0xaa0] ss:$16 sps:$4 sm:$0xff]   ;;  %v10865_v19 = vadd.f32 %v10835_v30, %v874_v48  ;;  %v9923_v48 = vld [vmem:[#allocation8 + $0xbe4] ss:$16 sps:$4 sm:$0xff]  }
 0x3cf   : > { %7837 = vmatprep.subr.bf16.mxu1 %v9812_v24  ;;  %v9869_v24 = vld [vmem:[#allocation8 + $0xac4] ss:$16 sps:$4 sm:$0xff]  }
 0x3d1   : > { %7510 = vmatpush1.bf16.msra.mxu0 %v9807_v56  ;;  %v4125_v56 = vsub.f32 0.0, %v10862_v50 }
 0x3d2   : > { %7838 = vmatpush1.bf16.msra.mxu1 %v9810_v38  ;;  %7511 = vmatprep.subr.bf16.mxu0 %v9815_v58  ;;  %v9867_v38 = vld [vmem:[#allocation8 + $0xac0] ss:$16 sps:$4 sm:$0xff]   ;;  %v4128_v58 = vsub.f32 0.0, %v10865_v19 }
 0x3d3   : > { %7839 = vmatprep.subr.bf16.mxu1 %v9818_v54  ;;  %v9875_v54 = vld [vmem:[#allocation8 + $0xae4] ss:$16 sps:$4 sm:$0xff]   ;;  %v4151_v30 = vmul.f32 1.442695, %v4125_v56  ;;  %v9932_v56 = vld [vmem:[#allocation8 + $0xc0c] ss:$16 sps:$4 sm:$0xff]  }
 0x3d5   : > { %7512 = vmatpush1.bf16.msra.mxu0 %v9813_v39  ;;  %v9878_v39 = vld [vmem:[#allocation8 + $0xaec] ss:$16 sps:$4 sm:$0xff]   ;;  %10163 = vpow2.f32 %v4151_v30 }
 0x3d6   : > { %7840 = vmatpush1.bf16.msra.mxu1 %v9816_v60  ;;  %7513 = vmatprep.subr.bf16.mxu0 %v9821_v61  ;;  %v9873_v60 = vld [vmem:[#allocation8 + $0xae0] ss:$16 sps:$4 sm:$0xff]   ;;  %v4157_v61 = vmul.f32 1.442695, %v4128_v58 }
 0x3d7   : > { %7841 = vmatprep.subr.bf16.mxu1 %v9824_v36  ;;  %v9876_v36 = vld [vmem:[#allocation8 + $0xae8] ss:$16 sps:$4 sm:$0xff]   ;;  %v9927_v58 = vld [vmem:[#allocation8 + $0xc00] ss:$16 sps:$4 sm:$0xff]  }
 0x3d8   : > { %10165 = vpow2.f32 %v4157_v61  ;;  %v9936_v61 = vld [vmem:[#allocation8 + $0xc28] ss:$16 sps:$4 sm:$0xff]  }
 0x3d9   : > { %7514 = vmatpush1.bf16.msra.mxu0 %v9819_v7  ;;  %v9881_v7 = vld [vmem:[#allocation8 + $0xb04] ss:$16 sps:$4 sm:$0xff]  }
 0x3da   : > { %7842 = vmatpush1.bf16.msra.mxu1 %v9822_v1  ;;  %7515 = vmatprep.subr.bf16.mxu0 %v9827_v3  ;;  %v9884_v1 = vld [vmem:[#allocation8 + $0xb0c] ss:$16 sps:$4 sm:$0xff]   ;;  %v9879_v3 = vld [vmem:[#allocation8 + $0xb00] ss:$16 sps:$4 sm:$0xff]  }
 0x3db   : > { %7843 = vmatprep.subr.bf16.mxu1 %v9830_v9  ;;  %v9887_v9 = vld [vmem:[#allocation8 + $0xb24] ss:$16 sps:$4 sm:$0xff]  }
 0x3dd   : > { %7516 = vmatpush1.bf16.msra.mxu0 %v9825_v13  ;;  %v9885_v13 = vld [vmem:[#allocation8 + $0xb20] ss:$16 sps:$4 sm:$0xff]  }
 0x3de   : > { %7844 = vmatpush1.bf16.msra.mxu1 %v9828_v14  ;;  %7526 = vmatprep.subr.bf16.mxu0 %v9833_v18  ;;  %v9893_v14 = vld [vmem:[#allocation8 + $0xb44] ss:$16 sps:$4 sm:$0xff]   ;;  %v9896_v18 = vld [vmem:[#allocation8 + $0xb4c] ss:$16 sps:$4 sm:$0xff]  }
 0x3df   : > { %7854 = vmatprep.subr.bf16.mxu1 %v9836_v59  ;;  %v9891_v59 = vld [vmem:[#allocation8 + $0xb40] ss:$16 sps:$4 sm:$0xff]   ;;  %v10164_v31 = vpop.eup %10163 }
 0x3e0   : > { %7518 = vmatmul.mubr.bf16.vlgmr.msra.gmra.mrb[16].mxu0 %v4219_v16 }
 0x3e1   : > { %7846 = vmatmul.mubr.bf16.vlgmr.msra.gmra.mrb[16].mxu1 %v4219_v16  ;;  %7527 = vmatpush1.bf16.msra.mxu0 %v9831_v37  ;;  %v9894_v37 = vld [vmem:[#allocation8 + $0xb48] ss:$16 sps:$4 sm:$0xff]   ;;  %v9899_v16 = vld [vmem:[#allocation8 + $0xb64] ss:$16 sps:$4 sm:$0xff]  }
 0x3e2   : > { %7558 = vmatprep.mubr.bf16.mxu0 %v4222_v15  ;;  %7855 = vmatpush1.bf16.msra.mxu1 %v9834_v25  ;;  %v9902_v25 = vld [vmem:[#allocation8 + $0xb6c] ss:$16 sps:$4 sm:$0xff]  }
 0x3e3   : > { %7886 = vmatprep.mubr.bf16.mxu1 %v4222_v15  ;;  %7528 = vmatprep.subr.bf16.mxu0 %v9839_v27  ;;  %v10166_v27 = vpop.eup %10165  ;;  %v4173_v15 = vadd.f32 1.0, %v10164_v31  ;;  %v9954_v31 = vld [vmem:[#allocation8 + $0xc88] ss:$16 sps:$4 sm:$0xff]  }
 0x3e4   : > { %7856 = vmatprep.subr.bf16.mxu1 %v9842_v32  ;;  %v9897_v32 = vld [vmem:[#allocation8 + $0xb60] ss:$16 sps:$4 sm:$0xff]  }
 0x3e5   : > { %7529 = vmatpush1.bf16.msra.mxu0 %v9837_v4  ;;  %v9900_v4 = vld [vmem:[#allocation8 + $0xb68] ss:$16 sps:$4 sm:$0xff]   ;;  %10167 = vrcp.f32 %v4173_v15 }
 0x3e6   : > { %7857 = vmatpush1.bf16.msra.mxu1 %v9840_v33  ;;  %7530 = vmatprep.subr.bf16.mxu0 %v9845_v20  ;;  %v9905_v33 = vld [vmem:[#allocation8 + $0xb84] ss:$16 sps:$4 sm:$0xff]   ;;  %v4176_v20 = vadd.f32 1.0, %v10166_v27  ;;  %v9957_v27 = vld [vmem:[#allocation8 + $0xca0] ss:$16 sps:$4 sm:$0xff]  }
 0x3e7   : > { %7858 = vmatprep.subr.bf16.mxu1 %v9848_v8  ;;  %v9908_v8 = vld [vmem:[#allocation8 + $0xb8c] ss:$16 sps:$4 sm:$0xff]  }
 0x3e8   : > { %10169 = vrcp.f32 %v4176_v20  ;;  %v9971_v20 = vld [vmem:[#allocation8 + $0xce4] ss:$16 sps:$4 sm:$0xff]  }
 0x3e9   : > { %7531 = vmatpush1.bf16.msra.mxu0 %v9843_v40  ;;  %v9903_v40 = vld [vmem:[#allocation8 + $0xb80] ss:$16 sps:$4 sm:$0xff]  }
 0x3ea   : > { %7859 = vmatpush1.bf16.msra.mxu1 %v9846_v34  ;;  %7532 = vmatprep.subr.bf16.mxu0 %v9851_v22  ;;  %v9906_v34 = vld [vmem:[#allocation8 + $0xb88] ss:$16 sps:$4 sm:$0xff]   ;;  %v9911_v22 = vld [vmem:[#allocation8 + $0xba4] ss:$16 sps:$4 sm:$0xff]  }
 0x3eb   : > { %7860 = vmatprep.subr.bf16.mxu1 %v9854_v35  ;;  %v9914_v35 = vld [vmem:[#allocation8 + $0xbac] ss:$16 sps:$4 sm:$0xff]  }
 0x3ed   : > { %7533 = vmatpush1.bf16.msra.mxu0 %v9849_v57  ;;  %v9909_v57 = vld [vmem:[#allocation8 + $0xba0] ss:$16 sps:$4 sm:$0xff]  }
 0x3ee   : > { %7861 = vmatpush1.bf16.msra.mxu1 %v9852_v43  ;;  %7534 = vmatprep.subr.bf16.mxu0 %v9857_v12  ;;  %v9912_v43 = vld [vmem:[#allocation8 + $0xba8] ss:$16 sps:$4 sm:$0xff]   ;;  %v9917_v12 = vld [vmem:[#allocation8 + $0xbc4] ss:$16 sps:$4 sm:$0xff]  }
 0x3ef   : > { %7862 = vmatprep.subr.bf16.mxu1 %v9860_v45  ;;  %v9920_v45 = vld [vmem:[#allocation8 + $0xbcc] ss:$16 sps:$4 sm:$0xff]  }
 0x3f1   : > { %7535 = vmatpush1.bf16.msra.mxu0 %v9855_v47  ;;  %v9918_v47 = vld [vmem:[#allocation8 + $0xbc8] ss:$16 sps:$4 sm:$0xff]  }
 0x3f2   : > { %7863 = vmatpush1.bf16.msra.mxu1 %v9858_v10  ;;  %7536 = vmatprep.subr.bf16.mxu0 %v9863_v17  ;;  %v10168_v10 = vpop.eup %10167  ;;  %v9926_v17 = vld [vmem:[#allocation8 + $0xbec] ss:$16 sps:$4 sm:$0xff]  }
 0x3f3   : > { %7864 = vmatprep.subr.bf16.mxu1 %v9866_v49  ;;  %v10170_v49 = vpop.eup %10169 }
 0x3f5   : > { %7537 = vmatpush1.bf16.msra.mxu0 %v9861_v55  ;;  %v9921_v55 = vld [vmem:[#allocation8 + $0xbe0] ss:$16 sps:$4 sm:$0xff]  }
 0x3f6   : > { %7865 = vmatpush1.bf16.msra.mxu1 %v9864_v51  ;;  %7538 = vmatprep.subr.bf16.mxu0 %v9869_v24  ;;  %v4205_v51 = vmul.f32 %v10168_v10, %v10862_v50  ;;  %v9924_v24 = vld [vmem:[#allocation8 + $0xbe8] ss:$16 sps:$4 sm:$0xff]   ;;  %v9933_v50 = vld [vmem:[#allocation8 + $0xc20] ss:$16 sps:$4 sm:$0xff]   ;;  %v9989_v10 = vld [vmem:[#allocation8 + $0xd44] ss:$16 sps:$4 sm:$0xff]  }
 0x3f7   : > { %7866 = vmatprep.subr.bf16.mxu1 %v9872_v42  ;;  %v9929_v42 = vld [vmem:[#allocation8 + $0xc04] ss:$16 sps:$4 sm:$0xff]  }
 0x3f9   : > { %7539 = vmatpush1.bf16.msra.mxu0 %v9867_v38  ;;  %v4208_v38 = vmul.f32 %v10170_v49, %v10865_v19  ;;  %v9944_v19 = vld [vmem:[#allocation8 + $0xc4c] ss:$16 sps:$4 sm:$0xff]   ;;  %v9987_v49 = vld [vmem:[#allocation8 + $0xd40] ss:$16 sps:$4 sm:$0xff]  }
 0x3fa   : > { %7867 = vmatpush1.bf16.msra.mxu1 %v9870_v62  ;;  %7540 = vmatprep.subr.bf16.mxu0 %v9875_v54  ;;  %v4221_v62 = vpack.c.bf16 %v4205_v51, %v4205_v51  ;;  %v9930_v54 = vld [vmem:[#allocation8 + $0xc08] ss:$16 sps:$4 sm:$0xff]  }
 0x3fb   : > { %7868 = vmatprep.subr.bf16.mxu1 %v9878_v39  ;;  %v9935_v39 = vld [vmem:[#allocation8 + $0xc24] ss:$16 sps:$4 sm:$0xff]   ;;  %v4224_v30 = vpack.c.bf16 %v4208_v38, %v4208_v38  ;;  %v9990_v51 = vld [vmem:[#allocation8 + $0xd48] ss:$16 sps:$4 sm:$0xff]  }
 0x3fd   : > { %7541 = vmatpush1.bf16.msra.mxu0 %v9873_v60  ;;  %v9938_v60 = vld [vmem:[#allocation8 + $0xc2c] ss:$16 sps:$4 sm:$0xff]  }
 0x3fe   : > { %7869 = vmatpush1.bf16.msra.mxu1 %v9876_v36  ;;  %7542 = vmatprep.subr.bf16.mxu0 %v9881_v7  ;;  %v9941_v36 = vld [vmem:[#allocation8 + $0xc44] ss:$16 sps:$4 sm:$0xff]   ;;  %v9939_v7 = vld [vmem:[#allocation8 + $0xc40] ss:$16 sps:$4 sm:$0xff]  }
 0x3ff   : > { %7870 = vmatprep.subr.bf16.mxu1 %v9884_v1  ;;  %v9942_v1 = vld [vmem:[#allocation8 + $0xc48] ss:$16 sps:$4 sm:$0xff]  }
 0x401   : > { %7543 = vmatpush1.bf16.msra.mxu0 %v9879_v3  ;;  %v9947_v3 = vld [vmem:[#allocation8 + $0xc64] ss:$16 sps:$4 sm:$0xff]  }
 0x402   : > { %7871 = vmatpush1.bf16.msra.mxu1 %v9882_v6  ;;  %7544 = vmatprep.subr.bf16.mxu0 %v9887_v9  ;;  %v9950_v6 = vld [vmem:[#allocation8 + $0xc6c] ss:$16 sps:$4 sm:$0xff]   ;;  %v9945_v9 = vld [vmem:[#allocation8 + $0xc60] ss:$16 sps:$4 sm:$0xff]  }
 0x403   : > { %7872 = vmatprep.subr.bf16.mxu1 %v9890_v11  ;;  %v9948_v11 = vld [vmem:[#allocation8 + $0xc68] ss:$16 sps:$4 sm:$0xff]  }
 0x405   : > { %7545 = vmatpush1.bf16.msra.mxu0 %v9885_v13  ;;  %v9953_v13 = vld [vmem:[#allocation8 + $0xc84] ss:$16 sps:$4 sm:$0xff]  }
 0x406   : > { %7873 = vmatpush1.bf16.msra.mxu1 %v9888_v53  ;;  %7546 = vmatprep.subr.bf16.mxu0 %v9893_v14  ;;  %v9956_v53 = vld [vmem:[#allocation8 + $0xc8c] ss:$16 sps:$4 sm:$0xff]   ;;  %v870_v14 = vrot.slane %v10817_v2, %v837_v26  ;;  %v9960_v26 = vld [vmem:[#allocation8 + $0xca8] ss:$16 sps:$4 sm:$0xff]  }
 0x407   : > { %7874 = vmatprep.subr.bf16.mxu1 %v9896_v18  ;;  %v9951_v18 = vld [vmem:[#allocation8 + $0xc80] ss:$16 sps:$4 sm:$0xff]  }
 0x409   : > { %7547 = vmatpush1.bf16.msra.mxu0 %v9891_v59  ;;  %v882_v59 = vrot.slane %v10817_v2, %v849_v28  ;;  %v9968_v28 = vld [vmem:[#allocation8 + $0xccc] ss:$16 sps:$4 sm:$0xff]  }
 0x40a   : > { %7875 = vmatpush1.bf16.msra.mxu1 %v9894_v37  ;;  %7548 = vmatprep.subr.bf16.mxu0 %v9899_v16  ;;  %v9959_v37 = vld [vmem:[#allocation8 + $0xca4] ss:$16 sps:$4 sm:$0xff]   ;;  %v9962_v16 = vld [vmem:[#allocation8 + $0xcac] ss:$16 sps:$4 sm:$0xff]  }
 0x40b   : > { %7876 = vmatprep.subr.bf16.mxu1 %v9902_v25  ;;  %v10878_v25 = vadd.f32 %v10830_v21, %v870_v14  ;;  %v10881_v15 = vadd.f32 %v10838_v63, %v882_v59  ;;  %v9966_v21 = vld [vmem:[#allocation8 + $0xcc8] ss:$16 sps:$4 sm:$0xff]  }
 0x40d   : > { %7549 = vmatpush1.bf16.msra.mxu0 %v9897_v32  ;;  %v9965_v32 = vld [vmem:[#allocation8 + $0xcc4] ss:$16 sps:$4 sm:$0xff]   ;;  %v4127_v2 = vsub.f32 0.0, %v10878_v25 }
 0x40e   : > { %7877 = vmatpush1.bf16.msra.mxu1 %v9900_v4  ;;  %7550 = vmatprep.subr.bf16.mxu0 %v9905_v33  ;;  %v9963_v4 = vld [vmem:[#allocation8 + $0xcc0] ss:$16 sps:$4 sm:$0xff]   ;;  %v4130_v33 = vsub.f32 0.0, %v10881_v15 }
 0x40f   : > { %7878 = vmatprep.subr.bf16.mxu1 %v9908_v8  ;;  %v9974_v8 = vld [vmem:[#allocation8 + $0xcec] ss:$16 sps:$4 sm:$0xff]   ;;  %v4155_v63 = vmul.f32 1.442695, %v4127_v2  ;;  %v10031_v2 = vld [vmem:[#allocation8 + $0xe24] ss:$16 sps:$4 sm:$0xff]  }
 0x411   : > { %7551 = vmatpush1.bf16.msra.mxu0 %v9903_v40  ;;  %v9969_v40 = vld [vmem:[#allocation8 + $0xce0] ss:$16 sps:$4 sm:$0xff]   ;;  %10171 = vpow2.f32 %v4155_v63  ;;  %v10038_v63 = vld [vmem:[#allocation8 + $0xe48] ss:$16 sps:$4 sm:$0xff]  }
 0x412   : > { %7879 = vmatpush1.bf16.msra.mxu1 %v9906_v34  ;;  %7552 = vmatprep.subr.bf16.mxu0 %v9911_v22  ;;  %v4161_v34 = vmul.f32 1.442695, %v4130_v33  ;;  %v9972_v22 = vld [vmem:[#allocation8 + $0xce8] ss:$16 sps:$4 sm:$0xff]   ;;  %v10034_v33 = vld [vmem:[#allocation8 + $0xe2c] ss:$16 sps:$4 sm:$0xff]  }
 0x413   : > { %7880 = vmatprep.subr.bf16.mxu1 %v9914_v35  ;;  %v9977_v35 = vld [vmem:[#allocation8 + $0xd04] ss:$16 sps:$4 sm:$0xff]  }
 0x414   : > { %10173 = vpow2.f32 %v4161_v34  ;;  %v10046_v34 = vld [vmem:[#allocation8 + $0xe6c] ss:$16 sps:$4 sm:$0xff]  }
 0x415   : > { %7553 = vmatpush1.bf16.msra.mxu0 %v9909_v57  ;;  %v9980_v57 = vld [vmem:[#allocation8 + $0xd0c] ss:$16 sps:$4 sm:$0xff]  }
 0x416   : > { %7881 = vmatpush1.bf16.msra.mxu1 %v9912_v43  ;;  %7554 = vmatprep.subr.bf16.mxu0 %v9917_v12  ;;  %v9975_v43 = vld [vmem:[#allocation8 + $0xd00] ss:$16 sps:$4 sm:$0xff]   ;;  %v9978_v12 = vld [vmem:[#allocation8 + $0xd08] ss:$16 sps:$4 sm:$0xff]  }
 0x417   : > { %7882 = vmatprep.subr.bf16.mxu1 %v9920_v45  ;;  %v9983_v45 = vld [vmem:[#allocation8 + $0xd24] ss:$16 sps:$4 sm:$0xff]  }
 0x419   : > { %7555 = vmatpush1.bf16.msra.mxu0 %v9915_v46  ;;  %v9986_v46 = vld [vmem:[#allocation8 + $0xd2c] ss:$16 sps:$4 sm:$0xff]  }
 0x41a   : > { %7883 = vmatpush1.bf16.msra.mxu1 %v9918_v47  ;;  %7556 = vmatprep.subr.bf16.mxu0 %v9923_v48  ;;  %v9981_v47 = vld [vmem:[#allocation8 + $0xd20] ss:$16 sps:$4 sm:$0xff]   ;;  %v9984_v48 = vld [vmem:[#allocation8 + $0xd28] ss:$16 sps:$4 sm:$0xff]  }
 0x41b   : > { %7884 = vmatprep.subr.bf16.mxu1 %v9926_v17  ;;  %v9992_v17 = vld [vmem:[#allocation8 + $0xd4c] ss:$16 sps:$4 sm:$0xff]  }
 0x41d   : > { %7557 = vmatpush1.bf16.msra.mxu0 %v9921_v55  ;;  %v10172_v55 = vpop.eup %10171 }
 0x41e   : > { %7885 = vmatpush1.bf16.msra.mxu1 %v9924_v24  ;;  %7567 = vmatprep.subr.bf16.mxu0 %v9929_v42  ;;  %v9995_v24 = vld [vmem:[#allocation8 + $0xd64] ss:$16 sps:$4 sm:$0xff]   ;;  %v9998_v42 = vld [vmem:[#allocation8 + $0xd6c] ss:$16 sps:$4 sm:$0xff]   ;;  %v4175_v38 = vadd.f32 1.0, %v10172_v55 }
 0x41f   : > { %7895 = vmatprep.subr.bf16.mxu1 %v9932_v56  ;;  %v10174_v56 = vpop.eup %10173  ;;  %v10056_v55 = vld [vmem:[#allocation8 + $0xea8] ss:$16 sps:$4 sm:$0xff]  }
 0x420   : > { %7559 = vmatmul.mubr.bf16.vlgmr.msra.gmra.mrb[16].mxu0 %v4221_v62  ;;  %10175 = vrcp.f32 %v4175_v38  ;;  %v10070_v38 = vld [vmem:[#allocation8 + $0xeec] ss:$16 sps:$4 sm:$0xff]  }
 0x421   : > { %7887 = vmatmul.mubr.bf16.vlgmr.msra.gmra.mrb[16].mxu1 %v4221_v62  ;;  %7568 = vmatpush1.bf16.msra.mxu0 %v9927_v58  ;;  %v9993_v58 = vld [vmem:[#allocation8 + $0xd60] ss:$16 sps:$4 sm:$0xff]   ;;  %v9996_v62 = vld [vmem:[#allocation8 + $0xd68] ss:$16 sps:$4 sm:$0xff]  }
 0x422   : > { %7599 = vmatprep.mubr.bf16.mxu0 %v4224_v30  ;;  %7896 = vmatpush1.bf16.msra.mxu1 %v9930_v54  ;;  %v10001_v54 = vld [vmem:[#allocation8 + $0xd84] ss:$16 sps:$4 sm:$0xff]  }
 0x423   : > { %7927 = vmatprep.mubr.bf16.mxu1 %v4224_v30  ;;  %7569 = vmatprep.subr.bf16.mxu0 %v9935_v39  ;;  %v4178_v39 = vadd.f32 1.0, %v10174_v56  ;;  %v10004_v30 = vld [vmem:[#allocation8 + $0xd8c] ss:$16 sps:$4 sm:$0xff]   ;;  %v10067_v56 = vld [vmem:[#allocation8 + $0xee4] ss:$16 sps:$4 sm:$0xff]  }
 0x424   : > { %7897 = vmatprep.subr.bf16.mxu1 %v9938_v60  ;;  %v9999_v60 = vld [vmem:[#allocation8 + $0xd80] ss:$16 sps:$4 sm:$0xff]  }
 0x425   : > { %7570 = vmatpush1.bf16.msra.mxu0 %v9933_v50  ;;  %v10002_v50 = vld [vmem:[#allocation8 + $0xd88] ss:$16 sps:$4 sm:$0xff]   ;;  %10177 = vrcp.f32 %v4178_v39  ;;  %v10076_v39 = vld [vmem:[#allocation8 + $0xf0c] ss:$16 sps:$4 sm:$0xff]  }
 0x426   : > { %7898 = vmatpush1.bf16.msra.mxu1 %v9936_v61  ;;  %7571 = vmatprep.subr.bf16.mxu0 %v9941_v36  ;;  %v10007_v61 = vld [vmem:[#allocation8 + $0xda4] ss:$16 sps:$4 sm:$0xff]   ;;  %v10010_v36 = vld [vmem:[#allocation8 + $0xdac] ss:$16 sps:$4 sm:$0xff]  }
 0x427   : > { %7899 = vmatprep.subr.bf16.mxu1 %v9944_v19  ;;  %v10005_v19 = vld [vmem:[#allocation8 + $0xda0] ss:$16 sps:$4 sm:$0xff]  }
 0x429   : > { %7572 = vmatpush1.bf16.msra.mxu0 %v9939_v7  ;;  %v10008_v7 = vld [vmem:[#allocation8 + $0xda8] ss:$16 sps:$4 sm:$0xff]  }
 0x42a   : > { %7900 = vmatpush1.bf16.msra.mxu1 %v9942_v1  ;;  %7573 = vmatprep.subr.bf16.mxu0 %v9947_v3  ;;  %v10013_v1 = vld [vmem:[#allocation8 + $0xdc4] ss:$16 sps:$4 sm:$0xff]   ;;  %v10016_v3 = vld [vmem:[#allocation8 + $0xdcc] ss:$16 sps:$4 sm:$0xff]  }
 0x42b   : > { %7901 = vmatprep.subr.bf16.mxu1 %v9950_v6  ;;  %v10011_v6 = vld [vmem:[#allocation8 + $0xdc0] ss:$16 sps:$4 sm:$0xff]  }
 0x42d   : > { %7574 = vmatpush1.bf16.msra.mxu0 %v9945_v9  ;;  %v10014_v9 = vld [vmem:[#allocation8 + $0xdc8] ss:$16 sps:$4 sm:$0xff]  }
 0x42e   : > { %7902 = vmatpush1.bf16.msra.mxu1 %v9948_v11  ;;  %7575 = vmatprep.subr.bf16.mxu0 %v9953_v13  ;;  %v10019_v11 = vld [vmem:[#allocation8 + $0xde4] ss:$16 sps:$4 sm:$0xff]   ;;  %v10176_v13 = vpop.eup %10175 }
 0x42f   : > { %7903 = vmatprep.subr.bf16.mxu1 %v9956_v53  ;;  %v10022_v53 = vld [vmem:[#allocation8 + $0xdec] ss:$16 sps:$4 sm:$0xff]   ;;  %v10178_v14 = vpop.eup %10177  ;;  %v4207_v59 = vmul.f32 %v10176_v13, %v10878_v25  ;;  %v10029_v25 = vld [vmem:[#allocation8 + $0xe20] ss:$16 sps:$4 sm:$0xff]  }
 0x430   : > { %v10094_v13 = vld [vmem:[#allocation8 + $0xf6c] ss:$16 sps:$4 sm:$0xff]  }
 0x431   : > { %7576 = vmatpush1.bf16.msra.mxu0 %v9951_v18  ;;  %v10017_v18 = vld [vmem:[#allocation8 + $0xde0] ss:$16 sps:$4 sm:$0xff]  }
 0x432   : > { %7904 = vmatpush1.bf16.msra.mxu1 %v9954_v31  ;;  %7577 = vmatprep.subr.bf16.mxu0 %v9959_v37  ;;  %v10020_v31 = vld [vmem:[#allocation8 + $0xde8] ss:$16 sps:$4 sm:$0xff]   ;;  %v10025_v37 = vld [vmem:[#allocation8 + $0xe04] ss:$16 sps:$4 sm:$0xff]  }
 0x433   : > { %7905 = vmatprep.subr.bf16.mxu1 %v9962_v16  ;;  %v10028_v16 = vld [vmem:[#allocation8 + $0xe0c] ss:$16 sps:$4 sm:$0xff]  }
 0x435   : > { %7578 = vmatpush1.bf16.msra.mxu0 %v9957_v27  ;;  %v4210_v27 = vmul.f32 %v10178_v14, %v10881_v15  ;;  %v10040_v15 = vld [vmem:[#allocation8 + $0xe4c] ss:$16 sps:$4 sm:$0xff]   ;;  %v10089_v14 = vld [vmem:[#allocation8 + $0xf60] ss:$16 sps:$4 sm:$0xff]  }
 0x436   : > { %7906 = vmatpush1.bf16.msra.mxu1 %v9960_v26  ;;  %7579 = vmatprep.subr.bf16.mxu0 %v9965_v32  ;;  %v10023_v26 = vld [vmem:[#allocation8 + $0xe00] ss:$16 sps:$4 sm:$0xff]   ;;  %v4223_v32 = vpack.c.bf16 %v4207_v59, %v4207_v59  ;;  %v10097_v59 = vld [vmem:[#allocation8 + $0xf84] ss:$16 sps:$4 sm:$0xff]  }
 0x437   : > { %7907 = vmatprep.subr.bf16.mxu1 %v9968_v28  ;;  %v10026_v28 = vld [vmem:[#allocation8 + $0xe08] ss:$16 sps:$4 sm:$0xff]  }
 0x439   : > { %7580 = vmatpush1.bf16.msra.mxu0 %v9963_v4  ;;  %v4226_v4 = vpack.c.bf16 %v4210_v27, %v4210_v27  ;;  %v10103_v27 = vld [vmem:[#allocation8 + $0xfa4] ss:$16 sps:$4 sm:$0xff]  }
 0x43a   : > { %7908 = vmatpush1.bf16.msra.mxu1 %v9966_v21  ;;  %7581 = vmatprep.subr.bf16.mxu0 %v9971_v20  ;;  %v10032_v21 = vld [vmem:[#allocation8 + $0xe28] ss:$16 sps:$4 sm:$0xff]   ;;  %v10037_v20 = vld [vmem:[#allocation8 + $0xe44] ss:$16 sps:$4 sm:$0xff]  }
 0x43b   : > { %7909 = vmatprep.subr.bf16.mxu1 %v9974_v8  ;;  %v10035_v8 = vld [vmem:[#allocation8 + $0xe40] ss:$16 sps:$4 sm:$0xff]  }
 0x43d   : > { %7582 = vmatpush1.bf16.msra.mxu0 %v9969_v40  ;;  %v10043_v40 = vld [vmem:[#allocation8 + $0xe64] ss:$16 sps:$4 sm:$0xff]  }
 0x43e   : > { %7910 = vmatpush1.bf16.msra.mxu1 %v9972_v22  ;;  %7583 = vmatprep.subr.bf16.mxu0 %v9977_v35  ;;  %v10041_v22 = vld [vmem:[#allocation8 + $0xe60] ss:$16 sps:$4 sm:$0xff]   ;;  %v10044_v35 = vld [vmem:[#allocation8 + $0xe68] ss:$16 sps:$4 sm:$0xff]  }
 0x43f   : > { %7911 = vmatprep.subr.bf16.mxu1 %v9980_v57  ;;  %v10049_v57 = vld [vmem:[#allocation8 + $0xe84] ss:$16 sps:$4 sm:$0xff]  }
 0x441   : > { %7584 = vmatpush1.bf16.msra.mxu0 %v9975_v43  ;;  %v10052_v43 = vld [vmem:[#allocation8 + $0xe8c] ss:$16 sps:$4 sm:$0xff]  }
 0x442   : > { %7912 = vmatpush1.bf16.msra.mxu1 %v9978_v12  ;;  %7585 = vmatprep.subr.bf16.mxu0 %v9983_v45  ;;  %v10184_v12 = vld [vmem:[#allocation7 + $0x8] sm:$0xff] }
 0x443   : > { %7913 = vmatprep.subr.bf16.mxu1 %v9986_v46  ;;  %v878_v45 = vrot.slane %v10184_v12, %v845_v0  ;;  %v10047_v46 = vld [vmem:[#allocation8 + $0xe80] ss:$16 sps:$4 sm:$0xff]  }
 0x445   : > { %7586 = vmatpush1.bf16.msra.mxu0 %v9981_v47  ;;  %v10050_v47 = vld [vmem:[#allocation8 + $0xe88] ss:$16 sps:$4 sm:$0xff]  }
 0x446   : > { %7914 = vmatpush1.bf16.msra.mxu1 %v9984_v48  ;;  %7587 = vmatprep.subr.bf16.mxu0 %v9989_v10  ;;  %v10055_v48 = vld [vmem:[#allocation8 + $0xea4] ss:$16 sps:$4 sm:$0xff]   ;;  %v10058_v10 = vld [vmem:[#allocation8 + $0xeac] ss:$16 sps:$4 sm:$0xff]  }
 0x447   : > { %7915 = vmatprep.subr.bf16.mxu1 %v9992_v17  ;;  %v10890_v17 = vadd.f32 %v10833_v29, %v878_v45 }
 0x449   : > { %7588 = vmatpush1.bf16.msra.mxu0 %v9987_v49  ;;  %v10053_v49 = vld [vmem:[#allocation8 + $0xea0] ss:$16 sps:$4 sm:$0xff]   ;;  %v4129_v0 = vsub.f32 0.0, %v10890_v17 }
 0x44a   : > { %7916 = vmatpush1.bf16.msra.mxu1 %v9990_v51  ;;  %7589 = vmatprep.subr.bf16.mxu0 %v9995_v24  ;;  %v10061_v51 = vld [vmem:[#allocation8 + $0xec4] ss:$16 sps:$4 sm:$0xff]   ;;  %v10059_v24 = vld [vmem:[#allocation8 + $0xec0] ss:$16 sps:$4 sm:$0xff]  }
 0x44b   : > { %7917 = vmatprep.subr.bf16.mxu1 %v9998_v42  ;;  %v10062_v42 = vld [vmem:[#allocation8 + $0xec8] ss:$16 sps:$4 sm:$0xff]   ;;  %v4159_v29 = vmul.f32 1.442695, %v4129_v0 }
 0x44d   : > { %7590 = vmatpush1.bf16.msra.mxu0 %v9993_v58  ;;  %v10065_v58 = vld [vmem:[#allocation8 + $0xee0] ss:$16 sps:$4 sm:$0xff]   ;;  %10179 = vpow2.f32 %v4159_v29 }
 0x44e   : > { %7918 = vmatpush1.bf16.msra.mxu1 %v9996_v62  ;;  %7591 = vmatprep.subr.bf16.mxu0 %v10001_v54  ;;  %v10068_v62 = vld [vmem:[#allocation8 + $0xee8] ss:$16 sps:$4 sm:$0xff]   ;;  %v10073_v54 = vld [vmem:[#allocation8 + $0xf04] ss:$16 sps:$4 sm:$0xff]  }
 0x44f   : > { %7919 = vmatprep.subr.bf16.mxu1 %v10004_v30  ;;  %v10071_v30 = vld [vmem:[#allocation8 + $0xf00] ss:$16 sps:$4 sm:$0xff]  }
 0x451   : > { %7592 = vmatpush1.bf16.msra.mxu0 %v9999_v60  ;;  %v10074_v60 = vld [vmem:[#allocation8 + $0xf08] ss:$16 sps:$4 sm:$0xff]  }
 0x452   : > { %7920 = vmatpush1.bf16.msra.mxu1 %v10002_v50  ;;  %7593 = vmatprep.subr.bf16.mxu0 %v10007_v61  ;;  %v10079_v50 = vld [vmem:[#allocation8 + $0xf24] ss:$16 sps:$4 sm:$0xff]   ;;  %v10082_v61 = vld [vmem:[#allocation8 + $0xf2c] ss:$16 sps:$4 sm:$0xff]  }
 0x453   : > { %7921 = vmatprep.subr.bf16.mxu1 %v10010_v36  ;;  %v10077_v36 = vld [vmem:[#allocation8 + $0xf20] ss:$16 sps:$4 sm:$0xff]  }
 0x455   : > { %7594 = vmatpush1.bf16.msra.mxu0 %v10005_v19  ;;  %v10080_v19 = vld [vmem:[#allocation8 + $0xf28] ss:$16 sps:$4 sm:$0xff]  }
 0x456   : > { %7922 = vmatpush1.bf16.msra.mxu1 %v10008_v7  ;;  %7595 = vmatprep.subr.bf16.mxu0 %v10013_v1  ;;  %v10085_v7 = vld [vmem:[#allocation8 + $0xf44] ss:$16 sps:$4 sm:$0xff]   ;;  %v10088_v1 = vld [vmem:[#allocation8 + $0xf4c] ss:$16 sps:$4 sm:$0xff]  }
 0x457   : > { %7923 = vmatprep.subr.bf16.mxu1 %v10016_v3  ;;  %v10083_v3 = vld [vmem:[#allocation8 + $0xf40] ss:$16 sps:$4 sm:$0xff]  }
 0x459   : > { %7596 = vmatpush1.bf16.msra.mxu0 %v10011_v6  ;;  %v10180_v6 = vpop.eup %10179 }
 0x45a   : > { %7924 = vmatpush1.bf16.msra.mxu1 %v10014_v9  ;;  %7597 = vmatprep.subr.bf16.mxu0 %v10019_v11  ;;  %v10086_v9 = vld [vmem:[#allocation8 + $0xf48] ss:$16 sps:$4 sm:$0xff]   ;;  %v10091_v11 = vld [vmem:[#allocation8 + $0xf64] ss:$16 sps:$4 sm:$0xff]  }
 0x45b   : > { %7925 = vmatprep.subr.bf16.mxu1 %v10022_v53  ;;  %v4177_v53 = vadd.f32 1.0, %v10180_v6 }
 0x45d   : > { %7598 = vmatpush1.bf16.msra.mxu0 %v10017_v18  ;;  %v10092_v18 = vld [vmem:[#allocation8 + $0xf68] ss:$16 sps:$4 sm:$0xff]   ;;  %10181 = vrcp.f32 %v4177_v53 }
 0x45e   : > { %7926 = vmatpush1.bf16.msra.mxu1 %v10020_v31  ;;  %7608 = vmatprep.subr.bf16.mxu0 %v10025_v37  ;;  %v10100_v31 = vld [vmem:[#allocation8 + $0xf8c] ss:$16 sps:$4 sm:$0xff]   ;;  %v10095_v37 = vld [vmem:[#allocation8 + $0xf80] ss:$16 sps:$4 sm:$0xff]  }
 0x45f   : > { %7936 = vmatprep.subr.bf16.mxu1 %v10028_v16  ;;  %v10098_v16 = vld [vmem:[#allocation8 + $0xf88] ss:$16 sps:$4 sm:$0xff]  }
 0x460   : > { %7600 = vmatmul.mubr.bf16.vlgmr.msra.gmra.mrb[16].mxu0 %v4223_v32 }
 0x461   : > { %7928 = vmatmul.mubr.bf16.vlgmr.msra.gmra.mrb[16].mxu1 %v4223_v32  ;;  %7609 = vmatpush1.bf16.msra.mxu0 %v10023_v26  ;;  %v10106_v26 = vld [vmem:[#allocation8 + $0xfac] ss:$16 sps:$4 sm:$0xff]   ;;  %v10101_v32 = vld [vmem:[#allocation8 + $0xfa0] ss:$16 sps:$4 sm:$0xff]  }
 0x462   : > { %7640 = vmatprep.mubr.bf16.mxu0 %v4226_v4  ;;  %7937 = vmatpush1.bf16.msra.mxu1 %v10026_v28  ;;  %v10104_v28 = vld [vmem:[#allocation8 + $0xfa8] ss:$16 sps:$4 sm:$0xff]  }
 0x463   : > { %7968 = vmatprep.mubr.bf16.mxu1 %v4226_v4  ;;  %7610 = vmatprep.subr.bf16.mxu0 %v10031_v2  ;;  %v10109_v2 = vld [vmem:[#allocation8 + $0xfc4] ss:$16 sps:$4 sm:$0xff]   ;;  %v10112_v4 = vld [vmem:[#allocation8 + $0xfcc] ss:$16 sps:$4 sm:$0xff]  }
 0x464   : > { %7938 = vmatprep.subr.bf16.mxu1 %v10034_v33  ;;  %v10107_v33 = vld [vmem:[#allocation8 + $0xfc0] ss:$16 sps:$4 sm:$0xff]  }
 0x465   : > { %7611 = vmatpush1.bf16.msra.mxu0 %v10029_v25  ;;  %v10110_v25 = vld [vmem:[#allocation8 + $0xfc8] ss:$16 sps:$4 sm:$0xff]  }
 0x466   : > { %7939 = vmatpush1.bf16.msra.mxu1 %v10032_v21  ;;  %7612 = vmatprep.subr.bf16.mxu0 %v10037_v20  ;;  %v10115_v21 = vld [vmem:[#allocation8 + $0xfe4] ss:$16 sps:$4 sm:$0xff]  }
 0x467   : > { %7940 = vmatprep.subr.bf16.mxu1 %v10040_v15  ;;  %v10182_v20 = vpop.eup %10181  ;;  %v10118_v15 = vld [vmem:[#allocation8 + $0xfec] ss:$16 sps:$4 sm:$0xff]  }
 0x469   : > { %7613 = vmatpush1.bf16.msra.mxu0 %v10035_v8  ;;  %v10113_v8 = vld [vmem:[#allocation8 + $0xfe0] ss:$16 sps:$4 sm:$0xff]  }
 0x46a   : > { %7941 = vmatpush1.bf16.msra.mxu1 %v10038_v63  ;;  %7614 = vmatprep.subr.bf16.mxu0 %v10043_v40  ;;  %v4209_v63 = vmul.f32 %v10182_v20, %v10890_v17  ;;  %v10116_v40 = vld [vmem:[#allocation8 + $0xfe8] ss:$16 sps:$4 sm:$0xff]  }
 0x46b   : > { %7942 = vmatprep.subr.bf16.mxu1 %v10046_v34 }
 0x46c   : > { %v4225_v34 = vpack.c.bf16 %v4209_v63, %v4209_v63 }
 0x46d   : > { %7615 = vmatpush1.bf16.msra.mxu0 %v10041_v22  ;;  %v4739_v22 = vld [vmem:[#allocation10] sm:$0xf] }
 0x46e   : > { %7943 = vmatpush1.bf16.msra.mxu1 %v10044_v35  ;;  %7616 = vmatprep.subr.bf16.mxu0 %v10049_v57  ;;  %v4744_v35 = vrot.slane %v4739_v22, %v10750_v23  ;;  %v4752_v57 = vrot.slane %v4739_v22, %v10770_v41  ;;  %v4756_v12 = vrot.slane %v4739_v22, %v10753_v5 }
 0x46f   : > { %7944 = vmatprep.subr.bf16.mxu1 %v10052_v43  ;;  %v4748_v43 = vrot.slane %v4739_v22, %v10728_v52 }
 0x471   : > { %7617 = vmatpush1.bf16.msra.mxu0 %v10047_v46 }
 0x472   : > { %7945 = vmatpush1.bf16.msra.mxu1 %v10050_v47  ;;  %7618 = vmatprep.subr.bf16.mxu0 %v10055_v48 }
 0x473   : > { %7946 = vmatprep.subr.bf16.mxu1 %v10058_v10 }
 0x475   : > { %7619 = vmatpush1.bf16.msra.mxu0 %v10053_v49 }
 0x476   : > { %7947 = vmatpush1.bf16.msra.mxu1 %v10056_v55  ;;  %7620 = vmatprep.subr.bf16.mxu0 %v10061_v51 }
 0x477   : > { %7948 = vmatprep.subr.bf16.mxu1 %v10064_v44 }
 0x479   : > { %7621 = vmatpush1.bf16.msra.mxu0 %v10059_v24 }
 0x47a   : > { %7949 = vmatpush1.bf16.msra.mxu1 %v10062_v42  ;;  %7622 = vmatprep.subr.bf16.mxu0 %v10067_v56 }
 0x47b   : > { %7950 = vmatprep.subr.bf16.mxu1 %v10070_v38 }
 0x47d   : > { %7623 = vmatpush1.bf16.msra.mxu0 %v10065_v58 }
 0x47e   : > { %7951 = vmatpush1.bf16.msra.mxu1 %v10068_v62  ;;  %7624 = vmatprep.subr.bf16.mxu0 %v10073_v54 }
 0x47f   : > { %7952 = vmatprep.subr.bf16.mxu1 %v10076_v39 }
 0x481   : > { %7625 = vmatpush1.bf16.msra.mxu0 %v10071_v30 }
 0x482   : > { %7953 = vmatpush1.bf16.msra.mxu1 %v10074_v60  ;;  %7626 = vmatprep.subr.bf16.mxu0 %v10079_v50 }
 0x483   : > { %7954 = vmatprep.subr.bf16.mxu1 %v10082_v61 }
 0x485   : > { %7627 = vmatpush1.bf16.msra.mxu0 %v10077_v36 }
 0x486   : > { %7955 = vmatpush1.bf16.msra.mxu1 %v10080_v19  ;;  %7628 = vmatprep.subr.bf16.mxu0 %v10085_v7 }
 0x487   : > { %7956 = vmatprep.subr.bf16.mxu1 %v10088_v1 }
 0x489   : > { %7629 = vmatpush1.bf16.msra.mxu0 %v10083_v3 }
 0x48a   : > { %7957 = vmatpush1.bf16.msra.mxu1 %v10086_v9  ;;  %7630 = vmatprep.subr.bf16.mxu0 %v10091_v11 }
 0x48b   : > { %7958 = vmatprep.subr.bf16.mxu1 %v10094_v13 }
 0x48d   : > { %7631 = vmatpush1.bf16.msra.mxu0 %v10089_v14 }
 0x48e   : > { %7959 = vmatpush1.bf16.msra.mxu1 %v10092_v18  ;;  %7632 = vmatprep.subr.bf16.mxu0 %v10097_v59 }
 0x48f   : > { %7960 = vmatprep.subr.bf16.mxu1 %v10100_v31 }
 0x491   : > { %7633 = vmatpush1.bf16.msra.mxu0 %v10095_v37 }
 0x492   : > { %7961 = vmatpush1.bf16.msra.mxu1 %v10098_v16  ;;  %7634 = vmatprep.subr.bf16.mxu0 %v10103_v27 }
 0x493   : > { %7962 = vmatprep.subr.bf16.mxu1 %v10106_v26 }
 0x495   : > { %7635 = vmatpush1.bf16.msra.mxu0 %v10101_v32 }
 0x496   : > { %7963 = vmatpush1.bf16.msra.mxu1 %v10104_v28  ;;  %7636 = vmatprep.subr.bf16.mxu0 %v10109_v2 }
 0x497   : > { %7964 = vmatprep.subr.bf16.mxu1 %v10112_v4 }
 0x499   : > { %7637 = vmatpush1.bf16.msra.mxu0 %v10107_v33 }
 0x49a   : > { %7965 = vmatpush1.bf16.msra.mxu1 %v10110_v25  ;;  %7638 = vmatprep.subr.bf16.mxu0 %v10115_v21 }
 0x49b   : > { %7966 = vmatprep.subr.bf16.mxu1 %v10118_v15 }
 0x49d   : > { %7639 = vmatpush1.bf16.msra.mxu0 %v10113_v8 }
 0x49e   : > { %7967 = vmatpush1.bf16.msra.mxu1 %v10116_v40 }
 0x4a0   : > { %7641 = vmatmul.mubr.bf16.vlgmr.msra.gmra.mrb[16].mxu0 %v4225_v34 }
 0x4a1   : > { %7969 = vmatmul.mubr.bf16.vlgmr.msra.gmra.mrb[16].mxu1 %v4225_v34 }
 0x573   : > { %v7642_v45 = vpop.f32.mrb[16].mxu0 }
 0x574   : > { %v9168_v46 = vadd.f32 %v7642_v45, %v4744_v35  ;;  %v7970_v47 = vpop.f32.mrb[16].mxu1  ;;  %v7644_v48 = vpop.f32.mrb[17].mxu0 }
 0x575   : > { %v9170_v10 = vadd.f32 %v7970_v47, %v4752_v57  ;;  %v9169_v17 = vadd.f32 %v7644_v48, %v4748_v43  ;;  %v7972_v49 = vpop.f32.mrb[17].mxu1  ;;  %v7646_v23 = vpop.f32.mrb[18].mxu0 }
 0x576   : > { %7977 = vst [vmem:[%s294_s9] sm:$0xff] %v9168_v46  ;;  %v9171_v41 = vadd.f32 %v7972_v49, %v4756_v12  ;;  %v7974_v55 = vpop.f32.mrb[18].mxu1  ;;  %v7647_v52 = vpop.f32.mrb[19].mxu0 }
 0x577   : > { %7979 = vst [vmem:[%s294_s9 + $0x10] sm:$0xff] %v9170_v10  ;;  %7978 = vst [vmem:[%s294_s9 + $0x8] sm:$0xff] %v9169_v17  ;;  %v7975_v5 = vpop.f32.mrb[19].mxu1 }
 0x578   : > { %7980 = vst [vmem:[%s294_s9 + $0x18] sm:$0xff] %v9171_v41 }
 0x579   : > { %10340 = shalt.err (!%p10337_p12)
}
 0x57a   : > { %s10341_s16 = scalar_lea.hbm %s10904_s24, 512  ;;  %s10345_s6 = scalar_lea.hbm %s10953_s5, 1024 }
 0x57b   : > { %p10342_p13 = scmp.ne.s32.totalorder %s10904_s24, %s10341_s16  ;;  %p10346_p9 = scmp.lt.u32.totalorder %s10904_s24, %s10953_s5 }
 0x57c   : > { %p10347_p4 = scmp.lt.u32.totalorder %s10345_s6, %s10341_s16  ;;  %p10349_p6 = scmp.lt.u32.totalorder %s10341_s16, %s10904_s24 }
 0x57d   : > { %p10343_p1 = pnand %p10342_p13, %p10971_p0 }
 0x57e   : > { %p10348_p8 = por %p10347_p4, %p10346_p9 }
 0x57f   : > { %p10344_p7 = pneg %p10343_p1 }
 0x580   : > { %p10350_p2 = por %p10349_p6, %p10348_p8 }
 0x582   : > { %p10351_p5 = pnand %p10350_p2, %p10344_p7 }
 0x584   : > { %10354 = shalt.err (!%p10351_p5)
}
 0x585   : > { %9278 = dma.vmem_to_hbm [thread:$0]  (%p10971_p0), %s10906_s17, 512, %s10904_s24, %s7982_s29  }
 0x586 PF: > { %s8008_s25 = sand.u32 1, %s10389_s18   ;;  %p10972_p10 = scmp.ne.s32.totalorder %s10964_s12, 0 }
 0x587   : > { %p10973_p11 = scmp.ge.s32.totalorder %s10401_s21, 2  ;;  %s8009_s9 = scalar_lea.sflag [#allocation4], %s8008_s25 }
 0x589   : > { %p9298_p3 = pnand %p10973_p11, %p10972_p10 }
 0x58b   : > { %10384 = dma.done.wait (!%p9298_p3), %s8009_s9, 512  }
 0x58c   : > { %10386 = vsyncadd (!%p9298_p3), %s8009_s9, 4294966784  ;;  %p20_p12 = scmp.ge.s32.totalorder %s10579_s28, 4   ;;  %s10974_s18 = smov %s10393_s19 }
 0x58d   : > { %s10975_s19 = smov %s10397_s20  ;;  %s10976_s20 = smov %s10590_s8 }
 0x58e   : > { %s10977_s21 = smov %s10579_s28  ;;  %22 = sbr.rel (!%p20_p12) target bundleno = 7 (0x7), region = 101 }
 0x595   :  { %8014 = vsyncpa [#allocation3], 1 }
 0x596   :  { %8016 = vsyncpa [#allocation3 + $0x1], 1 }
 0x597   :  { %8017 = vsyncpa [#allocation6], 1 }
 0x598   :  { %8018 = vsyncpa [#allocation9], 1 }
 0x599   :  { %8019 = vsyncpa [#allocation4], 1 }
 0x59a   :  { %8021 = vsyncpa [#allocation4 + $0x1], 1 }

</bundles_post_ra>
